<compile_context>
chip_gen: v7x
topology: tpu7x:2x2x1
jax: 0.10.0
libtpu: 0.0.40
codegen_flags: <defaults>
</compile_context>

<pallas_src>
import math

import jax
import jax.numpy as jnp
import numpy as np
from jax.experimental import pallas as pl
from jax.experimental.pallas import tpu as pltpu


def _zero_border(ref, h, w):
    """Zero the 1-wide spatial border of a (h+2, w+2, C) VMEM scratch ref."""
    zr = jnp.zeros((1, ref.shape[1], ref.shape[2]), ref.dtype)
    ref[0:1, :, :] = zr
    ref[h + 1:h + 2, :, :] = zr
    zc = jnp.zeros((ref.shape[0], 1, ref.shape[2]), ref.dtype)
    ref[:, 0:1, :] = zc
    ref[:, w + 1:w + 2, :] = zc


def _decoder_kernel(x_ref, w1_ref, b1_ref, w2_ref, b2_ref, out_ref,
                    xpad_s, midp_s):
    # x_ref   : (H, W, Cin)                 one image, channels-last
    # w1_ref  : (9*Cin, Cmid)      bf16     K-packed 3x3 conv weights (ky, kx, ci)
    # b1_ref  : (1, Cmid)          f32
    # w2_ref  : (2, 2, 4*Cmid, Cout) bf16   per-parity-plane K-packed deconv weights
    # b2_ref  : (1, Cout)          f32
    # out_ref : (2, 2, H*W, Cout)  f32      parity planes, lane/sublane-dense
    # xpad_s  : (H+2, W+2, Cin)    bf16     zero-padded conv input (VMEM scratch)
    # midp_s  : (H+2, W+2, Cmid)   bf16     zero-padded mid activation (VMEM scratch)
    H, W, Cin = x_ref.shape
    Cmid = b1_ref.shape[1]
    Cout = out_ref.shape[3]

    # Only the 1-wide border needs (re)zeroing; the interior is overwritten below.
    _zero_border(xpad_s, H, W)
    _zero_border(midp_s, H, W)

    xpad_s[pl.ds(1, H), pl.ds(1, W), :] = x_ref[...].astype(xpad_s.dtype)

    # ---- Conv2d(3x3, padding=1) + ReLU : one K-fused bf16 MXU matmul ----
    taps = [xpad_s[ky:ky + H, kx:kx + W, :]
            for ky in range(3) for kx in range(3)]
    patch = jnp.concatenate(taps, axis=-1).reshape(H * W, 9 * Cin)
    mid = jnp.dot(patch, w1_ref[...], preferred_element_type=jnp.float32)
    mid = jnp.maximum(mid + b1_ref[...], 0.0)                  # (H*W, Cmid) f32
    midp_s[pl.ds(1, H), pl.ds(1, W), :] = (
        mid.reshape(H, W, Cmid).astype(midp_s.dtype))

    # ---- ConvTranspose2d(k=4, s=2, p=1) + ReLU via polyphase decomposition ----
    # Output row oy = 2m + py gets contributions from:
    #   py == 0: mid[m]   (ky=1) and mid[m-1] (ky=3)
    #   py == 1: mid[m+1] (ky=0) and mid[m]   (ky=2)
    # (same along columns); the wrapper packs w2 taps in this same (a, b) order,
    # so each parity plane is a single K-fused matmul.
    for py in range(2):
        for px in range(2):
            wins = []
            for a in range(2):
                rs = (1 - a) if py == 0 else (2 - a)           # row start in padded mid
                for b in range(2):
                    cs = (1 - b) if px == 0 else (2 - b)       # col start in padded mid
                    wins.append(midp_s[pl.ds(rs, H), pl.ds(cs, W), :])
            p2 = jnp.concatenate(wins, axis=-1).reshape(H * W, 4 * Cmid)
            acc = jnp.dot(p2, w2_ref[py, px], preferred_element_type=jnp.float32)
            out_ref[py, px] = jnp.maximum(acc + b2_ref[...], 0.0).astype(out_ref.dtype)


def decoder_block_resnet(x_nchw, w1, b1, w2, b2):
    """x_nchw: (N, Cin, H, W); w1: (Cmid, Cin, 3, 3); b1: (Cmid,);
    w2: (Cmid, Cout, 4, 4); b2: (Cout,).
    Returns (N, Cout, 2H, 2W), matching PyTorch DecoderBlockResnet.forward."""
    N, Cin, H, W = x_nchw.shape
    Cmid = w1.shape[0]
    Cout = w2.shape[1]

    x = jnp.transpose(x_nchw, (0, 2, 3, 1))                    # NCHW -> NHWC

    # K-pack 3x3 conv weights: tap order (ky, kx, ci) -> (9*Cin, Cmid), bf16.
    w1p = jnp.transpose(w1, (2, 3, 1, 0)).reshape(9 * Cin, Cmid).astype(jnp.bfloat16)

    # K-pack deconv weights per output parity plane, in the kernel's (a, b) order.
    w2k = jnp.transpose(w2, (2, 3, 0, 1))                      # (4, 4, Cmid, Cout)
    rows = []
    for py in range(2):
        cols = []
        for px in range(2):
            taps = []
            for a in range(2):
                ky = (1 + 2 * a) if py == 0 else (2 * a)
                for b in range(2):
                    kx = (1 + 2 * b) if px == 0 else (2 * b)
                    taps.append(w2k[ky, kx])                   # (Cmid, Cout)
            cols.append(jnp.concatenate(taps, axis=0))         # (4*Cmid, Cout)
        rows.append(jnp.stack(cols))
    w2p = jnp.stack(rows).astype(jnp.bfloat16)                 # (2, 2, 4*Cmid, Cout)

    b1k = b1.reshape(1, Cmid).astype(jnp.float32)
    b2k = b2.reshape(1, Cout).astype(jnp.float32)

    # Conservative per-step VMEM estimate (double-buffered I/O blocks + scratch +
    # weights) with headroom, clamped so it is valid on v5e/v6e (128 MiB) and
    # v7x (64 MiB physical).
    def _nbytes(shape, dtype):
        return int(np.prod(shape)) * jnp.dtype(dtype).itemsize
    est = (2 * _nbytes((H, W, Cin), x.dtype)
           + 2 * _nbytes((2, 2, H * W, Cout), jnp.float32)
           + _nbytes((H + 2, W + 2, Cin), jnp.bfloat16)
           + _nbytes((H + 2, W + 2, Cmid), jnp.bfloat16)
           + _nbytes(w1p.shape, jnp.bfloat16) + _nbytes(w2p.shape, jnp.bfloat16))
    vmem_limit = int(min(max(4 * est, 32 * 1024 * 1024), 64 * 1024 * 1024))
    # TODO(synk): at production H/W/C add a spatial row-block grid axis (1-row halo
    # for the conv, handling the deconv's row overlap) so per-step VMEM stays within
    # v7x's 64 MiB and its second TensorCore gets parallel work.

    planes = pl.pallas_call(
        _decoder_kernel,
        out_shape=jax.ShapeDtypeStruct((N, 2, 2, H * W, Cout), jnp.float32),
        grid_spec=pltpu.PrefetchScalarGridSpec(
            num_scalar_prefetch=0,
            grid=(N,),
            in_specs=[
                pl.BlockSpec((None, H, W, Cin), lambda n: (n, 0, 0, 0)),
                pl.BlockSpec((9 * Cin, Cmid), lambda n: (0, 0)),
                pl.BlockSpec((1, Cmid), lambda n: (0, 0)),
                pl.BlockSpec((2, 2, 4 * Cmid, Cout), lambda n: (0, 0, 0, 0)),
                pl.BlockSpec((1, Cout), lambda n: (0, 0)),
            ],
            out_specs=pl.BlockSpec((None, 2, 2, H * W, Cout),
                                   lambda n: (n, 0, 0, 0, 0)),
            scratch_shapes=[
                pltpu.VMEM((H + 2, W + 2, Cin), jnp.bfloat16),
                pltpu.VMEM((H + 2, W + 2, Cmid), jnp.bfloat16),
            ],
        ),
        compiler_params=pltpu.CompilerParams(
            dimension_semantics=("parallel",),
            vmem_limit_bytes=vmem_limit),
    )(x, w1p, b1k, w2p, b2k)

    # Interleave parity planes: out[n, 2m+py, 2q+px, c] = planes[n, py, px, m*W+q, c].
    out_nhwc = (planes.reshape(N, 2, 2, H, W, Cout)
                .transpose(0, 3, 1, 4, 2, 5)
                .reshape(N, 2 * H, 2 * W, Cout))
    return jnp.transpose(out_nhwc, (0, 3, 1, 2))               # NHWC -> NCHW


def _reference(x_nchw, w1, b1, w2, b2):
    """Pure-JAX reference matching the PyTorch module semantics."""
    dn = ("NHWC", "HWIO", "NHWC")
    xh = jnp.transpose(x_nchw, (0, 2, 3, 1))
    w1h = jnp.transpose(w1, (2, 3, 1, 0))
    mid = jax.lax.conv_general_dilated(
        xh, w1h, (1, 1), ((1, 1), (1, 1)), dimension_numbers=dn,
        precision=jax.lax.Precision.HIGHEST)
    mid = jax.nn.relu(mid + b1)
    # ConvTranspose2d(k=4, s=2, p=1) == dilated conv with spatially flipped kernel
    w2h = jnp.flip(jnp.transpose(w2, (2, 3, 0, 1)), axis=(0, 1))
    out = jax.lax.conv_general_dilated(
        mid, w2h, (1, 1), ((2, 2), (2, 2)), lhs_dilation=(2, 2),
        dimension_numbers=dn, precision=jax.lax.Precision.HIGHEST)
    out = jax.nn.relu(out + b2)
    return jnp.transpose(out, (0, 3, 1, 2))


if __name__ == "__main__":
    # small, non-square spatial shape to exercise the layout/interleave logic
    N, Cin, Cmid, Cout, H, W = 2, 4, 8, 4, 8, 16

    key = jax.random.PRNGKey(0)
    kx, k1, k2, k3, k4 = jax.random.split(key, 5)
    x = jax.random.normal(kx, (N, Cin, H, W), jnp.float32)
    w1 = jax.random.normal(k1, (Cmid, Cin, 3, 3), jnp.float32) / math.sqrt(Cin * 9)
    b1 = 0.01 * jax.random.normal(k2, (Cmid,), jnp.float32)
    w2 = jax.random.normal(k3, (Cmid, Cout, 4, 4), jnp.float32) / math.sqrt(Cmid * 16)
    b2 = 0.01 * jax.random.normal(k4, (Cout,), jnp.float32)

    out = decoder_block_resnet(x, w1, b1, w2, b2)
    out = jax.block_until_ready(out)

    ref = jax.block_until_ready(_reference(x, w1, b1, w2, b2))
    assert out.shape == (N, Cout, 2 * H, 2 * W), out.shape
    # bf16 MXU inputs (f32 accumulation) vs. HIGHEST-precision f32 reference
    np.testing.assert_allclose(np.asarray(out), np.asarray(ref), rtol=2e-2, atol=2e-2)

    print("KERNEL_OK")
</pallas_src>

<mosaic_0001>
module attributes {stable_mosaic.version = 11 : i64} {
  func.func @_decoder_kernel(%arg0: i32, %arg1: memref<1x8x16x4xf32, #tpu.memory_space<vmem>>, %arg2: memref<36x8xbf16, #tpu.memory_space<vmem>>, %arg3: memref<1x8xf32, #tpu.memory_space<vmem>>, %arg4: memref<2x2x32x4xbf16, #tpu.memory_space<vmem>>, %arg5: memref<1x4xf32, #tpu.memory_space<vmem>>, %arg6: memref<1x2x2x128x4xf32, #tpu.memory_space<vmem>>, %arg7: memref<10x18x4xbf16, #tpu.memory_space<vmem>>, %arg8: memref<10x18x8xbf16, #tpu.memory_space<vmem>>) attributes {dimension_semantics = [#tpu.dimension_semantics<parallel>], iteration_bounds = array<i64: 2>, scalar_prefetch = 0 : i64, scratch_operands = 2 : i64, tpu.core_type = #tpu.core_type<tc>, window_params = [{transform_indices = @transform_0, window_bounds = array<i64: 1, 8, 16, 4>}, {pipeline_mode = #tpu.pipeline_mode<synchronous>, transform_indices = @transform_1, window_bounds = array<i64: 36, 8>}, {pipeline_mode = #tpu.pipeline_mode<synchronous>, transform_indices = @transform_2, window_bounds = array<i64: 1, 8>}, {pipeline_mode = #tpu.pipeline_mode<synchronous>, transform_indices = @transform_3, window_bounds = array<i64: 2, 2, 32, 4>}, {pipeline_mode = #tpu.pipeline_mode<synchronous>, transform_indices = @transform_4, window_bounds = array<i64: 1, 4>}, {transform_indices = @transform_5, window_bounds = array<i64: 1, 2, 2, 128, 4>}]} {
    %cst = arith.constant 0.000000e+00 : bf16
    %0 = vector.broadcast %cst : bf16 to vector<1x18x4xbf16>
    %c0 = arith.constant 0 : index
    %c0_0 = arith.constant 0 : index
    %c0_1 = arith.constant 0 : index
    %1 = vector.load %arg7[%c0, %c0_0, %c0_1] : memref<10x18x4xbf16, #tpu.memory_space<vmem>>, vector<1x18x4xbf16>
    tpu.vector_store %arg7[%c0, %c0_0, %c0_1], %0 {strides = array<i32>} : memref<10x18x4xbf16, #tpu.memory_space<vmem>>, vector<1x18x4xbf16>,
    %c9 = arith.constant 9 : index
    %c0_2 = arith.constant 0 : index
    %c0_3 = arith.constant 0 : index
    %2 = vector.load %arg7[%c9, %c0_2, %c0_3] : memref<10x18x4xbf16, #tpu.memory_space<vmem>>, vector<1x18x4xbf16>
    tpu.vector_store %arg7[%c9, %c0_2, %c0_3], %0 {strides = array<i32>} : memref<10x18x4xbf16, #tpu.memory_space<vmem>>, vector<1x18x4xbf16>,
    %cst_4 = arith.constant 0.000000e+00 : bf16
    %3 = vector.broadcast %cst_4 : bf16 to vector<10x1x4xbf16>
    %c0_5 = arith.constant 0 : index
    %c0_6 = arith.constant 0 : index
    %c0_7 = arith.constant 0 : index
    %4 = vector.load %arg7[%c0_5, %c0_6, %c0_7] : memref<10x18x4xbf16, #tpu.memory_space<vmem>>, vector<10x1x4xbf16>
    tpu.vector_store %arg7[%c0_5, %c0_6, %c0_7], %3 {strides = array<i32>} : memref<10x18x4xbf16, #tpu.memory_space<vmem>>, vector<10x1x4xbf16>,
    %c0_8 = arith.constant 0 : index
    %c17 = arith.constant 17 : index
    %c0_9 = arith.constant 0 : index
    %5 = vector.load %arg7[%c0_8, %c17, %c0_9] : memref<10x18x4xbf16, #tpu.memory_space<vmem>>, vector<10x1x4xbf16>
    tpu.vector_store %arg7[%c0_8, %c17, %c0_9], %3 {strides = array<i32>} : memref<10x18x4xbf16, #tpu.memory_space<vmem>>, vector<10x1x4xbf16>,
    %cst_10 = arith.constant 0.000000e+00 : bf16
    %6 = vector.broadcast %cst_10 : bf16 to vector<1x18x8xbf16>
    %c0_11 = arith.constant 0 : index
    %c0_12 = arith.constant 0 : index
    %c0_13 = arith.constant 0 : index
    %7 = vector.load %arg8[%c0_11, %c0_12, %c0_13] : memref<10x18x8xbf16, #tpu.memory_space<vmem>>, vector<1x18x8xbf16>
    tpu.vector_store %arg8[%c0_11, %c0_12, %c0_13], %6 {strides = array<i32>} : memref<10x18x8xbf16, #tpu.memory_space<vmem>>, vector<1x18x8xbf16>,
    %c9_14 = arith.constant 9 : index
    %c0_15 = arith.constant 0 : index
    %c0_16 = arith.constant 0 : index
    %8 = vector.load %arg8[%c9_14, %c0_15, %c0_16] : memref<10x18x8xbf16, #tpu.memory_space<vmem>>, vector<1x18x8xbf16>
    tpu.vector_store %arg8[%c9_14, %c0_15, %c0_16], %6 {strides = array<i32>} : memref<10x18x8xbf16, #tpu.memory_space<vmem>>, vector<1x18x8xbf16>,
    %cst_17 = arith.constant 0.000000e+00 : bf16
    %9 = vector.broadcast %cst_17 : bf16 to vector<10x1x8xbf16>
    %c0_18 = arith.constant 0 : index
    %c0_19 = arith.constant 0 : index
    %c0_20 = arith.constant 0 : index
    %10 = vector.load %arg8[%c0_18, %c0_19, %c0_20] : memref<10x18x8xbf16, #tpu.memory_space<vmem>>, vector<10x1x8xbf16>
    tpu.vector_store %arg8[%c0_18, %c0_19, %c0_20], %9 {strides = array<i32>} : memref<10x18x8xbf16, #tpu.memory_space<vmem>>, vector<10x1x8xbf16>,
    %c0_21 = arith.constant 0 : index
    %c17_22 = arith.constant 17 : index
    %c0_23 = arith.constant 0 : index
    %11 = vector.load %arg8[%c0_21, %c17_22, %c0_23] : memref<10x18x8xbf16, #tpu.memory_space<vmem>>, vector<10x1x8xbf16>
    tpu.vector_store %arg8[%c0_21, %c17_22, %c0_23], %9 {strides = array<i32>} : memref<10x18x8xbf16, #tpu.memory_space<vmem>>, vector<10x1x8xbf16>,
    %c0_24 = arith.constant 0 : index
    %c0_25 = arith.constant 0 : index
    %c0_26 = arith.constant 0 : index
    %c0_27 = arith.constant 0 : index
    %12 = vector.load %arg1[%c0_24, %c0_25, %c0_26, %c0_27] : memref<1x8x16x4xf32, #tpu.memory_space<vmem>>, vector<1x8x16x4xf32>
    %13 = vector.shape_cast %12 : vector<1x8x16x4xf32> to vector<8x16x4xf32>
    %14 = arith.truncf %13 : vector<8x16x4xf32> to vector<8x16x4xbf16>
    %c1 = arith.constant 1 : index
    %c1_28 = arith.constant 1 : index
    %c0_29 = arith.constant 0 : index
    %15 = vector.load %arg7[%c1, %c1_28, %c0_29] : memref<10x18x4xbf16, #tpu.memory_space<vmem>>, vector<8x16x4xbf16>
    tpu.vector_store %arg7[%c1, %c1_28, %c0_29], %14 {strides = array<i32>} : memref<10x18x4xbf16, #tpu.memory_space<vmem>>, vector<8x16x4xbf16>,
    %c0_30 = arith.constant 0 : index
    %c0_31 = arith.constant 0 : index
    %c0_32 = arith.constant 0 : index
    %16 = vector.load %arg7[%c0_30, %c0_31, %c0_32] : memref<10x18x4xbf16, #tpu.memory_space<vmem>>, vector<8x16x4xbf16>
    %c0_33 = arith.constant 0 : index
    %c1_34 = arith.constant 1 : index
    %c0_35 = arith.constant 0 : index
    %17 = vector.load %arg7[%c0_33, %c1_34, %c0_35] : memref<10x18x4xbf16, #tpu.memory_space<vmem>>, vector<8x16x4xbf16>
    %c0_36 = arith.constant 0 : index
    %c2 = arith.constant 2 : index
    %c0_37 = arith.constant 0 : index
    %18 = vector.load %arg7[%c0_36, %c2, %c0_37] : memref<10x18x4xbf16, #tpu.memory_space<vmem>>, vector<8x16x4xbf16>
    %c1_38 = arith.constant 1 : index
    %c0_39 = arith.constant 0 : index
    %c0_40 = arith.constant 0 : index
    %19 = vector.load %arg7[%c1_38, %c0_39, %c0_40] : memref<10x18x4xbf16, #tpu.memory_space<vmem>>, vector<8x16x4xbf16>
    %c1_41 = arith.constant 1 : index
    %c1_42 = arith.constant 1 : index
    %c0_43 = arith.constant 0 : index
    %20 = vector.load %arg7[%c1_41, %c1_42, %c0_43] : memref<10x18x4xbf16, #tpu.memory_space<vmem>>, vector<8x16x4xbf16>
    %c1_44 = arith.constant 1 : index
    %c2_45 = arith.constant 2 : index
    %c0_46 = arith.constant 0 : index
    %21 = vector.load %arg7[%c1_44, %c2_45, %c0_46] : memref<10x18x4xbf16, #tpu.memory_space<vmem>>, vector<8x16x4xbf16>
    %c2_47 = arith.constant 2 : index
    %c0_48 = arith.constant 0 : index
    %c0_49 = arith.constant 0 : index
    %22 = vector.load %arg7[%c2_47, %c0_48, %c0_49] : memref<10x18x4xbf16, #tpu.memory_space<vmem>>, vector<8x16x4xbf16>
    %c2_50 = arith.constant 2 : index
    %c1_51 = arith.constant 1 : index
    %c0_52 = arith.constant 0 : index
    %23 = vector.load %arg7[%c2_50, %c1_51, %c0_52] : memref<10x18x4xbf16, #tpu.memory_space<vmem>>, vector<8x16x4xbf16>
    %c2_53 = arith.constant 2 : index
    %c2_54 = arith.constant 2 : index
    %c0_55 = arith.constant 0 : index
    %24 = vector.load %arg7[%c2_53, %c2_54, %c0_55] : memref<10x18x4xbf16, #tpu.memory_space<vmem>>, vector<8x16x4xbf16>
    %25 = tpu.concatenate %16, %17, %18, %19, %20, %21, %22, %23, %24 in 2 : vector<8x16x4xbf16>, vector<8x16x4xbf16>, vector<8x16x4xbf16>, vector<8x16x4xbf16>, vector<8x16x4xbf16>, vector<8x16x4xbf16>, vector<8x16x4xbf16>, vector<8x16x4xbf16>, vector<8x16x4xbf16> -> vector<8x16x36xbf16>
    %26 = vector.shape_cast %25 : vector<8x16x36xbf16> to vector<128x36xbf16>
    %c0_56 = arith.constant 0 : index
    %c0_57 = arith.constant 0 : index
    %27 = vector.load %arg2[%c0_56, %c0_57] : memref<36x8xbf16, #tpu.memory_space<vmem>>, vector<36x8xbf16>
    %cst_58 = arith.constant dense<0.000000e+00> : vector<128x8xf32>
    %28 = tpu.matmul %26, %27, %cst_58 {dimension_numbers = #tpu.dot_dimension_numbers<[1], [0], [0], [1], [0, 0, 1, 1], [], []>} : vector<128x36xbf16>, vector<36x8xbf16>, vector<128x8xf32> -> vector<128x8xf32>
    %c0_59 = arith.constant 0 : index
    %c0_60 = arith.constant 0 : index
    %29 = vector.load %arg3[%c0_59, %c0_60] : memref<1x8xf32, #tpu.memory_space<vmem>>, vector<1x8xf32>
    %30 = vector.broadcast %29 : vector<1x8xf32> to vector<128x8xf32>
    %31 = arith.addf %28, %30 : vector<128x8xf32>
    %cst_61 = arith.constant 0.000000e+00 : f32
    %32 = vector.broadcast %cst_61 : f32 to vector<128x8xf32>
    %33 = arith.maximumf %31, %32 : vector<128x8xf32>
    %34 = vector.shape_cast %33 : vector<128x8xf32> to vector<8x16x8xf32>
    %35 = arith.truncf %34 : vector<8x16x8xf32> to vector<8x16x8xbf16>
    %c1_62 = arith.constant 1 : index
    %c1_63 = arith.constant 1 : index
    %c0_64 = arith.constant 0 : index
    %36 = vector.load %arg8[%c1_62, %c1_63, %c0_64] : memref<10x18x8xbf16, #tpu.memory_space<vmem>>, vector<8x16x8xbf16>
    tpu.vector_store %arg8[%c1_62, %c1_63, %c0_64], %35 {strides = array<i32>} : memref<10x18x8xbf16, #tpu.memory_space<vmem>>, vector<8x16x8xbf16>,
    %c1_65 = arith.constant 1 : index
    %c1_66 = arith.constant 1 : index
    %c0_67 = arith.constant 0 : index
    %37 = vector.load %arg8[%c1_65, %c1_66, %c0_67] : memref<10x18x8xbf16, #tpu.memory_space<vmem>>, vector<8x16x8xbf16>
    %c1_68 = arith.constant 1 : index
    %c0_69 = arith.constant 0 : index
    %c0_70 = arith.constant 0 : index
    %38 = vector.load %arg8[%c1_68, %c0_69, %c0_70] : memref<10x18x8xbf16, #tpu.memory_space<vmem>>, vector<8x16x8xbf16>
    %c0_71 = arith.constant 0 : index
    %c1_72 = arith.constant 1 : index
    %c0_73 = arith.constant 0 : index
    %39 = vector.load %arg8[%c0_71, %c1_72, %c0_73] : memref<10x18x8xbf16, #tpu.memory_space<vmem>>, vector<8x16x8xbf16>
    %c0_74 = arith.constant 0 : index
    %c0_75 = arith.constant 0 : index
    %c0_76 = arith.constant 0 : index
    %40 = vector.load %arg8[%c0_74, %c0_75, %c0_76] : memref<10x18x8xbf16, #tpu.memory_space<vmem>>, vector<8x16x8xbf16>
    %41 = tpu.concatenate %37, %38, %39, %40 in 2 : vector<8x16x8xbf16>, vector<8x16x8xbf16>, vector<8x16x8xbf16>, vector<8x16x8xbf16> -> vector<8x16x32xbf16>
    %42 = vector.shape_cast %41 : vector<8x16x32xbf16> to vector<128x32xbf16>
    %c0_77 = arith.constant 0 : index
    %c0_78 = arith.constant 0 : index
    %c0_79 = arith.constant 0 : index
    %c0_80 = arith.constant 0 : index
    %43 = vector.load %arg4[%c0_77, %c0_78, %c0_79, %c0_80] : memref<2x2x32x4xbf16, #tpu.memory_space<vmem>>, vector<1x1x32x4xbf16>
    %44 = vector.shape_cast %43 : vector<1x1x32x4xbf16> to vector<32x4xbf16>
    %cst_81 = arith.constant dense<0.000000e+00> : vector<128x4xf32>
    %45 = tpu.matmul %42, %44, %cst_81 {dimension_numbers = #tpu.dot_dimension_numbers<[1], [0], [0], [1], [0, 0, 1, 1], [], []>} : vector<128x32xbf16>, vector<32x4xbf16>, vector<128x4xf32> -> vector<128x4xf32>
    %c0_82 = arith.constant 0 : index
    %c0_83 = arith.constant 0 : index
    %46 = vector.load %arg5[%c0_82, %c0_83] : memref<1x4xf32, #tpu.memory_space<vmem>>, vector<1x4xf32>
    %47 = vector.broadcast %46 : vector<1x4xf32> to vector<128x4xf32>
    %48 = arith.addf %45, %47 : vector<128x4xf32>
    %cst_84 = arith.constant 0.000000e+00 : f32
    %49 = vector.broadcast %cst_84 : f32 to vector<128x4xf32>
    %50 = arith.maximumf %48, %49 : vector<128x4xf32>
    %c0_85 = arith.constant 0 : index
    %c0_86 = arith.constant 0 : index
    %c0_87 = arith.constant 0 : index
    %c0_88 = arith.constant 0 : index
    %c0_89 = arith.constant 0 : index
    %51 = vector.load %arg6[%c0_85, %c0_86, %c0_87, %c0_88, %c0_89] : memref<1x2x2x128x4xf32, #tpu.memory_space<vmem>>, vector<1x1x1x128x4xf32>
    %52 = vector.shape_cast %51 : vector<1x1x1x128x4xf32> to vector<128x4xf32>
    %53 = vector.shape_cast %50 : vector<128x4xf32> to vector<1x1x1x128x4xf32>
    tpu.vector_store %arg6[%c0_85, %c0_86, %c0_87, %c0_88, %c0_89], %53 {strides = array<i32>} : memref<1x2x2x128x4xf32, #tpu.memory_space<vmem>>, vector<1x1x1x128x4xf32>,
    %c1_90 = arith.constant 1 : index
    %c2_91 = arith.constant 2 : index
    %c0_92 = arith.constant 0 : index
    %54 = vector.load %arg8[%c1_90, %c2_91, %c0_92] : memref<10x18x8xbf16, #tpu.memory_space<vmem>>, vector<8x16x8xbf16>
    %c1_93 = arith.constant 1 : index
    %c1_94 = arith.constant 1 : index
    %c0_95 = arith.constant 0 : index
    %55 = vector.load %arg8[%c1_93, %c1_94, %c0_95] : memref<10x18x8xbf16, #tpu.memory_space<vmem>>, vector<8x16x8xbf16>
    %c0_96 = arith.constant 0 : index
    %c2_97 = arith.constant 2 : index
    %c0_98 = arith.constant 0 : index
    %56 = vector.load %arg8[%c0_96, %c2_97, %c0_98] : memref<10x18x8xbf16, #tpu.memory_space<vmem>>, vector<8x16x8xbf16>
    %c0_99 = arith.constant 0 : index
    %c1_100 = arith.constant 1 : index
    %c0_101 = arith.constant 0 : index
    %57 = vector.load %arg8[%c0_99, %c1_100, %c0_101] : memref<10x18x8xbf16, #tpu.memory_space<vmem>>, vector<8x16x8xbf16>
    %58 = tpu.concatenate %54, %55, %56, %57 in 2 : vector<8x16x8xbf16>, vector<8x16x8xbf16>, vector<8x16x8xbf16>, vector<8x16x8xbf16> -> vector<8x16x32xbf16>
    %59 = vector.shape_cast %58 : vector<8x16x32xbf16> to vector<128x32xbf16>
    %c0_102 = arith.constant 0 : index
    %c1_103 = arith.constant 1 : index
    %c0_104 = arith.constant 0 : index
    %c0_105 = arith.constant 0 : index
    %60 = vector.load %arg4[%c0_102, %c1_103, %c0_104, %c0_105] : memref<2x2x32x4xbf16, #tpu.memory_space<vmem>>, vector<1x1x32x4xbf16>
    %61 = vector.shape_cast %60 : vector<1x1x32x4xbf16> to vector<32x4xbf16>
    %cst_106 = arith.constant dense<0.000000e+00> : vector<128x4xf32>
    %62 = tpu.matmul %59, %61, %cst_106 {dimension_numbers = #tpu.dot_dimension_numbers<[1], [0], [0], [1], [0, 0, 1, 1], [], []>} : vector<128x32xbf16>, vector<32x4xbf16>, vector<128x4xf32> -> vector<128x4xf32>
    %c0_107 = arith.constant 0 : index
    %c0_108 = arith.constant 0 : index
    %63 = vector.load %arg5[%c0_107, %c0_108] : memref<1x4xf32, #tpu.memory_space<vmem>>, vector<1x4xf32>
    %64 = vector.broadcast %63 : vector<1x4xf32> to vector<128x4xf32>
    %65 = arith.addf %62, %64 : vector<128x4xf32>
    %cst_109 = arith.constant 0.000000e+00 : f32
    %66 = vector.broadcast %cst_109 : f32 to vector<128x4xf32>
    %67 = arith.maximumf %65, %66 : vector<128x4xf32>
    %c0_110 = arith.constant 0 : index
    %c0_111 = arith.constant 0 : index
    %c1_112 = arith.constant 1 : index
    %c0_113 = arith.constant 0 : index
    %c0_114 = arith.constant 0 : index
    %68 = vector.load %arg6[%c0_110, %c0_111, %c1_112, %c0_113, %c0_114] : memref<1x2x2x128x4xf32, #tpu.memory_space<vmem>>, vector<1x1x1x128x4xf32>
    %69 = vector.shape_cast %68 : vector<1x1x1x128x4xf32> to vector<128x4xf32>
    %70 = vector.shape_cast %67 : vector<128x4xf32> to vector<1x1x1x128x4xf32>
    tpu.vector_store %arg6[%c0_110, %c0_111, %c1_112, %c0_113, %c0_114], %70 {strides = array<i32>} : memref<1x2x2x128x4xf32, #tpu.memory_space<vmem>>, vector<1x1x1x128x4xf32>,
    %c2_115 = arith.constant 2 : index
    %c1_116 = arith.constant 1 : index
    %c0_117 = arith.constant 0 : index
    %71 = vector.load %arg8[%c2_115, %c1_116, %c0_117] : memref<10x18x8xbf16, #tpu.memory_space<vmem>>, vector<8x16x8xbf16>
    %c2_118 = arith.constant 2 : index
    %c0_119 = arith.constant 0 : index
    %c0_120 = arith.constant 0 : index
    %72 = vector.load %arg8[%c2_118, %c0_119, %c0_120] : memref<10x18x8xbf16, #tpu.memory_space<vmem>>, vector<8x16x8xbf16>
    %c1_121 = arith.constant 1 : index
    %c1_122 = arith.constant 1 : index
    %c0_123 = arith.constant 0 : index
    %73 = vector.load %arg8[%c1_121, %c1_122, %c0_123] : memref<10x18x8xbf16, #tpu.memory_space<vmem>>, vector<8x16x8xbf16>
    %c1_124 = arith.constant 1 : index
    %c0_125 = arith.constant 0 : index
    %c0_126 = arith.constant 0 : index
    %74 = vector.load %arg8[%c1_124, %c0_125, %c0_126] : memref<10x18x8xbf16, #tpu.memory_space<vmem>>, vector<8x16x8xbf16>
    %75 = tpu.concatenate %71, %72, %73, %74 in 2 : vector<8x16x8xbf16>, vector<8x16x8xbf16>, vector<8x16x8xbf16>, vector<8x16x8xbf16> -> vector<8x16x32xbf16>
    %76 = vector.shape_cast %75 : vector<8x16x32xbf16> to vector<128x32xbf16>
    %c1_127 = arith.constant 1 : index
    %c0_128 = arith.constant 0 : index
    %c0_129 = arith.constant 0 : index
    %c0_130 = arith.constant 0 : index
    %77 = vector.load %arg4[%c1_127, %c0_128, %c0_129, %c0_130] : memref<2x2x32x4xbf16, #tpu.memory_space<vmem>>, vector<1x1x32x4xbf16>
    %78 = vector.shape_cast %77 : vector<1x1x32x4xbf16> to vector<32x4xbf16>
    %cst_131 = arith.constant dense<0.000000e+00> : vector<128x4xf32>
    %79 = tpu.matmul %76, %78, %cst_131 {dimension_numbers = #tpu.dot_dimension_numbers<[1], [0], [0], [1], [0, 0, 1, 1], [], []>} : vector<128x32xbf16>, vector<32x4xbf16>, vector<128x4xf32> -> vector<128x4xf32>
    %c0_132 = arith.constant 0 : index
    %c0_133 = arith.constant 0 : index
    %80 = vector.load %arg5[%c0_132, %c0_133] : memref<1x4xf32, #tpu.memory_space<vmem>>, vector<1x4xf32>
    %81 = vector.broadcast %80 : vector<1x4xf32> to vector<128x4xf32>
    %82 = arith.addf %79, %81 : vector<128x4xf32>
    %cst_134 = arith.constant 0.000000e+00 : f32
    %83 = vector.broadcast %cst_134 : f32 to vector<128x4xf32>
    %84 = arith.maximumf %82, %83 : vector<128x4xf32>
    %c0_135 = arith.constant 0 : index
    %c1_136 = arith.constant 1 : index
    %c0_137 = arith.constant 0 : index
    %c0_138 = arith.constant 0 : index
    %c0_139 = arith.constant 0 : index
    %85 = vector.load %arg6[%c0_135, %c1_136, %c0_137, %c0_138, %c0_139] : memref<1x2x2x128x4xf32, #tpu.memory_space<vmem>>, vector<1x1x1x128x4xf32>
    %86 = vector.shape_cast %85 : vector<1x1x1x128x4xf32> to vector<128x4xf32>
    %87 = vector.shape_cast %84 : vector<128x4xf32> to vector<1x1x1x128x4xf32>
    tpu.vector_store %arg6[%c0_135, %c1_136, %c0_137, %c0_138, %c0_139], %87 {strides = array<i32>} : memref<1x2x2x128x4xf32, #tpu.memory_space<vmem>>, vector<1x1x1x128x4xf32>,
    %c2_140 = arith.constant 2 : index
    %c2_141 = arith.constant 2 : index
    %c0_142 = arith.constant 0 : index
    %88 = vector.load %arg8[%c2_140, %c2_141, %c0_142] : memref<10x18x8xbf16, #tpu.memory_space<vmem>>, vector<8x16x8xbf16>
    %c2_143 = arith.constant 2 : index
    %c1_144 = arith.constant 1 : index
    %c0_145 = arith.constant 0 : index
    %89 = vector.load %arg8[%c2_143, %c1_144, %c0_145] : memref<10x18x8xbf16, #tpu.memory_space<vmem>>, vector<8x16x8xbf16>
    %c1_146 = arith.constant 1 : index
    %c2_147 = arith.constant 2 : index
    %c0_148 = arith.constant 0 : index
    %90 = vector.load %arg8[%c1_146, %c2_147, %c0_148] : memref<10x18x8xbf16, #tpu.memory_space<vmem>>, vector<8x16x8xbf16>
    %c1_149 = arith.constant 1 : index
    %c1_150 = arith.constant 1 : index
    %c0_151 = arith.constant 0 : index
    %91 = vector.load %arg8[%c1_149, %c1_150, %c0_151] : memref<10x18x8xbf16, #tpu.memory_space<vmem>>, vector<8x16x8xbf16>
    %92 = tpu.concatenate %88, %89, %90, %91 in 2 : vector<8x16x8xbf16>, vector<8x16x8xbf16>, vector<8x16x8xbf16>, vector<8x16x8xbf16> -> vector<8x16x32xbf16>
    %93 = vector.shape_cast %92 : vector<8x16x32xbf16> to vector<128x32xbf16>
    %c1_152 = arith.constant 1 : index
    %c1_153 = arith.constant 1 : index
    %c0_154 = arith.constant 0 : index
    %c0_155 = arith.constant 0 : index
    %94 = vector.load %arg4[%c1_152, %c1_153, %c0_154, %c0_155] : memref<2x2x32x4xbf16, #tpu.memory_space<vmem>>, vector<1x1x32x4xbf16>
    %95 = vector.shape_cast %94 : vector<1x1x32x4xbf16> to vector<32x4xbf16>
    %cst_156 = arith.constant dense<0.000000e+00> : vector<128x4xf32>
    %96 = tpu.matmul %93, %95, %cst_156 {dimension_numbers = #tpu.dot_dimension_numbers<[1], [0], [0], [1], [0, 0, 1, 1], [], []>} : vector<128x32xbf16>, vector<32x4xbf16>, vector<128x4xf32> -> vector<128x4xf32>
    %c0_157 = arith.constant 0 : index
    %c0_158 = arith.constant 0 : index
    %97 = vector.load %arg5[%c0_157, %c0_158] : memref<1x4xf32, #tpu.memory_space<vmem>>, vector<1x4xf32>
    %98 = vector.broadcast %97 : vector<1x4xf32> to vector<128x4xf32>
    %99 = arith.addf %96, %98 : vector<128x4xf32>
    %cst_159 = arith.constant 0.000000e+00 : f32
    %100 = vector.broadcast %cst_159 : f32 to vector<128x4xf32>
    %101 = arith.maximumf %99, %100 : vector<128x4xf32>
    %c0_160 = arith.constant 0 : index
    %c1_161 = arith.constant 1 : index
    %c1_162 = arith.constant 1 : index
    %c0_163 = arith.constant 0 : index
    %c0_164 = arith.constant 0 : index
    %102 = vector.load %arg6[%c0_160, %c1_161, %c1_162, %c0_163, %c0_164] : memref<1x2x2x128x4xf32, #tpu.memory_space<vmem>>, vector<1x1x1x128x4xf32>
    %103 = vector.shape_cast %102 : vector<1x1x1x128x4xf32> to vector<128x4xf32>
    %104 = vector.shape_cast %101 : vector<128x4xf32> to vector<1x1x1x128x4xf32>
    tpu.vector_store %arg6[%c0_160, %c1_161, %c1_162, %c0_163, %c0_164], %104 {strides = array<i32>} : memref<1x2x2x128x4xf32, #tpu.memory_space<vmem>>, vector<1x1x1x128x4xf32>,
    return
  }
  func.func @transform_0(%arg0: i32) -> (i32, i32, i32, i32) {
    %c0_i32 = arith.constant 0 : i32
    %c0_i32_0 = arith.constant 0 : i32
    %c0_i32_1 = arith.constant 0 : i32
    %c0_i32_2 = arith.constant 0 : i32
    return %arg0, %c0_i32, %c0_i32_0, %c0_i32_1 : i32, i32, i32, i32
  }
  func.func @transform_1(%arg0: i32) -> (i32, i32) {
    %c0_i32 = arith.constant 0 : i32
    %c0_i32_0 = arith.constant 0 : i32
    %c0_i32_1 = arith.constant 0 : i32
    return %c0_i32, %c0_i32_0 : i32, i32
  }
  func.func @transform_2(%arg0: i32) -> (i32, i32) {
    %c0_i32 = arith.constant 0 : i32
    %c0_i32_0 = arith.constant 0 : i32
    %c0_i32_1 = arith.constant 0 : i32
    return %c0_i32, %c0_i32_0 : i32, i32
  }
  func.func @transform_3(%arg0: i32) -> (i32, i32, i32, i32) {
    %c0_i32 = arith.constant 0 : i32
    %c0_i32_0 = arith.constant 0 : i32
    %c0_i32_1 = arith.constant 0 : i32
    %c0_i32_2 = arith.constant 0 : i32
    %c0_i32_3 = arith.constant 0 : i32
    return %c0_i32, %c0_i32_0, %c0_i32_1, %c0_i32_2 : i32, i32, i32, i32
  }
  func.func @transform_4(%arg0: i32) -> (i32, i32) {
    %c0_i32 = arith.constant 0 : i32
    %c0_i32_0 = arith.constant 0 : i32
    %c0_i32_1 = arith.constant 0 : i32
    return %c0_i32, %c0_i32_0 : i32, i32
  }
  func.func @transform_5(%arg0: i32) -> (i32, i32, i32, i32, i32) {
    %c0_i32 = arith.constant 0 : i32
    %c0_i32_0 = arith.constant 0 : i32
    %c0_i32_1 = arith.constant 0 : i32
    %c0_i32_2 = arith.constant 0 : i32
    %c0_i32_3 = arith.constant 0 : i32
    return %arg0, %c0_i32, %c0_i32_0, %c0_i32_1, %c0_i32_2 : i32, i32, i32, i32, i32
  }
}

</mosaic_0001>

<bundles_post_ra>
// kernel: tpu_custom_call.1
= control target key start
LH: loop header
LB: loop body
LE: loop exit
PB: predicated region body
PF: predicated region fallthrough
CT: control target
= control target key end

     0   :  { %s6191_s18 = smov 0   ;;  %s8421_s0 = inlined_call_operand.vmem [shape: f32[2,8,16,4], index: 0, kind: input, shape index: {}]   ;;  %s8422_s1 = inlined_call_operand.vmem [shape: bf16[36,8], index: 1, kind: input, shape index: {}]   ;;  %s8423_s2 = inlined_call_operand.vmem [shape: f32[1,8], index: 2, kind: input, shape index: {}]   ;;  %s8424_s3 = inlined_call_operand.vmem [shape: bf16[2,2,32,4], index: 3, kind: input, shape index: {}]   ;;  %s8425_s4 = inlined_call_operand.vmem [shape: f32[1,4], index: 4, kind: input, shape index: {}]   ;;  %s8426_s5 = inlined_call_operand.vmem [shape: f32[2,2,2,128,4], index: 5, kind: output, shape index: {}]  }
   0x1 LB: > { %s5286_s19 = sadd.s32 4294967295, %s6150_s18   ;;  %p5290_p0 = scmp.ge.s32.totalorder %s6150_s18, 1  ;;  %s6150_s18 = sphi %s6191_s18, %s15_s18  }
   0x2   : > { %p187_p1 = scmp.lt.s32.totalorder %s6150_s18, 3 }
   0x4   : > { %p188_p2 = pnand %p5290_p0, %p187_p1 }
   0x6   : > { %191 = sbr.rel (%p188_p2) target bundleno = 1134 (0x46e), region = 40 }
   0xd   : > { %p215_p3 = scmp.lt.s32.totalorder %s5286_s19, 1  ;;  %vm226_vm0 = vcmask 27648   ;;  %vm229_vm1 = vcmask 24576   ;;  %vm236_vm2 = vsmask.f32 256  ;;  %v6152_v6 = vmov 0  }
   0xe   : > { %vm6201_vm3 = vmand %vm229_vm1, %vm236_vm2  ;;  %v241_v1 = vld [vmem:[#allocation2 + $0xc] sm:$0x1]  ;;  %vm268_vm4 = vsmask.f32 7938  ;;  %v244_v4 = vld [vmem:[#allocation2 + $0x18] sm:$0x1] }
   0xf   : > { %s8620_s19 = smov (!%p215_p3, %s5286_s19), 1  ;;  %v242_v2 = vsel %vm6201_vm3, 0, %v241_v1  ;;  %vm6211_vm5 = vmand %vm229_vm1, %vm268_vm4  ;;  %v245_v5 = vsel %vm6201_vm3, 0, %v244_v4  ;;  %227 = vst.msk [vmem:[#allocation2] sm:$0xf] %vm226_vm0, %v6152_v6  ;;  %vm8427_vm9 = vcmask 1046528  }
  0x10   : > { %243 = vst [vmem:[#allocation2 + $0xc] sm:$0x1] %v242_v2  ;;  %228 = vst.msk [vmem:[#allocation2 + $0x4] sm:$0xf] %vm226_vm0, %v6152_v6  ;;  %s5677_s20 = sshll.u32 %s8620_s19, 7  ;;  %s6153_s24 = smov 8  }
  0x11   : > { %230 = vst.msk [vmem:[#allocation2 + $0x8] sm:$0x1] %vm229_vm1, %v6152_v6  ;;  %234 = vst.msk [vmem:[#allocation2 + $0x74] sm:$0x1] %vm229_vm1, %v6152_v6  ;;  %v273_v7 = vld [vmem:[#allocation2 + $0x14] sm:$0x1]  ;;  %s6233_s23 = scalar_lea.vmem %s8421_s0, %s5677_s20 }
  0x12   : > { %232 = vst.msk [vmem:[#allocation2 + $0x6c] sm:$0xf] %vm226_vm0, %v6152_v6  ;;  %233 = vst.msk [vmem:[#allocation2 + $0x70] sm:$0xf] %vm226_vm0, %v6152_v6  ;;  %v247_v8 = vld [vmem:[#allocation2 + $0x24] sm:$0x1] }
  0x13   : > { %246 = vst [vmem:[#allocation2 + $0x18] sm:$0x1] %v245_v5  ;;  %v274_v9 = vsel %vm6211_vm5, 0, %v273_v7  ;;  %v248_v10 = vsel %vm6201_vm3, 0, %v247_v8  ;;  %v276_v11 = vld [vmem:[#allocation2 + $0x20] sm:$0x1]  ;;  %vm6267_vm8 = vmand %vm226_vm0, %vm268_vm4 }
  0x14   : > { %v279_v12 = vld [vmem:[#allocation2 + $0x2c] sm:$0x1]  ;;  %v372_v13 = vld [vmem:[%s6233_s23] sm:$0xff]  ;;  %v374_v15 = vld [vmem:[%s6233_s23 + $0x10] sm:$0xff]  ;;  %275 = vst [vmem:[#allocation2 + $0x14] sm:$0x1] %v274_v9 }
  0x15   : > { %v373_v14 = vld [vmem:[%s6233_s23 + $0x8] sm:$0xff]  ;;  %249 = vst [vmem:[#allocation2 + $0x24] sm:$0x1] %v248_v10  ;;  %v277_v16 = vsel %vm6211_vm5, 0, %v276_v11  ;;  %v5679_v17 = vpack.c.bf16 %v372_v13, %v372_v13  ;;  %v375_v19 = vld [vmem:[%s6233_s23 + $0x18] sm:$0xff]  ;;  %v5681_v20 = vpack.c.bf16 %v374_v15, %v374_v15  ;;  %v376_v21 = vld [vmem:[%s6233_s23 + $0x20] sm:$0xff] }
  0x16   : > { %v5680_v18 = vpack.c.bf16 %v373_v14, %v373_v14  ;;  %v377_v22 = vld [vmem:[%s6233_s23 + $0x28] sm:$0xff]  ;;  %278 = vst [vmem:[#allocation2 + $0x20] sm:$0x1] %v277_v16  ;;  %v280_v23 = vsel %vm6211_vm5, 0, %v279_v12  ;;  %vm436_vm6 = vsmask.f32 4368  ;;  %v5682_v24 = vpack.c.bf16 %v375_v19, %v375_v19 }
  0x17   : > { %v6249_v25 = vpack.c.bf16 %v376_v21, %v376_v21  ;;  %v6251_v26 = vpack.c.bf16 %v377_v22, %v377_v22  ;;  %281 = vst [vmem:[#allocation2 + $0x2c] sm:$0x1] %v280_v23  ;;  %v378_v27 = vld [vmem:[%s6233_s23 + $0x30] sm:$0xff]  ;;  %v379_v28 = vld [vmem:[%s6233_s23 + $0x38] sm:$0xff]  ;;  %v439_v29 = vshrl.u32 %v5679_v17, 16  ;;  %v442_v30 = vshll.u32 %v5679_v17, 16  ;;  %vm6257_vm7 = vmor %vm236_vm2, %vm436_vm6 }
  0x18   : > { %v447_v31 = vshrl.u32 %v5680_v18, 16  ;;  %v450_v32 = vshll.u32 %v5680_v18, 16  ;;  %v456_v33 = vshrl.u32 %v5681_v20, 16  ;;  %v459_v34 = vshll.u32 %v5681_v20, 16  ;;  %v601_v40 = vld [vmem:[#allocation2 + $0xc] sm:$0xf] }
  0x19   : > { %v464_v35 = vshrl.u32 %v5682_v24, 16  ;;  %v467_v36 = vshll.u32 %v5682_v24, 16  ;;  %v441_v38 = vrot.slane %v439_v29, 7  ;;  %v270_v41 = vld [vmem:[#allocation2 + $0x8] sm:$0x1]  ;;  %v6261_v42 = vpack.c.bf16 %v378_v27, %v378_v27  ;;  %s6154_s25 = smov 12  }
  0x1a   : > { %v449_v39 = vrot.slane %v447_v31, 7  ;;  %v6263_v43 = vpack.c.bf16 %v379_v28, %v379_v28  ;;  %v458_v45 = vrot.slane %v456_v33, 7  ;;  %v608_v47 = vld [vmem:[#allocation2 + $0x18] sm:$0xf]  ;;  %v271_v48 = vsel %vm6211_vm5, 0, %v270_v41  ;;  %s6155_s26 = smov 24  }
  0x1b   : > { %v466_v46 = vrot.slane %v464_v35, 7  ;;  %v473_v49 = vshrl.u32 %v6249_v25, 16  ;;  %v444_v50 = vor.u32 %v442_v30, %v441_v38  ;;  %v445_v51 = vrot.slane %v441_v38, 4  ;;  %272 = vst [vmem:[#allocation2 + $0x8] sm:$0x1] %v271_v48  ;;  %s6156_s27 = smov 4  }
  0x1c   : > { %v452_v52 = vor.u32 %v450_v32, %v449_v39  ;;  %v454_v53 = vrot.slane %v449_v39, 4  ;;  %v681_v54 = vld [vmem:[#allocation2] sm:$0xe]  ;;  %v238_v55 = vld [vmem:[#allocation2] sm:$0x1]  ;;  %v461_v56 = vor.u32 %v459_v34, %v458_v45  ;;  %v462_v57 = vrot.slane %v458_v45, 4 }
  0x1d   : > { %v469_v58 = vor.u32 %v467_v36, %v466_v46  ;;  %v471_v59 = vrot.slane %v466_v46, 4  ;;  %v6274_v60 = vld [vmem:[#allocation2 + $0x4] sm:$0xf]  ;;  %v605_v61 = vld [vmem:[#allocation2 + $0x14] sm:$0x1]  ;;  %v602_v63 = vsel %vm6267_vm8, %v444_v50, %v601_v40  ;;  %v239_v2 = vsel %vm6201_vm3, 0, %v238_v55 }
  0x1e   : > { %v453_v62 = vsel %vm6257_vm7, %v445_v51, %v452_v52  ;;  %v5327_v1 = vcombine.low %v681_v54, %v6274_v60  ;;  %v612_v4 = vld [vmem:[#allocation2 + $0x20] sm:$0x1]  ;;  %v250_v5 = vld [vmem:[#allocation2 + $0x30] sm:$0x1]  ;;  %603 = vst [vmem:[#allocation2 + $0xc] sm:$0xf] %v602_v63  ;;  %v609_v8 = vsel %vm6267_vm8, %v461_v56, %v608_v47  ;;  %v606_v9 = vsel %vm6201_vm3, %v454_v53, %v605_v61 }
  0x1f   : > { %604 = vst.msk [vmem:[#allocation2 + $0x10] sm:$0xf] %vm226_vm0, %v453_v62  ;;  %v470_v7 = vsel %vm6257_vm7, %v462_v57, %v469_v58  ;;  %240 = vst [vmem:[#allocation2] sm:$0x1] %v239_v2  ;;  %v475_v10 = vrot.slane %v473_v49, 7  ;;  %v476_v12 = vshll.u32 %v6249_v25, 16  ;;  %v613_v15 = vsel %vm6201_vm3, %v471_v59, %v612_v4 }
  0x20   : > { %v615_v11 = vld [vmem:[#allocation2 + $0x24] sm:$0xf]  ;;  %610 = vst [vmem:[#allocation2 + $0x18] sm:$0xf] %v609_v8  ;;  %611 = vst.msk [vmem:[#allocation2 + $0x1c] sm:$0xf] %vm226_vm0, %v470_v7 }
  0x21   : > { %607 = vst [vmem:[#allocation2 + $0x14] sm:$0x1] %v606_v9  ;;  %v481_v13 = vshrl.u32 %v6251_v26, 16  ;;  %v484_v14 = vshll.u32 %v6251_v26, 16  ;;  %v619_v16 = vld [vmem:[#allocation2 + $0x2c] sm:$0x1]  ;;  %v478_v19 = vor.u32 %v476_v12, %v475_v10 }
  0x22   : > { %v251_v17 = vsel %vm6201_vm3, 0, %v250_v5  ;;  %v490_v18 = vshrl.u32 %v6261_v42, 16  ;;  %v479_v20 = vrot.slane %v475_v10, 4  ;;  %614 = vst [vmem:[#allocation2 + $0x20] sm:$0x1] %v613_v15  ;;  %v498_v22 = vshrl.u32 %v6263_v43, 16 }
  0x23   : > { %v483_v21 = vrot.slane %v481_v13, 7  ;;  %252 = vst [vmem:[#allocation2 + $0x30] sm:$0x1] %v251_v17  ;;  %v5890_v23 = vld [vmem:[#allocation2 + $0x8] ss:$0 sps:$4 sm:$0x11]   ;;  %v616_v27 = vsel %vm6267_vm8, %v478_v19, %v615_v11 }
  0x24   : > { %v956_v24 = vrot.slane %v5327_v1, 1  ;;  %v6302_v28 = vrot.slane %v490_v18, 7  ;;  %v957_v29 = vrot.slane %v5890_v23, 1  ;;  %v827_v30 = vshll.u32 %v5890_v23, 16  ;;  %617 = vst [vmem:[#allocation2 + $0x24] sm:$0xf] %v616_v27 }
  0x25   : > { %v486_v25 = vor.u32 %v484_v14, %v483_v21  ;;  %v488_v26 = vrot.slane %v483_v21, 4  ;;  %v6304_v31 = vrot.slane %v498_v22, 7  ;;  %v689_v32 = vld [vmem:[#allocation2 + $0xc] sm:$0xf]  ;;  %v501_v51 = vshll.u32 %v6263_v43, 16  ;;  %s6157_s28 = smov 20  }
  0x26   : > { %v690_v33 = vld [vmem:[#allocation2 + $0x10] sm:$0xf]  ;;  %v713_v34 = vld [vmem:[#allocation2 + $0xc] sm:$0xe]  ;;  %v958_v45 = vsel %vm8427_vm9, %v956_v24, %v957_v29  ;;  %v657_v48 = vld [vmem:[#allocation2] sm:$0xf] }
  0x27   : > { %v487_v35 = vsel %vm6257_vm7, %v479_v20, %v486_v25  ;;  %v620_v36 = vsel %vm6201_vm3, %v488_v26, %v619_v16  ;;  %v6310_v38 = vcombine.low %v689_v32, %v690_v33  ;;  %v722_v39 = vld [vmem:[#allocation2 + $0x18] sm:$0xf]  ;;  %v723_v40 = vld [vmem:[#allocation2 + $0x1c] sm:$0xf]  ;;  %v5351_v46 = vcombine.low %v713_v34, %v690_v33  ;;  %980 = vrot.lane.b32.xlu1 %v958_v45, %s6153_s24  ;;  %v660_v7 = vld [vmem:[#allocation2 + $0x10] sm:$0xf] }
  0x28   : > { %v746_v41 = vld [vmem:[#allocation2 + $0x18] sm:$0xe]  ;;  %618 = vst.msk [vmem:[#allocation2 + $0x28] sm:$0xf] %vm226_vm0, %v487_v35  ;;  %621 = vst [vmem:[#allocation2 + $0x2c] sm:$0x1] %v620_v36  ;;  %v6319_v52 = vcombine.low %v722_v39, %v723_v40  ;;  %v6322_v53 = vcombine.low %v657_v48, %v6274_v60  ;;  %v503_v58 = vor.u32 %v501_v51, %v6304_v31 }
  0x29   : > { %v5375_v47 = vcombine.low %v746_v41, %v723_v40  ;;  %v691_v49 = vld [vmem:[#allocation2 + $0x18] sm:$0xf]  ;;  %v496_v50 = vrot.slane %v6302_v28, 4  ;;  %1036 = vrot.lane.b32.xlu0 %v6310_v38, %s6154_s25  ;;  %vm818_vm10 = vsmask.f32 7424  ;;  %v829_v55 = vrot.slane %v827_v30, 1 }
  0x2a   : > { %v692_v54 = vld [vmem:[#allocation2 + $0x1c] sm:$0xf]  ;;  %v6324_v57 = vld [vmem:[#allocation2 + $0x14] ss:$0 sps:$4 sm:$0x11]   ;;  %v820_v59 = vshrl.u32 %v6322_v53, 16 }
  0x2b   : > { %v5336_v56 = vcombine.low %v691_v49, %v692_v54  ;;  %v822_v43 = vshll.u32 %v6322_v53, 16  ;;  %v714_v61 = vld [vmem:[#allocation2 + $0x18] sm:$0xe]  ;;  %v1212_v62 = vrot.slane %v5351_v46, 1  ;;  %v724_v63 = vld [vmem:[#allocation2 + $0x24] sm:$0xf]  ;;  %v504_v2 = vsel %vm6257_vm7, %v496_v50, %v503_v58 }
  0x2c   : > { %v747_v1 = vld [vmem:[#allocation2 + $0x24] sm:$0xe]  ;;  %v1468_v60 = vrot.slane %v5375_v47, 1  ;;  %v6334_v5 = vld [vmem:[#allocation2 + $0x20] ss:$0 sps:$4 sm:$0x11]   ;;  %v5352_v8 = vcombine.low %v714_v61, %v692_v54 }
  0x2d   : > { %1038 = vrot.lane.b32.xlu1 %v5336_v56, %s6154_s25  ;;  %1292 = vrot.lane.b32.xlu0 %v6319_v52, %s6155_s26  ;;  %v824_v4 = vrot.slane %v822_v43, 1  ;;  %625 = vst.msk [vmem:[#allocation2 + $0x34] sm:$0xf] %vm226_vm0, %v504_v2  ;;  %v682_v10 = vld [vmem:[#allocation2 + $0xc] sm:$0xe]  ;;  %v1213_v12 = vrot.slane %v6324_v57, 1 }
  0x2e   : > { %v6338_v14 = vld [vmem:[#allocation2 + $0x14] ss:$0 sps:$4 sm:$0x11]   ;;  %v659_v15 = vld [vmem:[#allocation2 + $0xc] sm:$0xf]  ;;  %v1091_v16 = vshll.u32 %v5336_v56, 16  ;;  %v5328_v18 = vcombine.low %v682_v10, %v660_v7 }
  0x2f   : > { %v725_v9 = vld [vmem:[#allocation2 + $0x28] sm:$0xf]  ;;  %v825_v11 = vor.u32 %v824_v4, %v820_v59  ;;  %v1469_v17 = vrot.slane %v6334_v5, 1  ;;  %v6341_v19 = vcombine.low %v659_v15, %v660_v7  ;;  %v960_v22 = vrot.slane %v6338_v14, 1  ;;  %v6354_v47 = vld [vmem:[#allocation2 + $0x1c] sm:$0xf] }
  0x30   : > { %v5360_v13 = vcombine.low %v724_v63, %v725_v9  ;;  %v5376_v21 = vcombine.low %v747_v1, %v725_v9  ;;  %v5901_v23 = vld [vmem:[#allocation2 + $0x2c] ss:$0 sps:$4 sm:$0x11]   ;;  %v959_v24 = vrot.slane %v5328_v18, 1  ;;  %v1215_v26 = vrot.slane %v5352_v8, 1  ;;  %s6158_s6 = smov 32  }
  0x31   : > { %v830_v20 = vsel %vm818_vm10, %v825_v11, %v829_v55  ;;  %v5902_v25 = vld [vmem:[#allocation2 + $0x20] ss:$0 sps:$4 sm:$0x11]   ;;  %v493_v27 = vshll.u32 %v6261_v42, 16  ;;  %v1214_v29 = vsel %vm8427_vm9, %v1212_v62, %v1213_v12  ;;  %v834_v32 = vshll.u32 %v6341_v19, 16  ;;  %v5922_v11 = vld [vmem:[%s8422_s1 + $0x8] sm:$0xff]  }
  0x32   : > { %1294 = vrot.lane.b32.xlu1 %v5360_v13, %s6155_s26  ;;  %915 = vrot.lane.b32.xlu0 %v830_v20, %s6156_s27  ;;  %v1347_v30 = vshll.u32 %v5360_v13, 16  ;;  %v1089_v33 = vshrl.u32 %v5336_v56, 16  ;;  %v1079_v34 = vshll.u32 %v6310_v38, 16  ;;  %v961_v35 = vsel %vm8427_vm9, %v959_v24, %v960_v22  ;;  %v661_v42 = vld [vmem:[#allocation2 + $0x18] sm:$0xf]  ;;  %v5921_v55 = vld [vmem:[%s8422_s1] sm:$0xff]  }
  0x33   : > { %v1216_v36 = vrot.slane %v5902_v25, 1  ;;  %v1093_v39 = vrot.slane %v1091_v16, 1  ;;  %v1470_v40 = vsel %vm8427_vm9, %v1468_v60, %v1469_v17  ;;  %v1471_v41 = vrot.slane %v5376_v21, 1  ;;  %v6359_v54 = vld [vmem:[#allocation2 + $0x20] ss:$0 sps:$4 sm:$0x11]   ;;  %5762 = vmatprep.subr.bf16.mxu0 %v5921_v55 }
  0x34   : > { %v1472_v45 = vrot.slane %v5901_v23, 1  ;;  %v1096_v46 = vshll.u32 %v5902_v25, 16  ;;  %v832_v49 = vshrl.u32 %v6341_v19, 16  ;;  %v1345_v51 = vshrl.u32 %v5360_v13, 16  ;;  %v663_v2 = vld [vmem:[#allocation2 + $0x24] sm:$0xf]  ;;  %5763 = vmatpush3.bf16.msra.mxu0 %v5921_v55 }
  0x35   : > { %v1217_v48 = vsel %vm8427_vm9, %v1215_v26, %v1216_v36  ;;  %v1094_v50 = vor.u32 %v1093_v39, %v1089_v33  ;;  %v836_v56 = vrot.slane %v834_v32, 1  ;;  %v839_v58 = vshll.u32 %v6338_v14, 16  ;;  %v6368_v4 = vld [vmem:[#allocation2 + $0x28] sm:$0xf]  ;;  %v693_v20 = vld [vmem:[#allocation2 + $0x24] sm:$0xf]  ;;  %5764 = vmatprep.subr.bf16.mxu0 %v5922_v11 }
  0x36   : > { %982 = vrot.lane.b32.xlu1 %v961_v35, %s6153_s24  ;;  %1236 = vrot.lane.b32.xlu0 %v1214_v29, %s6157_s28  ;;  %v1098_v59 = vrot.slane %v1096_v46, 1  ;;  %v1349_v43 = vrot.slane %v1347_v30, 1  ;;  %v1077_v61 = vshrl.u32 %v6310_v38, 16  ;;  %v1081_v62 = vrot.slane %v1079_v34, 1  ;;  %v6391_v21 = vld [vmem:[#allocation2 + $0x28] sm:$0xf] }
  0x37   : > { %v1352_v63 = vshll.u32 %v5901_v23, 16  ;;  %v1084_v1 = vshll.u32 %v6324_v57, 16  ;;  %v6371_v7 = vor.u32 %v493_v27, %v6302_v28  ;;  %v1335_v8 = vshll.u32 %v6319_v52, 16  ;;  %v6379_v57 = vld [vmem:[#allocation2 + $0x2c] ss:$0 sps:$4 sm:$0x11]  }
  0x38   : > { %v1350_v60 = vor.u32 %v1349_v43, %v1345_v51  ;;  %v1099_v38 = vsel %vm818_vm10, %v1094_v50, %v1098_v59  ;;  %v6377_v10 = vcombine.low %v661_v42, %v6354_v47  ;;  %v1473_v28 = vsel %vm8427_vm9, %v1471_v41, %v1472_v45  ;;  %s6159_s9 = smov 16   ;;  %v380_v26 = vld [vmem:[%s6233_s23 + $0x40] sm:$0xff]  ;;  %v381_v27 = vld [vmem:[%s6233_s23 + $0x48] sm:$0xff]  ;;  %5765 = vmatpush3.bf16.msra.mxu0 %v5922_v11  ;;  %v683_v45 = vld [vmem:[#allocation2 + $0x18] sm:$0xe]  ;;  %s6160_s10 = smov 28  }
  0x39   : > { %v1354_v9 = vrot.slane %v1352_v63, 1  ;;  %v837_v12 = vor.u32 %v836_v56, %v832_v49  ;;  %v841_v13 = vrot.slane %v839_v58, 1  ;;  %v851_v14 = vshll.u32 %v6359_v54, 16  ;;  %v684_v34 = vld [vmem:[#allocation2 + $0x24] sm:$0xe] }
  0x3a   : > { %1238 = vrot.lane.b32.xlu1 %v1217_v48, %s6157_s28  ;;  %1492 = vrot.lane.b32.xlu0 %v1470_v40, %s6158_s6  ;;  %v1082_v15 = vor.u32 %v1081_v62, %v1077_v61  ;;  %v844_v16 = vshrl.u32 %v6377_v10, 16  ;;  %v846_v17 = vshll.u32 %v6377_v10, 16  ;;  %v6389_v18 = vcombine.low %v663_v2, %v6368_v4  ;;  %v622_v40 = vld [vmem:[#allocation2 + $0x30] sm:$0xf]  ;;  %v282_v51 = vld [vmem:[#allocation2 + $0x38] sm:$0x1] }
  0x3b   : > { %v1086_v22 = vrot.slane %v1084_v1, 1  ;;  %v1355_v23 = vsel %vm818_vm10, %v1350_v60, %v1354_v9  ;;  %v1340_v24 = vshll.u32 %v6334_v5, 16  ;;  %v853_v25 = vrot.slane %v851_v14, 1  ;;  %v253_v55 = vld [vmem:[#allocation2 + $0x3c] sm:$0x1] }
  0x3c   : > { %v848_v29 = vrot.slane %v846_v17, 1  ;;  %v856_v30 = vshrl.u32 %v6389_v18, 16  ;;  %v858_v32 = vshll.u32 %v6389_v18, 16  ;;  %v863_v33 = vshll.u32 %v6379_v57, 16  ;;  %v285_v61 = vld [vmem:[#allocation2 + $0x44] sm:$0x1] }
  0x3d   : > { %v842_v35 = vsel %vm818_vm10, %v837_v12, %v841_v13  ;;  %v1333_v36 = vshrl.u32 %v6319_v52, 16  ;;  %v1337_v39 = vrot.slane %v1335_v8, 1  ;;  %v6405_v5 = vcombine.low %v693_v20, %v6391_v21  ;;  %v6418_v60 = vld [vmem:[#allocation2 + $0x2c] ss:$0 sps:$4 sm:$0x11]  }
  0x3e   : > { %1174 = vrot.lane.b32.xlu1 %v1099_v38, %s6159_s9  ;;  %1494 = vrot.lane.b32.xlu0 %v1473_v28, %s6158_s6  ;;  %v849_v41 = vor.u32 %v848_v29, %v844_v16  ;;  %v860_v46 = vrot.slane %v858_v32, 1  ;;  %v5687_v42 = vpack.c.bf16 %v380_v26, %v380_v26  ;;  %v1342_v48 = vrot.slane %v1340_v24, 1  ;;  %v6431_v17 = vld [vmem:[#allocation2 + $0x34] sm:$0xf] }
  0x3f   : > { %v963_v49 = vrot.slane %v6359_v54, 1  ;;  %v5330_v50 = vcombine.low %v684_v34, %v6368_v4  ;;  %v5688_v52 = vpack.c.bf16 %v381_v27, %v381_v27  ;;  %v865_v59 = vrot.slane %v863_v33, 1  ;;  %v6442_v32 = vld [vmem:[#allocation2 + $0x34] sm:$0xf] }
  0x40   : > { %v854_v56 = vsel %vm818_vm10, %v849_v41, %v853_v25  ;;  %v861_v58 = vor.u32 %v860_v46, %v856_v30  ;;  %v623_v43 = vsel %vm6267_vm8, %v6371_v7, %v622_v40  ;;  %v1087_v62 = vsel %vm818_vm10, %v1082_v15, %v1086_v22  ;;  %v5923_v25 = vld [vmem:[%s8422_s1 + $0x10] ss:$0 sps:$4 sm:$0x33]  }
  0x41   : > { %v1338_v63 = vor.u32 %v1337_v39, %v1333_v36  ;;  %v5329_v54 = vcombine.low %v683_v45, %v6354_v47  ;;  %v1103_v1 = vshll.u32 %v6405_v5, 16  ;;  %624 = vst [vmem:[#allocation2 + $0x30] sm:$0xf] %v623_v43  ;;  %v283_v2 = vsel %vm6211_vm5, 0, %v282_v51  ;;  %v382_v34 = vld [vmem:[%s6233_s23 + $0x50] sm:$0xff]  ;;  %v383_v45 = vld [vmem:[%s6233_s23 + $0x58] sm:$0xff] }
  0x42   : > { %1430 = vrot.lane.b32.xlu1 %v1355_v23, %s6160_s10  ;;  %917 = vrot.lane.b32.xlu0 %v842_v35, %s6156_s27  ;;  %v254_v4 = vsel %vm6201_vm3, 0, %v253_v55  ;;  %v965_v7 = vrot.slane %v5330_v50, 1  ;;  %v966_v8 = vrot.slane %v6379_v57, 1  ;;  %284 = vst [vmem:[#allocation2 + $0x38] sm:$0x1] %v283_v2  ;;  %v507_v38 = vshrl.u32 %v5687_v42, 16 }
  0x43   : > { %255 = vst [vmem:[#allocation2 + $0x3c] sm:$0x1] %v254_v4  ;;  %v515_v47 = vshrl.u32 %v5688_v52, 16  ;;  %v866_v9 = vsel %vm818_vm10, %v861_v58, %v865_v59  ;;  %v510_v11 = vshll.u32 %v5687_v42, 16  ;;  %v518_v28 = vshll.u32 %v5688_v52, 16 }
  0x44   : > { %v286_v12 = vsel %vm6211_vm5, 0, %v285_v61  ;;  %v1343_v13 = vsel %vm818_vm10, %v1338_v63, %v1342_v48  ;;  %v962_v14 = vrot.slane %v5329_v54, 1  ;;  %v509_v15 = vrot.slane %v507_v38, 7  ;;  %v715_v57 = vld [vmem:[#allocation2 + $0x24] sm:$0xe] }
  0x45   : > { %v517_v16 = vrot.slane %v515_v47, 7  ;;  %287 = vst [vmem:[#allocation2 + $0x44] sm:$0x1] %v286_v12  ;;  %v1108_v20 = vshll.u32 %v6418_v60, 16  ;;  %v505_v22 = vrot.slane %v6304_v31, 4  ;;  %v967_v26 = vsel %vm8427_vm9, %v965_v7, %v966_v8 }
  0x46   : > { %919 = vrot.lane.b32.xlu1 %v854_v56, %s6156_s27  ;;  %1172 = vrot.lane.b32.xlu0 %v1087_v62, %s6159_s9  ;;  %v513_v23 = vrot.slane %v509_v15, 4  ;;  %v1101_v27 = vshrl.u32 %v6405_v5, 16  ;;  %v1105_v29 = vrot.slane %v1103_v1, 1  ;;  %v512_v33 = vor.u32 %v510_v11, %v509_v15  ;;  %v256_v58 = vld [vmem:[#allocation2 + $0x48] sm:$0x1] }
  0x47   : > { %v520_v24 = vor.u32 %v518_v28, %v517_v16  ;;  %v964_v31 = vsel %vm8427_vm9, %v962_v14, %v963_v49  ;;  %v522_v41 = vrot.slane %v517_v16, 4  ;;  %v5353_v46 = vcombine.low %v715_v57, %v6391_v21  ;;  %v6468_v1 = vld [vmem:[#allocation2 + $0x34] sm:$0xf]  ;;  %v288_v2 = vld [vmem:[#allocation2 + $0x50] sm:$0x1] }
  0x48   : > { %v695_v30 = vld [vmem:[#allocation2 + $0x30] sm:$0xf]  ;;  %vm1688_vm11 = vcmask 1041408   ;;  %v1110_v50 = vrot.slane %v1108_v20, 1  ;;  %v6456_v51 = vpack.c.bf16 %v382_v34, %v382_v34  ;;  %v1106_v55 = vor.u32 %v1105_v29, %v1101_v27 }
  0x49   : > { %v716_v35 = vld [vmem:[#allocation2 + $0x30] sm:$0xe]  ;;  %v5338_v36 = vcombine.low %v695_v30, %v6431_v17  ;;  %v521_v40 = vsel %vm6257_vm7, %v513_v23, %v520_v24  ;;  %v626_v42 = vld [vmem:[#allocation2 + $0x38] sm:$0x1]  ;;  %5868 = vmatprep.subr.msk.bf16.mxu0 %vm1688_vm11, %v5923_v25  ;;  %v5690_v59 = vpack.c.bf16 %v383_v45, %v383_v45  ;;  %v1690_v63 = vsel %vm1688_vm11, %v5923_v25, 0 }
  0x4a   : > { %921 = vrot.lane.b32.xlu1 %v866_v9, %s6156_s27  ;;  %1428 = vrot.lane.b32.xlu0 %v1343_v13, %s6160_s10  ;;  %v726_v39 = vld [vmem:[#allocation2 + $0x30] sm:$0xf]  ;;  %v629_v48 = vld [vmem:[#allocation2 + $0x3c] sm:$0xf]  ;;  %632 = vst.msk [vmem:[#allocation2 + $0x40] sm:$0xf] %vm226_vm0, %v521_v40  ;;  %v627_v49 = vsel %vm6201_vm3, %v505_v22, %v626_v42  ;;  %v5354_v21 = vcombine.low %v716_v35, %v6431_v17 }
  0x4b   : > { %628 = vst [vmem:[#allocation2 + $0x38] sm:$0x1] %v627_v49  ;;  %v630_v52 = vsel %vm6267_vm8, %v512_v33, %v629_v48  ;;  %v1115_v43 = vshll.u32 %v5338_v36, 16  ;;  %v6463_v61 = vcombine.low %v726_v39, %v6442_v32  ;;  %v1218_v54 = vrot.slane %v5353_v46, 1  ;;  %5767 = vmatpush3.bf16.msra.mxu0 %v1690_v63  ;;  %v665_v47 = vld [vmem:[#allocation2 + $0x30] sm:$0xf] }
  0x4c   : > { %v633_v56 = vld [vmem:[#allocation2 + $0x44] sm:$0x1]  ;;  %631 = vst [vmem:[#allocation2 + $0x3c] sm:$0xf] %v630_v52  ;;  %v257_v4 = vsel %vm6201_vm3, 0, %v256_v58  ;;  %v524_v7 = vshrl.u32 %v6456_v51, 16  ;;  %v1111_v8 = vsel %vm818_vm10, %v1106_v55, %v1110_v50  ;;  %v6483_v22 = vcombine.low %v665_v47, %v6468_v1 }
  0x4d   : > { %v634_v62 = vsel %vm6201_vm3, %v522_v41, %v633_v56  ;;  %v1219_v38 = vrot.slane %v6418_v60, 1  ;;  %258 = vst [vmem:[#allocation2 + $0x48] sm:$0x1] %v257_v4  ;;  %v532_v9 = vshrl.u32 %v5690_v59, 16  ;;  %v1113_v11 = vshrl.u32 %v5338_v36, 16  ;;  %v384_v4 = vld [vmem:[%s6233_s23 + $0x60] sm:$0xff] }
  0x4e   : > { %986 = vrot.lane.b32.xlu1 %v967_v26, %s6153_s24  ;;  %984 = vrot.lane.b32.xlu0 %v964_v31, %s6153_s24  ;;  %635 = vst [vmem:[#allocation2 + $0x44] sm:$0x1] %v634_v62  ;;  %v1117_v28 = vrot.slane %v1115_v43, 1  ;;  %v748_v12 = vld [vmem:[#allocation2 + $0x30] sm:$0xe]  ;;  %v1359_v13 = vshll.u32 %v6463_v61, 16 }
  0x4f   : > { %v1221_v14 = vrot.slane %v5354_v21, 1  ;;  %v1357_v16 = vshrl.u32 %v6463_v61, 16  ;;  %v526_v57 = vrot.slane %v524_v7, 7  ;;  %v6480_v17 = vrot.slane %v532_v9, 7  ;;  %v685_v46 = vld [vmem:[#allocation2 + $0x30] sm:$0xe] }
  0x50   : > { %v289_v60 = vsel %vm6211_vm5, 0, %v288_v2  ;;  %v1220_v26 = vsel %vm8427_vm9, %v1218_v54, %v1219_v38  ;;  %v1118_v27 = vor.u32 %v1117_v28, %v1113_v11  ;;  %v1361_v30 = vrot.slane %v1359_v13, 1  ;;  %v385_v7 = vld [vmem:[%s6233_s23 + $0x68] sm:$0xff] }
  0x51   : > { %v729_v15 = vld [vmem:[#allocation2 + $0x40] sm:$0xf]  ;;  %v530_v24 = vrot.slane %v526_v57, 4  ;;  %290 = vst [vmem:[#allocation2 + $0x50] sm:$0x1] %v289_v60  ;;  %v5377_v31 = vcombine.low %v748_v12, %v6442_v32  ;;  %v870_v45 = vshll.u32 %v6483_v22, 16  ;;  %v5331_v47 = vcombine.low %v685_v46, %v6468_v1 }
  0x52   : > { %1042 = vrot.lane.b32.xlu1 %v5338_v36, %s6154_s25  ;;  %1040 = vrot.lane.b32.xlu0 %v6405_v5, %s6154_s25  ;;  %v535_v5 = vshll.u32 %v5690_v59, 16  ;;  %v5914_v20 = vld [vmem:[#allocation2 + $0x38] ss:$0 sps:$4 sm:$0x11]   ;;  %v6500_v49 = vld [vmem:[#allocation2 + $0x40] sm:$0xf]  ;;  %v1362_v21 = vor.u32 %v1361_v30, %v1357_v16  ;;  %v5692_v1 = vpack.c.bf16 %v385_v7, %v385_v7 }
  0x53   : > { %v6488_v23 = vld [vmem:[#allocation2 + $0x38] ss:$0 sps:$4 sm:$0x11]   ;;  %v1120_v29 = vshll.u32 %v5914_v20, 16  ;;  %v728_v33 = vld [vmem:[#allocation2 + $0x3c] sm:$0xf] }
  0x54   : > { %v537_v25 = vor.u32 %v535_v5, %v6480_v17  ;;  %v749_v34 = vld [vmem:[#allocation2 + $0x3c] sm:$0xe]  ;;  %v1222_v35 = vrot.slane %v5914_v20, 1  ;;  %v1364_v36 = vshll.u32 %v6488_v23, 16  ;;  %v5362_v39 = vcombine.low %v728_v33, %v729_v15  ;;  %v6520_v9 = vld [vmem:[#allocation2 + $0x40] sm:$0xf] }
  0x55   : > { %v1122_v40 = vrot.slane %v1120_v29, 1  ;;  %v6494_v41 = vld [vmem:[#allocation2 + $0x44] ss:$0 sps:$4 sm:$0x11]   ;;  %v667_v50 = vld [vmem:[#allocation2 + $0x3c] sm:$0xf]  ;;  %v5378_v56 = vcombine.low %v749_v34, %v729_v15  ;;  %v6528_v20 = vpack.c.bf16 %v384_v4, %v384_v4 }
  0x56   : > { %1176 = vrot.lane.b32.xlu0 %v1111_v8, %s6159_s9  ;;  %v538_v42 = vsel %vm6257_vm7, %v530_v24, %v537_v25  ;;  %v1371_v48 = vshll.u32 %v5362_v39, 16  ;;  %v527_v32 = vshll.u32 %v6456_v51, 16  ;;  %v1366_v52 = vrot.slane %v1364_v36, 1  ;;  %v6505_v58 = vld [vmem:[#allocation2 + $0x38] ss:$0 sps:$4 sm:$0x11]  }
  0x57   : > { %639 = vst.msk [vmem:[#allocation2 + $0x4c] sm:$0xf] %vm226_vm0, %v538_v42  ;;  %v1123_v55 = vsel %vm818_vm10, %v1118_v27, %v1122_v40  ;;  %v1223_v59 = vsel %vm8427_vm9, %v1221_v14, %v1222_v35  ;;  %v1474_v43 = vrot.slane %v5377_v31, 1  ;;  %v868_v62 = vshrl.u32 %v6483_v22, 16  ;;  %v636_v16 = vld [vmem:[#allocation2 + $0x48] sm:$0xf] }
  0x58   : > { %1178 = vrot.lane.b32.xlu1 %v1123_v55, %s6159_s9  ;;  %v1369_v63 = vshrl.u32 %v5362_v39, 16  ;;  %v1373_v54 = vrot.slane %v1371_v48, 1  ;;  %v1376_v51 = vshll.u32 %v6494_v41, 16  ;;  %v6512_v2 = vcombine.low %v667_v50, %v6500_v49  ;;  %v6524_v14 = vld [vmem:[#allocation2 + $0x44] ss:$0 sps:$4 sm:$0x11]  }
  0x59   : > { %v1475_v8 = vrot.slane %v6488_v23, 1  ;;  %v872_v38 = vrot.slane %v870_v45, 1  ;;  %v529_v11 = vor.u32 %v527_v32, %v526_v57  ;;  %v1367_v28 = vsel %vm818_vm10, %v1362_v21, %v1366_v52  ;;  %v640_v5 = vld [vmem:[#allocation2 + $0x50] sm:$0x1]  ;;  %v259_v25 = vld [vmem:[#allocation2 + $0x54] sm:$0x1] }
  0x5a   : > { %1240 = vrot.lane.b32.xlu0 %v1220_v26, %s6157_s28  ;;  %v1477_v12 = vrot.slane %v5378_v56, 1  ;;  %v875_v13 = vshll.u32 %v6505_v58, 16  ;;  %v539_v15 = vrot.slane %v6480_v17, 4  ;;  %v1374_v60 = vor.u32 %v1373_v54, %v1369_v63  ;;  %v686_v29 = vld [vmem:[#allocation2 + $0x3c] sm:$0xe] }
  0x5b   : > { %v1378_v23 = vrot.slane %v1376_v51, 1  ;;  %v1478_v57 = vrot.slane %v6494_v41, 1  ;;  %v882_v24 = vshll.u32 %v6512_v2, 16  ;;  %v1476_v26 = vsel %vm8427_vm9, %v1474_v43, %v1475_v8  ;;  %v6537_v31 = vld [vmem:[#allocation2 + $0x3c] sm:$0xe]  ;;  %v386_v51 = vld [vmem:[%s6233_s23 + $0x70] sm:$0xff] }
  0x5c   : > { %1242 = vrot.lane.b32.xlu1 %v1223_v59, %s6157_s28  ;;  %v873_v17 = vor.u32 %v872_v38, %v868_v62  ;;  %v968_v27 = vrot.slane %v5331_v47, 1  ;;  %v637_v30 = vsel %vm6267_vm8, %v529_v11, %v636_v16  ;;  %v877_v33 = vrot.slane %v875_v13, 1  ;;  %v291_v40 = vld [vmem:[#allocation2 + $0x5c] sm:$0x1]  ;;  %v262_v48 = vld [vmem:[#allocation2 + $0x60] sm:$0x1] }
  0x5d   : > { %v969_v34 = vrot.slane %v6505_v58, 1  ;;  %638 = vst [vmem:[#allocation2 + $0x48] sm:$0xf] %v637_v30  ;;  %v641_v36 = vsel %vm6201_vm3, %v539_v15, %v640_v5  ;;  %v880_v41 = vshrl.u32 %v6512_v2, 16  ;;  %v887_v45 = vshll.u32 %v6524_v14, 16  ;;  %v387_v15 = vld [vmem:[%s6233_s23 + $0x78] sm:$0xff] }
  0x5e   : > { %1296 = vrot.lane.b32.xlu0 %v6463_v61, %s6155_s26  ;;  %v697_v61 = vld [vmem:[#allocation2 + $0x3c] sm:$0xf]  ;;  %642 = vst [vmem:[#allocation2 + $0x50] sm:$0x1] %v641_v36  ;;  %v260_v46 = vsel %vm6201_vm3, 0, %v259_v25  ;;  %v541_v42 = vshrl.u32 %v6528_v20, 16  ;;  %v1379_v50 = vsel %vm818_vm10, %v1374_v60, %v1378_v23  ;;  %v1479_v32 = vsel %vm8427_vm9, %v1477_v12, %v1478_v57 }
  0x5f   : > { %v6540_v35 = vcombine.low %v697_v61, %v6520_v9  ;;  %v884_v55 = vrot.slane %v882_v24, 1  ;;  %v5332_v21 = vcombine.low %v686_v29, %v6500_v49  ;;  %261 = vst [vmem:[#allocation2 + $0x54] sm:$0x1] %v260_v46  ;;  %v294_v52 = vld [vmem:[#allocation2 + $0x68] sm:$0x1]  ;;  %v549_v58 = vshrl.u32 %v5692_v1, 16 }
  0x60   : > { %1298 = vrot.lane.b32.xlu1 %v5362_v39, %s6155_s26  ;;  %v6553_v39 = vld [vmem:[#allocation2 + $0x44] ss:$0 sps:$4 sm:$0x11]   ;;  %v543_v56 = vrot.slane %v541_v42, 7  ;;  %v552_v59 = vshll.u32 %v5692_v1, 16  ;;  %v292_v43 = vsel %vm6211_vm5, 0, %v291_v40  ;;  %v970_v62 = vsel %vm8427_vm9, %v968_v27, %v969_v34 }
  0x61   : > { %v1127_v63 = vshll.u32 %v6540_v35, 16  ;;  %v544_v54 = vshll.u32 %v6528_v20, 16  ;;  %293 = vst [vmem:[#allocation2 + $0x5c] sm:$0x1] %v292_v43  ;;  %v263_v49 = vsel %vm6201_vm3, 0, %v262_v48  ;;  %v5355_v4 = vcombine.low %v6537_v31, %v6520_v9 }
  0x62   : > { %1432 = vrot.lane.b32.xlu0 %v1367_v28, %s6160_s10  ;;  %v6567_v7 = vld [vmem:[#allocation2 + $0x4c] sm:$0xf]  ;;  %v547_v8 = vrot.slane %v543_v56, 4  ;;  %v551_v38 = vrot.slane %v549_v58, 7  ;;  %264 = vst [vmem:[#allocation2 + $0x60] sm:$0x1] %v263_v49  ;;  %v878_v11 = vsel %vm818_vm10, %v873_v17, %v877_v33  ;;  %v885_v28 = vor.u32 %v884_v55, %v880_v41 }
  0x63   : > { %v295_v47 = vsel %vm6211_vm5, 0, %v294_v52  ;;  %v889_v12 = vrot.slane %v887_v45, 1  ;;  %v972_v13 = vrot.slane %v6524_v14, 1  ;;  %v971_v61 = vrot.slane %v5332_v21, 1  ;;  %v6580_v57 = vld [vmem:[#allocation2 + $0x4c] sm:$0xf] }
  0x64   : > { %1434 = vrot.lane.b32.xlu1 %v1379_v50, %s6160_s10  ;;  %296 = vst [vmem:[#allocation2 + $0x68] sm:$0x1] %v295_v47  ;;  %v1125_v9 = vshrl.u32 %v6540_v35, 16  ;;  %v699_v16 = vld [vmem:[#allocation2 + $0x48] sm:$0xf]  ;;  %v554_v5 = vor.u32 %v552_v59, %v551_v38  ;;  %v5693_v20 = vpack.c.bf16 %v386_v51, %v386_v51  ;;  %v1129_v1 = vrot.slane %v1127_v63, 1 }
  0x65   : > { %v1132_v60 = vshll.u32 %v6553_v39, 16  ;;  %v6578_v23 = vcombine.low %v699_v16, %v6567_v7  ;;  %v546_v24 = vor.u32 %v544_v54, %v543_v56  ;;  %v730_v14 = vld [vmem:[#allocation2 + $0x48] sm:$0xf]  ;;  %v5694_v17 = vpack.c.bf16 %v387_v15, %v387_v15  ;;  %v6587_v30 = vld [vmem:[#allocation2 + $0x50] ss:$0 sps:$4 sm:$0x11]  }
  0x66   : > { %1496 = vrot.lane.b32.xlu0 %v1476_v26, %s6158_s6  ;;  %v555_v25 = vsel %vm6257_vm7, %v547_v8, %v554_v5  ;;  %v643_v26 = vld [vmem:[#allocation2 + $0x54] sm:$0xf]  ;;  %v890_v27 = vsel %vm818_vm10, %v885_v28, %v889_v12  ;;  %v556_v33 = vrot.slane %v551_v38, 4  ;;  %v1224_v34 = vrot.slane %v5355_v4, 1  ;;  %v718_v55 = vld [vmem:[#allocation2 + $0x48] sm:$0xe] }
  0x67   : > { %v1139_v29 = vshll.u32 %v6578_v23, 16  ;;  %646 = vst.msk [vmem:[#allocation2 + $0x58] sm:$0xf] %vm226_vm0, %v555_v25  ;;  %v558_v31 = vshrl.u32 %v5693_v20, 16  ;;  %v1130_v36 = vor.u32 %v1129_v1, %v1125_v9  ;;  %v1134_v40 = vrot.slane %v1132_v60, 1 }
  0x68   : > { %923 = vrot.lane.b32.xlu1 %v878_v11, %s6156_s27  ;;  %v6592_v41 = vcombine.low %v730_v14, %v6580_v57  ;;  %v644_v45 = vsel %vm6267_vm8, %v546_v24, %v643_v26  ;;  %v647_v46 = vld [vmem:[#allocation2 + $0x5c] sm:$0x1]  ;;  %v973_v42 = vsel %vm8427_vm9, %v971_v61, %v972_v13  ;;  %v1225_v48 = vrot.slane %v6553_v39, 1  ;;  %v297_v39 = vld [vmem:[#allocation2 + $0x74] sm:$0x1] }
  0x69   : > { %645 = vst [vmem:[#allocation2 + $0x54] sm:$0xf] %v644_v45  ;;  %v561_v50 = vshll.u32 %v5693_v20, 16  ;;  %v1137_v21 = vshrl.u32 %v6578_v23, 16  ;;  %v1141_v52 = vrot.slane %v1139_v29, 1  ;;  %v1144_v56 = vshll.u32 %v6587_v30, 16 }
  0x6a   : > { %1498 = vrot.lane.b32.xlu0 %v1479_v32, %s6158_s6  ;;  %v566_v32 = vshrl.u32 %v5694_v17, 16  ;;  %v648_v58 = vsel %vm6201_vm3, %v556_v33, %v647_v46  ;;  %v560_v59 = vrot.slane %v558_v31, 7  ;;  %v569_v43 = vshll.u32 %v5694_v17, 16  ;;  %v6607_v49 = vld [vmem:[#allocation2 + $0x50] ss:$0 sps:$4 sm:$0x11]  }
  0x6b   : > { %649 = vst [vmem:[#allocation2 + $0x5c] sm:$0x1] %v648_v58  ;;  %v1135_v63 = vsel %vm818_vm10, %v1130_v36, %v1134_v40  ;;  %v1383_v54 = vshll.u32 %v6592_v41, 16  ;;  %v650_v51 = vld [vmem:[#allocation2 + $0x60] sm:$0xf]  ;;  %v5356_v4 = vcombine.low %v718_v55, %v6567_v7  ;;  %v1142_v47 = vor.u32 %v1141_v52, %v1137_v21 }
  0x6c   : > { %925 = vrot.lane.b32.xlu1 %v890_v27, %s6156_s27  ;;  %v6611_v8 = vld [vmem:[#allocation2 + $0x4c] sm:$0xf]  ;;  %v563_v38 = vor.u32 %v561_v50, %v560_v59  ;;  %v1146_v11 = vrot.slane %v1144_v56, 1  ;;  %v669_v12 = vld [vmem:[#allocation2 + $0x48] sm:$0xf]  ;;  %v568_v13 = vrot.slane %v566_v32, 7 }
  0x6d   : > { %v750_v15 = vld [vmem:[#allocation2 + $0x48] sm:$0xe]  ;;  %v1381_v61 = vshrl.u32 %v6592_v41, 16  ;;  %v298_v16 = vsel %vm6211_vm5, 0, %v297_v39  ;;  %v1385_v5 = vrot.slane %v1383_v54, 1  ;;  %v1388_v20 = vshll.u32 %v6607_v49, 16 }
  0x6e   : > { %988 = vrot.lane.b32.xlu0 %v970_v62, %s6153_s24  ;;  %v265_v62 = vld [vmem:[#allocation2 + $0x6c] sm:$0x1]  ;;  %v6614_v28 = vld [vmem:[#allocation2 + $0x58] sm:$0xf]  ;;  %v651_v9 = vsel %vm6267_vm8, %v563_v38, %v650_v51  ;;  %v564_v60 = vrot.slane %v560_v59, 4  ;;  %v571_v24 = vor.u32 %v569_v43, %v568_v13  ;;  %v1227_v44 = vrot.slane %v5356_v4, 1 }
  0x6f   : > { %v266_v7 = vsel %vm6201_vm3, 0, %v265_v62  ;;  %652 = vst [vmem:[#allocation2 + $0x60] sm:$0xf] %v651_v9  ;;  %299 = vst [vmem:[#allocation2 + $0x74] sm:$0x1] %v298_v16  ;;  %v1228_v14 = vrot.slane %v6587_v30, 1  ;;  %v6630_v3 = vcombine.low %v669_v12, %v6611_v8  ;;  %v1147_v17 = vsel %vm818_vm10, %v1142_v47, %v1146_v11 }
  0x70   : > { %990 = vrot.lane.b32.xlu1 %v973_v42, %s6153_s24  ;;  %v732_v1 = vld [vmem:[#allocation2 + $0x54] sm:$0xf]  ;;  %267 = vst [vmem:[#allocation2 + $0x6c] sm:$0x1] %v266_v7  ;;  %v6632_v26 = vld [vmem:[#allocation2 + $0x58] sm:$0xf]  ;;  %v5379_v29 = vcombine.low %v750_v15, %v6580_v57  ;;  %v572_v30 = vsel %vm6257_vm7, %v564_v60, %v571_v24 }
  0x71   : > { %v5364_v25 = vcombine.low %v732_v1, %v6614_v28  ;;  %v1390_v31 = vrot.slane %v1388_v20, 1  ;;  %v5943_v36 = vld [vmem:[#allocation2 + $0x50] ss:$0 sps:$4 sm:$0x11]   ;;  %v654_v40 = vld [vmem:[#allocation2 + $0x68] sm:$0x1]  ;;  %v1229_v45 = vsel %vm8427_vm9, %v1227_v44, %v1228_v14 }
  0x72   : > { %1044 = vrot.lane.b32.xlu0 %v6540_v35, %s6154_s25  ;;  %v1226_v35 = vsel %vm8427_vm9, %v1224_v34, %v1225_v48  ;;  %v5941_v27 = vld [vmem:[#allocation2 + $0x5c] ss:$0 sps:$4 sm:$0x11]   ;;  %v671_v34 = vld [vmem:[#allocation2 + $0x54] sm:$0xf]  ;;  %v894_v42 = vshll.u32 %v6630_v3, 16 }
  0x73   : > { %v1395_v33 = vshll.u32 %v5364_v25, 16  ;;  %v751_v46 = vld [vmem:[#allocation2 + $0x54] sm:$0xe]  ;;  %v573_v48 = vrot.slane %v568_v13, 4  ;;  %653 = vst.msk [vmem:[#allocation2 + $0x64] sm:$0xf] %vm226_vm0, %v572_v30  ;;  %v6644_v55 = vcombine.low %v671_v34, %v6632_v26 }
  0x74   : > { %1046 = vrot.lane.b32.xlu1 %v6578_v23, %s6154_s25  ;;  %v1386_v23 = vor.u32 %v1385_v5, %v1381_v61  ;;  %v1393_v57 = vshrl.u32 %v5364_v25, 16  ;;  %v1400_v32 = vshll.u32 %v5941_v27, 16  ;;  %v687_v21 = vld [vmem:[#allocation2 + $0x48] sm:$0xe]  ;;  %v1480_v52 = vrot.slane %v5379_v29, 1 }
  0x75   : > { %v1397_v50 = vrot.slane %v1395_v33, 1  ;;  %v1481_v56 = vrot.slane %v6607_v49, 1  ;;  %v655_v58 = vsel %vm6201_vm3, %v573_v48, %v654_v40  ;;  %v5380_v43 = vcombine.low %v751_v46, %v6614_v28  ;;  %v701_v49 = vld [vmem:[#allocation2 + $0x54] sm:$0xf] }
  0x76   : > { %1180 = vrot.lane.b32.xlu0 %v1135_v63, %s6159_s9  ;;  %v1391_v59 = vsel %vm818_vm10, %v1386_v23, %v1390_v31  ;;  %v892_v62 = vshrl.u32 %v6630_v3, 16  ;;  %v899_v39 = vshll.u32 %v5943_v36, 16  ;;  %v6654_v63 = vld [vmem:[#allocation2 + $0x58] sm:$0xf]  ;;  %656 = vst [vmem:[#allocation2 + $0x68] sm:$0x1] %v655_v58  ;;  %v5333_v51 = vcombine.low %v687_v21, %v6611_v8 }
  0x77   : > { %v896_v54 = vrot.slane %v894_v42, 1  ;;  %v1398_v4 = vor.u32 %v1397_v50, %v1393_v57  ;;  %v1402_v0 = vrot.slane %v1400_v32, 1  ;;  %v906_v38 = vshll.u32 %v6644_v55, 16  ;;  %v688_v5 = vld [vmem:[#allocation2 + $0x54] sm:$0xe] }
  0x78   : > { %1182 = vrot.lane.b32.xlu1 %v1147_v17, %s6159_s9  ;;  %v1483_v47 = vrot.slane %v5380_v43, 1  ;;  %v1484_v11 = vrot.slane %v5941_v27, 1  ;;  %v5341_v28 = vcombine.low %v701_v49, %v6654_v63  ;;  %v901_v13 = vrot.slane %v899_v39, 1  ;;  %v703_v20 = vld [vmem:[#allocation2 + $0x60] sm:$0xf] }
  0x79   : > { %v897_v12 = vor.u32 %v896_v54, %v892_v62  ;;  %v974_v15 = vrot.slane %v5333_v51, 1  ;;  %v975_v61 = vrot.slane %v5943_v36, 1  ;;  %v1403_v8 = vsel %vm818_vm10, %v1398_v4, %v1402_v0  ;;  %v5952_v44 = vld [vmem:[#allocation2 + $0x5c] ss:$0 sps:$4 sm:$0x11]  }
  0x7a   : > { %1244 = vrot.lane.b32.xlu0 %v1226_v35, %s6157_s28  ;;  %v1482_v35 = vsel %vm8427_vm9, %v1480_v52, %v1481_v56  ;;  %v904_v9 = vshrl.u32 %v6644_v55, 16  ;;  %v908_v7 = vrot.slane %v906_v38, 1  ;;  %v6666_v1 = vld [vmem:[#allocation2 + $0x64] sm:$0xf]  ;;  %v1485_v60 = vsel %vm8427_vm9, %v1483_v47, %v1484_v11  ;;  %v719_v34 = vld [vmem:[#allocation2 + $0x54] sm:$0xe] }
  0x7b   : > { %v1151_v24 = vshll.u32 %v5341_v28, 16  ;;  %v902_v14 = vsel %vm818_vm10, %v897_v12, %v901_v13  ;;  %v5334_v27 = vcombine.low %v688_v5, %v6632_v26  ;;  %v5342_v29 = vcombine.low %v703_v20, %v6666_v1  ;;  %v734_v30 = vld [vmem:[#allocation2 + $0x60] sm:$0xf]  ;;  %v6676_v40 = vld [vmem:[#allocation2 + $0x64] sm:$0xf] }
  0x7c   : > { %1246 = vrot.lane.b32.xlu1 %v1229_v45, %s6157_s28  ;;  %v976_v33 = vsel %vm8427_vm9, %v974_v15, %v975_v61  ;;  %v1149_v23 = vshrl.u32 %v5341_v28, 16  ;;  %v1156_v36 = vshll.u32 %v5952_v44, 16  ;;  %v5357_v57 = vcombine.low %v719_v34, %v6654_v63  ;;  %v720_v52 = vld [vmem:[#allocation2 + $0x60] sm:$0xe]  ;;  %v6683_v56 = vld [vmem:[#allocation2 + $0x70] sm:$0xf] }
  0x7d   : > { %v1153_v31 = vrot.slane %v1151_v24, 1  ;;  %v977_v46 = vrot.slane %v5334_v27, 1  ;;  %v1163_v26 = vshll.u32 %v5342_v29, 16  ;;  %v5953_v48 = vld [vmem:[#allocation2 + $0x68] ss:$0 sps:$4 sm:$0x11]   ;;  %v5365_v21 = vcombine.low %v734_v30, %v6676_v40 }
  0x7e   : > { %1300 = vrot.lane.b32.xlu0 %v6592_v41, %s6155_s26  ;;  %v5945_v41 = vld [vmem:[#allocation2 + $0x5c] ss:$0 sps:$4 sm:$0x11]   ;;  %v1158_v32 = vrot.slane %v1156_v36, 1  ;;  %v1168_v62 = vshll.u32 %v5953_v48, 16  ;;  %v1230_v54 = vrot.slane %v5357_v57, 1 }
  0x7f   : > { %v911_v16 = vshll.u32 %v5945_v41, 16  ;;  %v978_v42 = vrot.slane %v5945_v41, 1  ;;  %v1154_v50 = vor.u32 %v1153_v31, %v1149_v23  ;;  %v1165_v43 = vrot.slane %v1163_v26, 1  ;;  %v736_v39 = vld [vmem:[#allocation2 + $0x6c] sm:$0xf] }
  0x80   : > { %1302 = vrot.lane.b32.xlu1 %v5364_v25, %s6155_s26  ;;  %v909_v25 = vor.u32 %v908_v7, %v904_v9  ;;  %v1231_v41 = vrot.slane %v5952_v44, 1  ;;  %v5958_v63 = vld [vmem:[#allocation2 + $0x68] ss:$0 sps:$4 sm:$0x11]   ;;  %v1407_v49 = vshll.u32 %v5365_v21, 16  ;;  %vm300_vm12 = vcmask 60416  }
  0x81   : > { %v913_v17 = vrot.slane %v911_v16, 1  ;;  %v979_v58 = vsel %vm8427_vm9, %v977_v46, %v978_v42  ;;  %v1159_v51 = vsel %vm818_vm10, %v1154_v50, %v1158_v32  ;;  %vm303_vm13 = vcmask 57344   ;;  %v317_v4 = vld [vmem:[#allocation3 + $0x18] sm:$0x1]  ;;  %301 = vst.msk [vmem:[#allocation3] sm:$0xf] %vm300_vm12, %v6152_v6 }
  0x82   : > { %1436 = vrot.lane.b32.xlu0 %v1391_v59, %s6160_s10  ;;  %v1161_v59 = vshrl.u32 %v5342_v29, 16  ;;  %v5366_v0 = vcombine.low %v736_v39, %v6683_v56  ;;  %vm6692_vm14 = vmand %vm303_vm13, %vm236_vm2  ;;  %302 = vst.msk [vmem:[#allocation3 + $0x4] sm:$0xf] %vm300_vm12, %v6152_v6  ;;  %v1170_v11 = vrot.slane %v1168_v62, 1  ;;  %v1232_v12 = vsel %vm8427_vm9, %v1230_v54, %v1231_v41 }
  0x83   : > { %v914_v45 = vsel %vm818_vm10, %v909_v25, %v913_v17  ;;  %304 = vst.msk [vmem:[#allocation3 + $0x8] sm:$0x1] %vm303_vm13, %v6152_v6  ;;  %308 = vst.msk [vmem:[#allocation3 + $0x74] sm:$0x1] %vm303_vm13, %v6152_v6  ;;  %v1405_v13 = vshrl.u32 %v5365_v21, 16  ;;  %v1409_v15 = vrot.slane %v1407_v49, 1 }
  0x84   : > { %1438 = vrot.lane.b32.xlu1 %v1403_v8, %s6160_s10  ;;  %306 = vst.msk [vmem:[#allocation3 + $0x6c] sm:$0xf] %vm300_vm12, %v6152_v6  ;;  %307 = vst.msk [vmem:[#allocation3 + $0x70] sm:$0xf] %vm300_vm12, %v6152_v6  ;;  %v1166_v47 = vor.u32 %v1165_v43, %v1161_v59  ;;  %v1412_v61 = vshll.u32 %v5958_v63, 16  ;;  %v1234_v7 = vrot.slane %v5953_v48, 1 }
  0x85   : > { %v752_v8 = vld [vmem:[#allocation2 + $0x60] sm:$0xe]  ;;  %v1419_v16 = vshll.u32 %v5366_v0, 16  ;;  %v5959_v5 = vld [vmem:[#allocation2 + $0x74] ss:$0 sps:$4 sm:$0x11]   ;;  %v1410_v24 = vor.u32 %v1409_v15, %v1405_v13 }
  0x86   : > { %1500 = vrot.lane.b32.xlu0 %v1482_v35, %s6158_s6  ;;  %v5358_v35 = vcombine.low %v720_v52, %v6666_v1  ;;  %v1171_v6 = vsel %vm818_vm10, %v1166_v47, %v1170_v11  ;;  %v1414_v44 = vrot.slane %v1412_v61, 1  ;;  %v1417_v25 = vshrl.u32 %v5366_v0, 16 }
  0x87   : > { %v1421_v17 = vrot.slane %v1419_v16, 1  ;;  %v1424_v27 = vshll.u32 %v5959_v5, 16  ;;  %v1487_v36 = vrot.slane %v5958_v63, 1  ;;  %v1490_v50 = vrot.slane %v5959_v5, 1 }
  0x88   : > { %927 = vrot.lane.b32.xlu1 %v902_v14, %s6156_s27  ;;  %v1233_v9 = vrot.slane %v5358_v35, 1  ;;  %v1415_v23 = vsel %vm818_vm10, %v1410_v24, %v1414_v44  ;;  %vm8428_vm15 = vcmask 31744   ;;  %vm1525_vm0 = vcmask 64512  }
  0x89   : > { %vm1542_vm1 = vcmask 97280   ;;  %vm1559_vm3 = vcmask 130048   ;;  %vm1576_vm5 = vcmask 162816   ;;  %vm1593_vm6 = vcmask 195584  }
  0x8a   : > { %1502 = vrot.lane.b32.xlu0 %v1485_v60, %s6158_s6  ;;  %v5381_v60 = vcombine.low %v752_v8, %v6676_v40  ;;  %v1235_v14 = vsel %vm8427_vm9, %v1233_v9, %v1234_v7  ;;  %v1422_v40 = vor.u32 %v1421_v17, %v1417_v25  ;;  %vm1610_vm8 = vcmask 228352  }
  0x8b   : > { %vm1627_vm11 = vcmask 261120  }
  0x8c   : > { %929 = vrot.lane.b32.xlu1 %v914_v45, %s6156_s27  ;;  %v1486_v31 = vrot.slane %v5381_v60, 1  ;;  %v1426_v45 = vrot.slane %v1424_v27, 1 }
  0x8e   : > { %992 = vrot.lane.b32.xlu0 %v976_v33, %s6153_s24  ;;  %v753_v33 = vld [vmem:[#allocation2 + $0x6c] sm:$0xe]  ;;  %v1488_v42 = vsel %vm8427_vm9, %v1486_v31, %v1487_v36  ;;  %v1427_v48 = vsel %vm818_vm10, %v1422_v40, %v1426_v45 }
  0x8f   : > { %v5382_v30 = vcombine.low %v753_v33, %v6683_v56 }
  0x90   : > { %994 = vrot.lane.b32.xlu1 %v979_v58, %s6153_s24 }
  0x91   : > { %v1489_v57 = vrot.slane %v5382_v30, 1 }
  0x92   : > { %1048 = vrot.lane.b32.xlu0 %v5341_v28, %s6154_s25  ;;  %v318_v28 = vsel %vm6692_vm14, 0, %v317_v4 }
  0x93   : > { %319 = vst [vmem:[#allocation3 + $0x18] sm:$0x1] %v318_v28  ;;  %v1491_v52 = vsel %vm8427_vm9, %v1489_v57, %v1490_v50  ;;  %vm1671_vm9 = vcmask 293888  }
  0x94   : > { %1050 = vrot.lane.b32.xlu1 %v5342_v29, %s6154_s25 }
  0x96   : > { %1184 = vrot.lane.b32.xlu0 %v1159_v51, %s6159_s9 }
  0x98   : > { %1186 = vrot.lane.b32.xlu1 %v1171_v6, %s6159_s9 }
  0x99   : > { %v981_v20 = vpop.permute.xlu1 %980 }
  0x9a   : > { %1248 = vrot.lane.b32.xlu0 %v1232_v12, %s6157_s28 }
  0x9b   : > { %v1037_v1 = vpop.permute.xlu0 %1036 }
  0x9c   : > { %1250 = vrot.lane.b32.xlu1 %v1235_v14, %s6157_s28 }
  0x9e   : > { %1304 = vrot.lane.b32.xlu0 %v5365_v21, %s6155_s26 }
  0x9f   : > { %v1039_v29 = vpop.permute.xlu1 %1038  ;;  %v1293_v34 = vpop.permute.xlu0 %1292 }
  0xa0   : > { %1306 = vrot.lane.b32.xlu1 %v5366_v0, %s6155_s26 }
  0xa2   : > { %1440 = vrot.lane.b32.xlu0 %v1415_v23, %s6160_s10 }
  0xa4   : > { %v1295_v46 = vpop.permute.xlu1 %1294  ;;  %v916_v26 = vpop.permute.xlu0 %915  ;;  %1442 = vrot.lane.b32.xlu1 %v1427_v48, %s6160_s10  ;;  %s5678_s10 = sshll.u32 %s8620_s19, 9 }
  0xa5   : > { %v1510_v62 = vsel %vm8428_vm15, %v6322_v53, %v916_v26  ;;  %s8083_s12 = scalar_lea.vmem %s8426_s5, %s5678_s10 }
  0xa6   : > { %1504 = vrot.lane.b32.xlu0 %v1488_v42, %s6158_s6  ;;  %v1527_v41 = vsel %vm1525_vm0, %v1510_v62, %v981_v20 }
  0xa7   : > { %v1544_v53 = vsel %vm1542_vm1, %v1527_v41, %v1037_v1 }
  0xa8   : > { %v983_v32 = vpop.permute.xlu1 %982  ;;  %v1237_v21 = vpop.permute.xlu0 %1236  ;;  %1506 = vrot.lane.b32.xlu1 %v1491_v52, %s6158_s6 }
  0xac   : > { %v1239_v56 = vpop.permute.xlu1 %1238  ;;  %v1493_v58 = vpop.permute.xlu0 %1492 }
  0xb0   : > { %v1175_v59 = vpop.permute.xlu1 %1174  ;;  %v1495_v43 = vpop.permute.xlu0 %1494 }
  0xb4   : > { %v1431_v39 = vpop.permute.xlu1 %1430  ;;  %v918_v54 = vpop.permute.xlu0 %917 }
  0xb5   : > { %v1512_v63 = vsel %vm8428_vm15, %v6341_v19, %v918_v54 }
  0xb6   : > { %v1529_v51 = vsel %vm1525_vm0, %v1512_v63, %v983_v32 }
  0xb7   : > { %v1546_v49 = vsel %vm1542_vm1, %v1529_v51, %v1039_v29 }
  0xb8   : > { %v920_v4 = vpop.permute.xlu1 %919  ;;  %v1563_v0 = vsel %vm1559_vm3, %v1546_v49, %v1175_v59  ;;  %v1173_v35 = vpop.permute.xlu0 %1172 }
  0xb9   : > { %v1580_v47 = vsel %vm1576_vm5, %v1563_v0, %v1239_v56  ;;  %v1561_v11 = vsel %vm1559_vm3, %v1544_v53, %v1173_v35  ;;  %v1514_v5 = vsel %vm8428_vm15, %v6377_v10, %v920_v4 }
  0xba   : > { %v1578_v19 = vsel %vm1576_vm5, %v1561_v11, %v1237_v21  ;;  %v1597_v28 = vsel %vm1593_vm6, %v1580_v47, %v1295_v46 }
  0xbb   : > { %v1595_v12 = vsel %vm1593_vm6, %v1578_v19, %v1293_v34  ;;  %v1614_v13 = vsel %vm1610_vm8, %v1597_v28, %v1431_v39 }
  0xbc   : > { %v1429_v15 = vpop.permute.xlu0 %1428  ;;  %v922_v61 = vpop.permute.xlu1 %921  ;;  %v1631_v9 = vsel %vm1627_vm11, %v1614_v13, %v1495_v43 }
  0xbd   : > { %v1612_v8 = vsel %vm1610_vm8, %v1595_v12, %v1429_v15  ;;  %v1516_v44 = vsel %vm8428_vm15, %v6389_v18, %v922_v61 }
  0xbe   : > { %v1629_v6 = vsel %vm1627_vm11, %v1612_v8, %v1493_v58 }
  0xbf   : > { %5768 = vmatprep.mubr.msk.bf16.mxu0 %vm1671_vm9, %v1629_v6 }
  0xc0   : > { %5769 = vmatmul.mubr.msk.bf16.vlgmr.msra.gmra.mrb[0].mxu0 %vm1671_vm9, %v1631_v9  ;;  %v985_v7 = vpop.permute.xlu0 %984  ;;  %v987_v16 = vpop.permute.xlu1 %986 }
  0xc1   : > { %v1531_v1 = vsel %vm1525_vm0, %v1514_v5, %v985_v7  ;;  %v1533_v25 = vsel %vm1525_vm0, %v1516_v44, %v987_v16 }
  0xc4   : > { %v1041_v20 = vpop.permute.xlu0 %1040  ;;  %v1043_v24 = vpop.permute.xlu1 %1042 }
  0xc5   : > { %v1548_v14 = vsel %vm1542_vm1, %v1531_v1, %v1041_v20  ;;  %v1550_v33 = vsel %vm1542_vm1, %v1533_v25, %v1043_v24  ;;  %v311_v25 = vld [vmem:[#allocation3] sm:$0x1] }
  0xc8   : > { %v1177_v60 = vpop.permute.xlu0 %1176 }
  0xc9   : > { %v1565_v27 = vsel %vm1559_vm3, %v1548_v14, %v1177_v60 }
  0xca   : > { %v1179_v29 = vpop.permute.xlu1 %1178 }
  0xcb   : > { %v1567_v23 = vsel %vm1559_vm3, %v1550_v33, %v1179_v29 }
  0xcc   : > { %v1241_v17 = vpop.permute.xlu0 %1240 }
  0xcd   : > { %v1582_v10 = vsel %vm1576_vm5, %v1565_v27, %v1241_v17  ;;  %v312_v17 = vsel %vm6692_vm14, 0, %v311_v25  ;;  %v6847_v25 = vld [vmem:[%s8423_s2] ss:$0 sm:$0xff] }
  0xce   : > { %v1243_v31 = vpop.permute.xlu1 %1242  ;;  %313 = vst [vmem:[#allocation3] sm:$0x1] %v312_v17 }
  0xcf   : > { %v1584_v18 = vsel %vm1576_vm5, %v1567_v23, %v1243_v31 }
  0xd0   : > { %v1297_v34 = vpop.permute.xlu0 %1296 }
  0xd1   : > { %v1599_v36 = vsel %vm1593_vm6, %v1582_v10, %v1297_v34 }
  0xd2   : > { %v1299_v45 = vpop.permute.xlu1 %1298 }
  0xd3   : > { %v1601_v46 = vsel %vm1593_vm6, %v1584_v18, %v1299_v45  ;;  %v2849_v18 = vld [vmem:[#allocation3 + $0x4] sm:$0xf] }
  0xd4   : > { %v1433_v30 = vpop.permute.xlu0 %1432 }
  0xd5   : > { %v1616_v40 = vsel %vm1610_vm8, %v1599_v36, %v1433_v30 }
  0xd6   : > { %v1435_v48 = vpop.permute.xlu1 %1434 }
  0xd7   : > { %v1618_v57 = vsel %vm1610_vm8, %v1601_v46, %v1435_v48 }
  0xd8   : > { %v1497_v42 = vpop.permute.xlu0 %1496 }
  0xd9   : > { %v1633_v26 = vsel %vm1627_vm11, %v1616_v40, %v1497_v42  ;;  %v2872_v40 = vld [vmem:[#allocation3] sm:$0xf] }
  0xda   : > { %5772 = vmatprep.mubr.msk.bf16.mxu0 %vm1671_vm9, %v1633_v26  ;;  %v924_v21 = vpop.permute.xlu1 %923  ;;  %v5494_v46 = vcombine.low %v2872_v40, %v2849_v18  ;;  %v2848_v42 = vld [vmem:[#allocation3] sm:$0xe]  ;;  %v342_v26 = vld [vmem:[#allocation3 + $0x8] sm:$0x1] }
  0xdb   : > { %v1518_v58 = vsel %vm8428_vm15, %v6483_v22, %v924_v21 }
  0xdc   : > { %v1499_v50 = vpop.permute.xlu0 %1498 }
  0xdd   : > { %v1635_v32 = vsel %vm1627_vm11, %v1618_v57, %v1499_v50  ;;  %v5478_v50 = vcombine.low %v2848_v42, %v2849_v18 }
  0xde   : > { %5773 = vmatmul.mubr.msk.bf16.gmra.mrb[4].mxu0 %vm1671_vm9, %v1635_v32  ;;  %v926_v56 = vpop.permute.xlu1 %925  ;;  %v3209_v32 = vshrl.u32 %v5494_v46, 16 }
  0xdf   : > { %v1520_v54 = vsel %vm8428_vm15, %v6512_v2, %v926_v56  ;;  %3152 = vrot.lane.b32.xlu0 %v5478_v50, %s6159_s9 }
  0xe0   : > { %v989_v52 = vpop.permute.xlu0 %988 }
  0xe1   : > { %v1535_v62 = vsel %vm1525_vm0, %v1518_v58, %v989_v52  ;;  %v314_v52 = vld [vmem:[#allocation3 + $0xc] sm:$0x1] }
  0xe2   : > { %v991_v43 = vpop.permute.xlu1 %990  ;;  %v315_v58 = vsel %vm6692_vm14, 0, %v314_v52  ;;  %v2023_v52 = vld [vmem:[#allocation3 + $0x18] sm:$0xf] }
  0xe3   : > { %v1537_v51 = vsel %vm1525_vm0, %v1520_v54, %v991_v43  ;;  %316 = vst [vmem:[#allocation3 + $0xc] sm:$0x1] %v315_v58 }
  0xe4   : > { %v1045_v59 = vpop.permute.xlu0 %1044 }
  0xe5   : > { %v1552_v41 = vsel %vm1542_vm1, %v1535_v62, %v1045_v59  ;;  %v348_v59 = vld [vmem:[#allocation3 + $0x20] sm:$0x1]  ;;  %v3211_v62 = vrot.slane %v3209_v32, 7 }
  0xe6   : > { %v1047_v63 = vpop.permute.xlu1 %1046 }
  0xe7   : > { %v1554_v53 = vsel %vm1542_vm1, %v1537_v51, %v1047_v63  ;;  %v345_v63 = vld [vmem:[#allocation3 + $0x14] sm:$0x1] }
  0xe8   : > { %v1181_v39 = vpop.permute.xlu0 %1180 }
  0xe9   : > { %v1569_v4 = vsel %vm1559_vm3, %v1552_v41, %v1181_v39  ;;  %v3212_v39 = vshll.u32 %v5494_v46, 16 }
  0xea   : > { %v1183_v0 = vpop.permute.xlu1 %1182 }
  0xeb   : > { %v1571_v47 = vsel %vm1559_vm3, %v1554_v53, %v1183_v0 }
  0xec   : > { %v1245_v49 = vpop.permute.xlu0 %1244 }
  0xed   : > { %v1586_v22 = vsel %vm1576_vm5, %v1569_v4, %v1245_v49  ;;  %v3214_v4 = vor.u32 %v3212_v39, %v3211_v62 }
  0xee   : > { %v1247_v11 = vpop.permute.xlu1 %1246 }
  0xef   : > { %v1588_v28 = vsel %vm1576_vm5, %v1571_v47, %v1247_v11  ;;  %3296 = vrot.lane.b32.xlu0 %v3214_v4, %s6155_s26  ;;  %v5963_v47 = vld [vmem:[#allocation3] sm:$0xff]  }
  0xf0   : > { %v1301_v35 = vpop.permute.xlu0 %1300 }
  0xf1   : > { %v1603_v19 = vsel %vm1593_vm6, %v1586_v22, %v1301_v35 }
  0xf2   : > { %v1303_v13 = vpop.permute.xlu1 %1302 }
  0xf3   : > { %v1605_v15 = vsel %vm1593_vm6, %v1588_v28, %v1303_v13  ;;  %v2369_v28 = vshrl.u32 %v5963_v47, 16  ;;  %2336 = vrot.lane.b32.xlu0 %v5963_v47, %s6159_s9 }
  0xf4   : > { %v1437_v2 = vpop.permute.xlu0 %1436 }
  0xf5   : > { %v1620_v12 = vsel %vm1610_vm8, %v1603_v19, %v1437_v2 }
  0xf6   : > { %v1439_v6 = vpop.permute.xlu1 %1438 }
  0xf7   : > { %v1622_v9 = vsel %vm1610_vm8, %v1605_v15, %v1439_v6  ;;  %v2371_v15 = vrot.slane %v2369_v28, 7 }
  0xf8   : > { %v1501_v61 = vpop.permute.xlu0 %1500 }
  0xf9   : > { %v1637_v8 = vsel %vm1627_vm11, %v1620_v12, %v1501_v61  ;;  %v2372_v61 = vshll.u32 %v5963_v47, 16 }
  0xfa   : > { %5776 = vmatprep.mubr.msk.bf16.mxu0 %vm1671_vm9, %v1637_v8  ;;  %v928_v5 = vpop.permute.xlu1 %927 }
  0xfb   : > { %v1522_v27 = vsel %vm8428_vm15, %v6630_v3, %v928_v5  ;;  %v2374_v6 = vor.u32 %v2372_v61, %v2371_v15  ;;  %v320_v5 = vld [vmem:[#allocation3 + $0x24] sm:$0x1] }
  0xfc   : > { %v1503_v7 = vpop.permute.xlu0 %1502 }
  0xfd   : > { %v1639_v16 = vsel %vm1627_vm11, %v1622_v9, %v1503_v7  ;;  %2424 = vrot.lane.b32.xlu0 %v2374_v6, %s6155_s26 }
  0xfe   : > { %5777 = vmatmul.mubr.msk.bf16.gmra.mrb[8].mxu0 %vm1671_vm9, %v1639_v16  ;;  %v930_v1 = vpop.permute.xlu1 %929  ;;  %v323_v16 = vld [vmem:[#allocation3 + $0x30] sm:$0x1] }
  0xff   : > { %v1524_v29 = vsel %vm8428_vm15, %v6644_v55, %v930_v1  ;;  %vm6804_vm15 = vmand %vm303_vm13, %vm268_vm4  ;;  %v324_v1 = vsel %vm6692_vm14, 0, %v323_v16 }
 0x100   : > { %v993_v20 = vpop.permute.xlu0 %992  ;;  %v343_v21 = vsel %vm6804_vm15, 0, %v342_v26  ;;  %v349_v41 = vsel %vm6804_vm15, 0, %v348_v59  ;;  %v346_v51 = vsel %vm6804_vm15, 0, %v345_v63  ;;  %325 = vst [vmem:[#allocation3 + $0x30] sm:$0x1] %v324_v1 }
 0x101   : > { %v1539_v34 = vsel %vm1525_vm0, %v1522_v27, %v993_v20  ;;  %344 = vst [vmem:[#allocation3 + $0x8] sm:$0x1] %v343_v21  ;;  %350 = vst [vmem:[#allocation3 + $0x20] sm:$0x1] %v349_v41  ;;  %2426 = vrot.lane.b32.xlu0 %v2371_v15, %s6155_s26  ;;  %v354_v20 = vld [vmem:[#allocation3 + $0x38] sm:$0x1] }
 0x102   : > { %v995_v24 = vpop.permute.xlu1 %994  ;;  %347 = vst [vmem:[#allocation3 + $0x14] sm:$0x1] %v346_v51 }
 0x103   : > { %v1541_v23 = vsel %vm1525_vm0, %v1524_v29, %v995_v24  ;;  %v355_v24 = vsel %vm6804_vm15, 0, %v354_v20 }
 0x104   : > { %v1049_v60 = vpop.permute.xlu0 %1048  ;;  %356 = vst [vmem:[#allocation3 + $0x38] sm:$0x1] %v355_v24 }
 0x105   : > { %v1556_v31 = vsel %vm1542_vm1, %v1539_v34, %v1049_v60  ;;  %v321_v60 = vsel %vm6692_vm14, 0, %v320_v5 }
 0x106   : > { %v1051_v14 = vpop.permute.xlu1 %1050  ;;  %322 = vst [vmem:[#allocation3 + $0x24] sm:$0x1] %v321_v60 }
 0x107   : > { %v1558_v30 = vsel %vm1542_vm1, %v1541_v23, %v1051_v14 }
 0x108   : > { %v1185_v44 = vpop.permute.xlu0 %1184  ;;  %v5962_v13 = vld [vmem:[#allocation3 + $0x8] ss:$0 sps:$4 sm:$0x11]   ;;  %v2027_v63 = vld [vmem:[#allocation3 + $0x20] sm:$0x1] }
 0x109   : > { %v1573_v3 = vsel %vm1559_vm3, %v1556_v31, %v1185_v44  ;;  %v3216_v8 = vshll.u32 %v5962_v13, 16  ;;  %3154 = vrot.lane.b32.xlu1 %v5962_v13, %s6159_s9  ;;  %v5964_v7 = vld [vmem:[#allocation3 + $0x8] ss:$0 sps:$4 sm:$0x11]   ;;  %v351_v44 = vld [vmem:[#allocation3 + $0x2c] sm:$0x1] }
 0x10a   : > { %v1187_v33 = vpop.permute.xlu1 %1186  ;;  %v352_v14 = vsel %vm6804_vm15, 0, %v351_v44 }
 0x10b   : > { %v1575_v48 = vsel %vm1559_vm3, %v1558_v30, %v1187_v33  ;;  %v3218_v9 = vsel %vm236_vm2, %v3211_v62, %v3216_v8  ;;  %353 = vst [vmem:[#allocation3 + $0x2c] sm:$0x1] %v352_v14  ;;  %v2016_v62 = vld [vmem:[#allocation3 + $0xc] sm:$0xf] }
 0x10c   : > { %v1249_v10 = vpop.permute.xlu0 %1248 }
 0x10d   : > { %v1590_v56 = vsel %vm1576_vm5, %v1573_v3, %v1249_v10  ;;  %3298 = vrot.lane.b32.xlu1 %v3218_v9, %s6155_s26 }
 0x10e   : > { %v1251_v36 = vpop.permute.xlu1 %1250 }
 0x10f   : > { %v1592_v54 = vsel %vm1576_vm5, %v1575_v48, %v1251_v36 }
 0x110   : > { %v1305_v45 = vpop.permute.xlu0 %1304 }
 0x111   : > { %v1607_v0 = vsel %vm1593_vm6, %v1590_v56, %v1305_v45  ;;  %2338 = vrot.lane.b32.xlu1 %v5964_v7, %s6159_s9 }
 0x112   : > { %v1307_v57 = vpop.permute.xlu1 %1306 }
 0x113   : > { %v1609_v53 = vsel %vm1593_vm6, %v1592_v54, %v1307_v57 }
 0x114   : > { %v1441_v43 = vpop.permute.xlu0 %1440 }
 0x115   : > { %v1624_v22 = vsel %vm1610_vm8, %v1607_v0, %v1441_v43 }
 0x116   : > { %v1443_v49 = vpop.permute.xlu1 %1442 }
 0x117   : > { %v1626_v11 = vsel %vm1610_vm8, %v1609_v53, %v1443_v49 }
 0x118   : > { %v1505_v35 = vpop.permute.xlu0 %1504 }
 0x119   : > { %v1641_v19 = vsel %vm1627_vm11, %v1624_v22, %v1505_v35  ;;  %v2020_v35 = vld [vmem:[#allocation3 + $0x14] sm:$0x1] }
 0x11a   : > { %v1507_v2 = vpop.permute.xlu1 %1506  ;;  %5780 = vmatprep.mubr.msk.bf16.mxu0 %vm1671_vm9, %v1641_v19 }
 0x11b   : > { %v1643_v12 = vsel %vm1627_vm11, %v1626_v11, %v1507_v2 }
 0x11c   : > { %5781 = vmatmul.mubr.msk.bf16.gmra.mrb[12].mxu0 %vm1671_vm9, %v1643_v12  ;;  %vm6855_vm9 = vmand %vm300_vm12, %vm268_vm4  ;;  %vm8497_vm4 = vcmask 1046528  }
 0x193   : > { %v5770_v17 = vpop.f32.mrb[0].mxu0 }
 0x194   : > { %v1735_v27 = vadd.f32 %v5770_v17, %v6847_v25  ;;  %v1726_v29 = vpop.f32.mrb[1].mxu0 }
 0x195   : > { %v1727_v33 = vadd.f32 %v6847_v25, %v1726_v29  ;;  %v5771_v10 = vpop.f32.mrb[2].mxu0 }
 0x196   : > { %v1791_v34 = vmax.f32 %v1735_v27, 0.0  ;;  %v1738_v23 = vadd.f32 %v5771_v10, %v6847_v25  ;;  %v1729_v31 = vpop.f32.mrb[3].mxu0 }
 0x197   : > { %v1789_v36 = vmax.f32 %v1727_v33, 0.0  ;;  %v1730_v30 = vadd.f32 %v6847_v25, %v1729_v31 }
 0x198   : > { %v5697_v18 = vpack.c.bf16 %v1791_v34, %v1791_v34  ;;  %v1792_v40 = vmax.f32 %v1738_v23, 0.0 }
 0x199   : > { %v5695_v45 = vpack.c.bf16 %v1789_v36, %v1789_v36  ;;  %v1790_v46 = vmax.f32 %v1730_v30, 0.0 }
 0x19a   : > { %v1871_v3 = vshrl.u32 %v5697_v18, 16  ;;  %v5698_v42 = vpack.c.bf16 %v1792_v40, %v1792_v40  ;;  %v1874_v50 = vshll.u32 %v5697_v18, 16 }
 0x19b   : > { %v1854_v26 = vshrl.u32 %v5695_v45, 16  ;;  %v5696_v48 = vpack.c.bf16 %v1790_v46, %v1790_v46  ;;  %v1857_v58 = vshll.u32 %v5695_v45, 16 }
 0x19c   : > { %v1873_v57 = vrot.slane %v1871_v3, 7  ;;  %v1879_v32 = vshrl.u32 %v5698_v42, 16  ;;  %v1882_v54 = vshll.u32 %v5698_v42, 16 }
 0x19d   : > { %v1856_v56 = vrot.slane %v1854_v26, 7  ;;  %v1862_v59 = vshrl.u32 %v5696_v48, 16  ;;  %v1865_v49 = vshll.u32 %v5696_v48, 16 }
 0x19e   : > { %v1876_v43 = vor.u32 %v1874_v50, %v1873_v57  ;;  %v1881_v39 = vrot.slane %v1879_v32, 7  ;;  %v1877_v4 = vrot.slane %v1873_v57, 4 }
 0x19f   : > { %v1859_v41 = vor.u32 %v1857_v58, %v1856_v56  ;;  %v1864_v51 = vrot.slane %v1862_v59, 7  ;;  %v1860_v47 = vrot.slane %v1856_v56, 4 }
 0x1a0   : > { %v2024_v0 = vsel %vm6855_vm9, %v1876_v43, %v2023_v52  ;;  %v1884_v53 = vor.u32 %v1882_v54, %v1881_v39  ;;  %v1886_v22 = vrot.slane %v1881_v39, 4 }
 0x1a1   : > { %2025 = vst [vmem:[#allocation3 + $0x18] sm:$0xf] %v2024_v0  ;;  %v2017_v11 = vsel %vm6855_vm9, %v1859_v41, %v2016_v62  ;;  %v1867_v19 = vor.u32 %v1865_v49, %v1864_v51  ;;  %v1869_v2 = vrot.slane %v1864_v51, 4 }
 0x1a2   : > { %2018 = vst [vmem:[#allocation3 + $0xc] sm:$0xf] %v2017_v11  ;;  %v1885_v28 = vsel %vm6257_vm7, %v1877_v4, %v1884_v53  ;;  %v2028_v12 = vsel %vm6692_vm14, %v1886_v22, %v2027_v63  ;;  %v2037_v4 = vld [vmem:[#allocation3 + $0x30] sm:$0xf]  ;;  %v2030_v11 = vld [vmem:[#allocation3 + $0x24] sm:$0xf] }
 0x1a3   : > { %2026 = vst.msk [vmem:[#allocation3 + $0x1c] sm:$0xf] %vm300_vm12, %v1885_v28  ;;  %2029 = vst [vmem:[#allocation3 + $0x20] sm:$0x1] %v2028_v12  ;;  %v1868_v13 = vsel %vm6257_vm7, %v1860_v47, %v1867_v19  ;;  %v2021_v15 = vsel %vm6692_vm14, %v1869_v2, %v2020_v35 }
 0x1a4   : > { %2019 = vst.msk [vmem:[#allocation3 + $0x10] sm:$0xf] %vm300_vm12, %v1868_v13  ;;  %2022 = vst [vmem:[#allocation3 + $0x14] sm:$0x1] %v2021_v15 }
 0x1a8   : > { %v2854_v9 = vld [vmem:[#allocation3 + $0x18] sm:$0xe] }
 0x1a9   : > { %v4432_v60 = vld [vmem:[#allocation3 + $0x18] sm:$0xe]  ;;  %v2851_v17 = vld [vmem:[#allocation3 + $0xc] sm:$0xe] }
 0x1aa   : > { %v5965_v61 = vld [vmem:[#allocation3 + $0x20] ss:$0 sps:$4 sm:$0x11]   ;;  %v6873_v8 = vld [vmem:[#allocation3 + $0x18] sm:$0xff]   ;;  %v4429_v58 = vld [vmem:[#allocation3 + $0xc] sm:$0xe] }
 0x1ab   : > { %v6875_v6 = vld [vmem:[#allocation3 + $0x1c] sm:$0xf]  ;;  %2346 = vrot.lane.b32.xlu0 %v5965_v61, %s6159_s9  ;;  %2344 = vrot.lane.b32.xlu1 %v6873_v8, %s6159_s9  ;;  %v6881_v16 = vld [vmem:[#allocation3 + $0x20] ss:$0 sps:$4 sm:$0x11]   ;;  %v6901_v27 = vld [vmem:[#allocation3 + $0xc] sm:$0xff]  }
 0x1ac   : > { %v5482_v7 = vcombine.low %v2854_v9, %v6875_v6  ;;  %v6886_v5 = vld [vmem:[#allocation3 + $0x18] sm:$0xff]   ;;  %v5971_v20 = vld [vmem:[#allocation3 + $0x20] ss:$0 sps:$4 sm:$0x11]   ;;  %v6896_v14 = vld [vmem:[#allocation3 + $0x10] sm:$0xf] }
 0x1ad   : > { %v6888_v1 = vld [vmem:[#allocation3 + $0x1c] sm:$0xf]  ;;  %v6894_v44 = vld [vmem:[#allocation3 + $0x20] ss:$0 sps:$4 sm:$0x11]   ;;  %v5480_v33 = vcombine.low %v2851_v17, %v6896_v14  ;;  %v3948_v36 = vshrl.u32 %v6901_v27, 16 }
 0x1ae   : > { %v5622_v24 = vcombine.low %v4432_v60, %v6888_v1  ;;  %v6903_v29 = vld [vmem:[#allocation3 + $0x14] ss:$0 sps:$4 sm:$0x11]   ;;  %v4398_v34 = vld [vmem:[#allocation3 + $0x1c] sm:$0xf]  ;;  %v6912_v40 = vld [vmem:[#allocation3 + $0xc] sm:$0xff]  }
 0x1af   : > { %3160 = vrot.lane.b32.xlu0 %v5482_v7, %s6159_s9  ;;  %3162 = vrot.lane.b32.xlu1 %v6881_v16, %s6159_s9  ;;  %v4421_v45 = vld [vmem:[#allocation3 + $0x18] sm:$0xf]  ;;  %v6915_v26 = vld [vmem:[#allocation3 + $0x10] sm:$0xf]  ;;  %v6926_v43 = vrot.slane %v3948_v36, 7 }
 0x1b0   : > { %v6917_v48 = vcombine.low %v4421_v45, %v4398_v34  ;;  %v6923_v50 = vld [vmem:[#allocation3 + $0x18] sm:$0xff]   ;;  %v5982_v59 = vld [vmem:[#allocation3 + $0x14] ss:$0 sps:$4 sm:$0x11]   ;;  %v5620_v39 = vcombine.low %v4429_v58, %v6915_v26 }
 0x1b1   : > { %v5774_v10 = vpop.f32.mrb[4].mxu0  ;;  %v2820_v51 = vld [vmem:[#allocation3 + $0x1c] sm:$0xf]  ;;  %v2192_v35 = vshrl.u32 %v6923_v50, 16  ;;  %v2841_v13 = vld [vmem:[#allocation3 + $0x18] sm:$0xf] }
 0x1b2   : > { %v1751_v23 = vadd.f32 %v5774_v10, %v6847_v25  ;;  %v1742_v31 = vpop.f32.mrb[5].mxu0  ;;  %v4550_v49 = vshrl.u32 %v6917_v48, 16  ;;  %v5984_v28 = vld [vmem:[#allocation3 + $0x20] ss:$0 sps:$4 sm:$0x11]   ;;  %v5471_v60 = vcombine.low %v2841_v13, %v2820_v51 }
 0x1b3   : > { %3919 = vrot.lane.b32.xlu0 %v6886_v5, %s6159_s9  ;;  %3921 = vrot.lane.b32.xlu1 %v5971_v20, %s6159_s9  ;;  %v1743_v30 = vadd.f32 %v6847_v25, %v1742_v31  ;;  %v5775_v18 = vpop.f32.mrb[6].mxu0  ;;  %v5983_v61 = vld [vmem:[#allocation3 + $0x14] ss:$0 sps:$4 sm:$0x11]   ;;  %v2874_v45 = vld [vmem:[#allocation3 + $0x18] sm:$0xf] }
 0x1b4   : > { %v1795_v46 = vmax.f32 %v1751_v23, 0.0  ;;  %v1754_v3 = vadd.f32 %v5775_v18, %v6847_v25  ;;  %v1745_v42 = vpop.f32.mrb[7].mxu0  ;;  %v2194_v23 = vrot.slane %v2192_v35, 7  ;;  %v2034_v18 = vld [vmem:[#allocation3 + $0x2c] sm:$0x1] }
 0x1b5   : > { %v1793_v57 = vmax.f32 %v1743_v30, 0.0  ;;  %v1746_v56 = vadd.f32 %v6847_v25, %v1745_v42 }
 0x1b6   : > { %v5701_v32 = vpack.c.bf16 %v1795_v46, %v1795_v46  ;;  %v1796_v52 = vmax.f32 %v1754_v3, 0.0  ;;  %v4557_v46 = vshll.u32 %v5984_v28, 16 }
 0x1b7   : > { %4737 = vrot.lane.b32.xlu0 %v5622_v24, %s6159_s9  ;;  %4739 = vrot.lane.b32.xlu1 %v6894_v44, %s6159_s9  ;;  %v5699_v62 = vpack.c.bf16 %v1793_v57, %v1793_v57  ;;  %v1794_v22 = vmax.f32 %v1746_v56, 0.0  ;;  %v6933_v24 = vrot.slane %v4550_v49, 7 }
 0x1b8   : > { %v1905_v54 = vshrl.u32 %v5701_v32, 16  ;;  %v1908_v41 = vshll.u32 %v5701_v32, 16  ;;  %v5702_v63 = vpack.c.bf16 %v1796_v52, %v1796_v52  ;;  %v5496_v32 = vcombine.low %v2874_v45, %v6875_v6  ;;  %v6943_v52 = vld [vmem:[#allocation3 + $0x14] ss:$0 sps:$4 sm:$0x11]  }
 0x1b9   : > { %v1888_v0 = vshrl.u32 %v5699_v62, 16  ;;  %v1891_v53 = vshll.u32 %v5699_v62, 16  ;;  %v5700_v15 = vpack.c.bf16 %v1794_v22, %v1794_v22  ;;  %v4559_v62 = vsel %vm236_vm2, %v6933_v24, %v4557_v46  ;;  %v329_v22 = vld [vmem:[#allocation3 + $0x48] sm:$0x1] }
 0x1ba   : > { %v1907_v47 = vrot.slane %v1905_v54, 7  ;;  %v1913_v19 = vshrl.u32 %v5702_v63, 16  ;;  %v1916_v2 = vshll.u32 %v5702_v63, 16  ;;  %v2195_v6 = vshll.u32 %v6923_v50, 16 }
 0x1bb   : > { %3158 = vrot.lane.b32.xlu1 %v6903_v29, %s6159_s9  ;;  %3156 = vrot.lane.b32.xlu0 %v5480_v33, %s6159_s9  ;;  %v1890_v12 = vrot.slane %v1888_v0, 7  ;;  %v2041_v33 = vld [vmem:[#allocation3 + $0x38] sm:$0x1]  ;;  %v1896_v10 = vshrl.u32 %v5700_v15, 16  ;;  %v1899_v34 = vshll.u32 %v5700_v15, 16  ;;  %v3231_v0 = vshrl.u32 %v5496_v32, 16 }
 0x1bc   : > { %v1910_v9 = vor.u32 %v1908_v41, %v1907_v47  ;;  %v1911_v7 = vrot.slane %v1907_v47, 4  ;;  %v1915_v20 = vrot.slane %v1913_v19, 7  ;;  %v2197_v51 = vor.u32 %v2195_v6, %v2194_v23 }
 0x1bd   : > { %v1893_v17 = vor.u32 %v1891_v53, %v1890_v12  ;;  %v1894_v3 = vrot.slane %v1890_v12, 4  ;;  %v1898_v57 = vrot.slane %v1896_v10, 7  ;;  %v5989_v53 = vld [vmem:[#allocation3 + $0x18] sm:$0xff]   ;;  %v2983_v50 = vshll.u32 %v5471_v60, 16 }
 0x1be   : > { %v2038_v31 = vsel %vm6855_vm9, %v1910_v9, %v2037_v4  ;;  %v1918_v36 = vor.u32 %v1916_v2, %v1915_v20  ;;  %v1920_v30 = vrot.slane %v1915_v20, 4  ;;  %v2383_v4 = vshrl.u32 %v6873_v8, 16  ;;  %v4454_v12 = vld [vmem:[#allocation3 + $0x18] sm:$0xf] }
 0x1bf   : > { %3915 = vrot.lane.b32.xlu0 %v6901_v27, %s6159_s9  ;;  %2340 = vrot.lane.b32.xlu1 %v6912_v40, %s6159_s9  ;;  %2039 = vst [vmem:[#allocation3 + $0x30] sm:$0xf] %v2038_v31  ;;  %v2031_v42 = vsel %vm6855_vm9, %v1893_v17, %v2030_v11  ;;  %v1903_v54 = vrot.slane %v1898_v57, 4  ;;  %v330_v35 = vsel %vm6692_vm14, 0, %v329_v22  ;;  %v3233_v19 = vrot.slane %v3231_v0, 7 }
 0x1c0   : > { %2032 = vst [vmem:[#allocation3 + $0x24] sm:$0xf] %v2031_v42  ;;  %v1919_v56 = vsel %vm6257_vm7, %v1911_v7, %v1918_v36  ;;  %v2042_v58 = vsel %vm6692_vm14, %v1920_v30, %v2041_v33  ;;  %v6966_v11 = vrot.slane %v2383_v4, 7  ;;  %v3764_v2 = vshrl.u32 %v5989_v53, 16  ;;  %331 = vst [vmem:[#allocation3 + $0x48] sm:$0x1] %v330_v35 }
 0x1c1   : > { %2040 = vst.msk [vmem:[#allocation3 + $0x34] sm:$0xf] %vm300_vm12, %v1919_v56  ;;  %2043 = vst [vmem:[#allocation3 + $0x38] sm:$0x1] %v2042_v58  ;;  %v2035_v63 = vsel %vm6692_vm14, %v1903_v54, %v2034_v18  ;;  %v3234_v15 = vshll.u32 %v5496_v32, 16  ;;  %v3955_v20 = vshrl.u32 %v6886_v5, 16 }
 0x1c2   : > { %2036 = vst [vmem:[#allocation3 + $0x2c] sm:$0x1] %v2035_v63  ;;  %v3766_v7 = vrot.slane %v3764_v2, 7  ;;  %v3767_v17 = vshll.u32 %v5989_v53, 16  ;;  %v2817_v31 = vld [vmem:[#allocation3 + $0x10] sm:$0xf] }
 0x1c3   : > { %4733 = vrot.lane.b32.xlu0 %v5620_v39, %s6159_s9  ;;  %2342 = vrot.lane.b32.xlu1 %v5982_v59, %s6159_s9  ;;  %v2980_v59 = vshrl.u32 %v5471_v60, 16  ;;  %v1901_v39 = vor.u32 %v1899_v34, %v1898_v57  ;;  %v3236_v9 = vor.u32 %v3234_v15, %v3233_v19  ;;  %v5990_v60 = vld [vmem:[#allocation3 + $0xc] sm:$0xff]   ;;  %v3957_v34 = vrot.slane %v3955_v20, 7  ;;  %v5991_v30 = vld [vmem:[#allocation3 + $0x20] ss:$0 sps:$4 sm:$0x11]  }
 0x1c4   : > { %v3769_v10 = vor.u32 %v3767_v17, %v3766_v7  ;;  %v3958_v36 = vshll.u32 %v6886_v5, 16  ;;  %v2873_v42 = vld [vmem:[#allocation3 + $0xc] sm:$0xf]  ;;  %v2987_v56 = vshll.u32 %v5991_v30, 16  ;;  %v326_v54 = vld [vmem:[#allocation3 + $0x3c] sm:$0x1] }
 0x1c5   : > { %v1902_v41 = vsel %vm6257_vm7, %v1894_v3, %v1901_v39  ;;  %v2982_v49 = vrot.slane %v2980_v59, 7  ;;  %v5495_v32 = vcombine.low %v2873_v42, %v6896_v14  ;;  %v360_v14 = vld [vmem:[#allocation3 + $0x50] sm:$0x1]  ;;  %v3238_v63 = vshll.u32 %v6881_v16, 16  ;;  %v4453_v35 = vld [vmem:[#allocation3 + $0xc] sm:$0xf] }
 0x1c6   : > { %2033 = vst.msk [vmem:[#allocation3 + $0x28] sm:$0xf] %vm300_vm12, %v1902_v41  ;;  %v3960_v46 = vor.u32 %v3958_v36, %v3957_v34  ;;  %v2188_v41 = vshll.u32 %v5990_v60, 16  ;;  %v327_v22 = vsel %vm6692_vm14, 0, %v326_v54  ;;  %v6032_v30 = vld [vmem:[%s8424_s3] sm:$0xff]  }
 0x1c7   : > { %4005 = vrot.lane.b32.xlu0 %v6926_v43, %s6155_s26  ;;  %3917 = vrot.lane.b32.xlu1 %v5983_v61, %s6159_s9  ;;  %v2985_v47 = vor.u32 %v2983_v50, %v2982_v49  ;;  %v5637_v61 = vcombine.low %v4454_v12, %v6888_v1  ;;  %v2840_v1 = vld [vmem:[#allocation3 + $0xc] sm:$0xf]  ;;  %v2989_v39 = vsel %vm236_vm2, %v2982_v49, %v2987_v56  ;;  %v3220_v6 = vshrl.u32 %v5495_v32, 16  ;;  %v357_v50 = vld [vmem:[#allocation3 + $0x44] sm:$0x1] }
 0x1c8   : > { %v5470_v18 = vcombine.low %v2840_v1, %v2817_v31  ;;  %328 = vst [vmem:[#allocation3 + $0x3c] sm:$0x1] %v327_v22  ;;  %v358_v20 = vsel %vm6804_vm15, 0, %v357_v50  ;;  %5784 = vmatprep.subr.bf16.mxu0 %v6032_v30  ;;  %5864 = vmatprep.subr.bf16.mxu1 %v6032_v30 }
 0x1c9   : > { %v4801_v33 = vshrl.u32 %v5637_v61, 16  ;;  %v4804_v57 = vshll.u32 %v5637_v61, 16  ;;  %v6998_v12 = vrot.slane %v3220_v6, 7  ;;  %359 = vst [vmem:[#allocation3 + $0x44] sm:$0x1] %v358_v20  ;;  %5785 = vmatpush3.bf16.msra.mxu0 %v6032_v30  ;;  %5866 = vmatpush3.bf16.msra.mxu1 %v6032_v30 }
 0x1ca   : > { %v2969_v58 = vshrl.u32 %v5470_v18, 16  ;;  %v2972_v2 = vshll.u32 %v5470_v18, 16  ;;  %v4808_v18 = vshll.u32 %v6894_v44, 16  ;;  %v2386_v44 = vshll.u32 %v6873_v8, 16  ;;  %v335_v30 = vld [vmem:[#allocation3 + $0x60] sm:$0x1] }
 0x1cb   : > { %4639 = vrot.lane.b32.xlu0 %v4559_v62, %s6153_s24  ;;  %4735 = vrot.lane.b32.xlu1 %v6943_v52, %s6159_s9  ;;  %v6978_v45 = vrot.slane %v4801_v33, 7 }
 0x1cc   : > { %v6991_v4 = vrot.slane %v2969_v58, 7 }
 0x1cd   : > { %v4806_v5 = vor.u32 %v4804_v57, %v6978_v45 }
 0x1cf   : > { %2244 = vrot.lane.b32.xlu0 %v2197_v51, %s6153_s24  ;;  %2246 = vrot.lane.b32.xlu1 %v2194_v23, %s6153_s24  ;;  %v2185_v23 = vshrl.u32 %v5990_v60, 16  ;;  %v2376_v51 = vshrl.u32 %v6912_v40, 16  ;;  %v2044_v58 = vld [vmem:[#allocation3 + $0x3c] sm:$0xf] }
 0x1d0   : > { %v2048_v20 = vld [vmem:[#allocation3 + $0x44] sm:$0x1] }
 0x1d1   : > { %v5778_v28 = vpop.f32.mrb[8].mxu0  ;;  %v2187_v3 = vrot.slane %v2185_v23, 7  ;;  %v3223_v23 = vshll.u32 %v5495_v32, 16 }
 0x1d2   : > { %v1758_v13 = vpop.f32.mrb[9].mxu0  ;;  %v1767_v59 = vadd.f32 %v5778_v28, %v6847_v25  ;;  %v361_v28 = vsel %vm6804_vm15, 0, %v360_v14 }
 0x1d3   : > { %3060 = vrot.lane.b32.xlu0 %v2985_v47, %s6153_s24  ;;  %2434 = vrot.lane.b32.xlu1 %v6966_v11, %s6155_s26  ;;  %v1759_v62 = vadd.f32 %v6847_v25, %v1758_v13  ;;  %v2190_v0 = vor.u32 %v2188_v41, %v2187_v3  ;;  %v3240_v47 = vsel %vm236_vm2, %v3233_v19, %v3238_v63  ;;  %v5779_v16 = vpop.f32.mrb[10].mxu0  ;;  %v5993_v41 = vld [vmem:[#allocation3 + $0x14] ss:$0 sps:$4 sm:$0x11]  }
 0x1d4   : > { %v1799_v53 = vmax.f32 %v1767_v59, 0.0  ;;  %v7001_v13 = vcombine.low %v4453_v35, %v6915_v26  ;;  %362 = vst [vmem:[#allocation3 + $0x50] sm:$0x1] %v361_v28  ;;  %v2974_v19 = vor.u32 %v2972_v2, %v6991_v4  ;;  %v1761_v60 = vpop.f32.mrb[11].mxu0  ;;  %v3225_v57 = vor.u32 %v3223_v23, %v6998_v12 }
 0x1d5   : > { %v1797_v49 = vmax.f32 %v1759_v62, 0.0  ;;  %v1762_v1 = vadd.f32 %v6847_v25, %v1761_v60  ;;  %v4810_v59 = vsel %vm236_vm2, %v6978_v45, %v4808_v18  ;;  %v6035_v45 = vld [vmem:[%s8424_s3 + $0x8] sm:$0xff]  }
 0x1d6   : > { %v5705_v15 = vpack.c.bf16 %v1799_v53, %v1799_v53  ;;  %v4790_v42 = vshrl.u32 %v7001_v13, 16  ;;  %5786 = vmatprep.subr.bf16.mxu0 %v6035_v45  ;;  %5865 = vmatprep.subr.bf16.mxu1 %v6035_v45 }
 0x1d7   : > { %3304 = vrot.lane.b32.xlu0 %v3236_v9, %s6155_s26  ;;  %3821 = vrot.lane.b32.xlu1 %v3766_v7, %s6153_s24  ;;  %v5703_v61 = vpack.c.bf16 %v1797_v49, %v1797_v49  ;;  %v2378_v9 = vrot.slane %v2376_v51, 7  ;;  %v1770_v7 = vadd.f32 %v5779_v16, %v6847_v25  ;;  %v2388_v51 = vor.u32 %v2386_v44, %v6966_v11  ;;  %v4438_v44 = vld [vmem:[#allocation3 + $0x30] sm:$0xe] }
 0x1d8   : > { %v1939_v17 = vshrl.u32 %v5705_v15, 16  ;;  %v1942_v33 = vshll.u32 %v5705_v15, 16  ;;  %v7034_v63 = vrot.slane %v4790_v42, 7  ;;  %v4793_v49 = vshll.u32 %v7001_v13, 16  ;;  %5787 = vmatpush3.bf16.msra.mxu0 %v6035_v45  ;;  %5867 = vmatpush3.bf16.msra.mxu1 %v6035_v45  ;;  %v7072_v42 = vpop.permute.xlu0 %3152  ;;  %v7092_v45 = vld [vmem:[#allocation3 + $0x34] sm:$0xf] }
 0x1d9   : > { %v1922_v26 = vshrl.u32 %v5703_v61, 16  ;;  %v2976_v16 = vshll.u32 %v5993_v41, 16  ;;  %8451 = vst [vmem:[#allocation4_spill] sm:$0xff] %v7072_v42 }
 0x1da   : > { %v1941_v31 = vrot.slane %v1939_v17, 7  ;;  %v4795_v13 = vor.u32 %v4793_v49, %v7034_v63 }
 0x1db   : > { %3819 = vrot.lane.b32.xlu0 %v3769_v10, %s6153_s24  ;;  %4009 = vrot.lane.b32.xlu1 %v3957_v34, %s6155_s26  ;;  %v1925_v10 = vshll.u32 %v5703_v61, 16  ;;  %v1800_v34 = vmax.f32 %v1770_v7, 0.0  ;;  %v7011_v36 = vrot.slane %v1922_v26, 7  ;;  %v2055_v53 = vld [vmem:[#allocation3 + $0x50] sm:$0x1]  ;;  %v2978_v7 = vsel %vm236_vm2, %v6991_v4, %v2976_v16 }
 0x1dc   : > { %v1944_v32 = vor.u32 %v1942_v33, %v1941_v31  ;;  %v1945_v14 = vrot.slane %v1941_v31, 4  ;;  %v3227_v26 = vshll.u32 %v6903_v29, 16  ;;  %v2860_v31 = vld [vmem:[#allocation3 + $0x30] sm:$0xe]  ;;  %v4553_v29 = vshll.u32 %v6917_v48, 16 }
 0x1dd   : > { %v1927_v56 = vor.u32 %v1925_v10, %v7011_v36  ;;  %v1928_v61 = vrot.slane %v7011_v36, 4  ;;  %v7052_v10 = vld [vmem:[#allocation3 + $0x30] sm:$0xff]  }
 0x1de   : > { %v3229_v4 = vsel %vm236_vm2, %v6998_v12, %v3227_v26  ;;  %v4555_v18 = vor.u32 %v4553_v29, %v6933_v24  ;;  %v332_v12 = vld [vmem:[#allocation3 + $0x54] sm:$0x1]  ;;  %v7109_v26 = vpop.permute.xlu1 %3154 }
 0x1df   : > { %4007 = vrot.lane.b32.xlu0 %v3960_v46, %s6155_s26  ;;  %2242 = vrot.lane.b32.xlu1 %v2187_v3, %s6153_s24  ;;  %v2051_v46 = vld [vmem:[#allocation3 + $0x48] sm:$0xf]  ;;  %v5706_v3 = vpack.c.bf16 %v1800_v34, %v1800_v34  ;;  %v2045_v6 = vsel %vm6855_vm9, %v1927_v56, %v2044_v58  ;;  %v363_v56 = vld [vmem:[#allocation3 + $0x5c] sm:$0x1]  ;;  %v7077_v24 = vld [vmem:[#allocation3 + $0x30] sm:$0xff]   ;;  %v333_v58 = vsel %vm6692_vm14, 0, %v332_v12 }
 0x1e0   : > { %v2052_v54 = vsel %vm6855_vm9, %v1944_v32, %v2051_v46  ;;  %2046 = vst [vmem:[#allocation3 + $0x3c] sm:$0xf] %v2045_v6  ;;  %v366_v32 = vld [vmem:[#allocation3 + $0x68] sm:$0x1]  ;;  %334 = vst [vmem:[#allocation3 + $0x54] sm:$0x1] %v333_v58 }
 0x1e1   : > { %v1947_v62 = vshrl.u32 %v5706_v3, 16  ;;  %2053 = vst [vmem:[#allocation3 + $0x48] sm:$0xf] %v2052_v54  ;;  %v364_v41 = vsel %vm6804_vm15, 0, %v363_v56  ;;  %8453 = vst [vmem:[#allocation6_spill] sm:$0xff] %v7109_v26 }
 0x1e2   : > { %365 = vst [vmem:[#allocation3 + $0x5c] sm:$0x1] %v364_v41  ;;  %v6003_v12 = vld [vmem:[#allocation3 + $0x2c] ss:$0 sps:$4 sm:$0x11]  }
 0x1e3   : > { %4881 = vrot.lane.b32.xlu0 %v4806_v5, %s6155_s26  ;;  %3062 = vrot.lane.b32.xlu1 %v2989_v39, %s6153_s24  ;;  %v2379_v5 = vshll.u32 %v6912_v40, 16  ;;  %v1950_v39 = vshll.u32 %v5706_v3, 16  ;;  %v1798_v40 = vmax.f32 %v1762_v1, 0.0  ;;  %v1949_v8 = vrot.slane %v1947_v62, 7  ;;  %v7065_v1 = vld [vmem:[#allocation3 + $0x34] sm:$0xf] }
 0x1e4   : > { %v5486_v46 = vcombine.low %v2860_v31, %v7065_v1  ;;  %v4797_v3 = vshll.u32 %v6943_v52, 16  ;;  %v3951_v62 = vshll.u32 %v6901_v27, 16  ;;  %v7154_v41 = vld [vmem:[#allocation3 + $0x28] sm:$0xf] }
 0x1e5   : > { %v5704_v22 = vpack.c.bf16 %v1798_v40, %v1798_v40  ;;  %v1952_v50 = vor.u32 %v1950_v39, %v1949_v8  ;;  %v1954_v35 = vrot.slane %v1949_v8, 4  ;;  %v367_v40 = vsel %vm6804_vm15, 0, %v366_v32 }
 0x1e6   : > { %v4799_v39 = vsel %vm236_vm2, %v7034_v63, %v4797_v3  ;;  %368 = vst [vmem:[#allocation3 + $0x68] sm:$0x1] %v367_v40  ;;  %v3953_v8 = vor.u32 %v3951_v62, %v6926_v43  ;;  %v5626_v63 = vcombine.low %v4438_v44, %v7092_v45  ;;  %v7141_v44 = vld [vmem:[#allocation3 + $0x24] sm:$0xff]  }
 0x1e7   : > { %3306 = vrot.lane.b32.xlu1 %v3240_v47, %s6155_s26  ;;  %2240 = vrot.lane.b32.xlu0 %v2190_v0, %s6153_s24  ;;  %v2381_v0 = vor.u32 %v2379_v5, %v2378_v9  ;;  %v1930_v2 = vshrl.u32 %v5704_v22, 16  ;;  %v1933_v28 = vshll.u32 %v5704_v22, 16  ;;  %v1953_v11 = vsel %vm6257_vm7, %v1945_v14, %v1952_v50 }
 0x1e8   : > { %v2056_v15 = vsel %vm6692_vm14, %v1954_v35, %v2055_v53  ;;  %2054 = vst.msk [vmem:[#allocation3 + $0x4c] sm:$0xf] %vm300_vm12, %v1953_v11  ;;  %v6000_v35 = vld [vmem:[#allocation3 + $0x38] ss:$0 sps:$4 sm:$0x11]  }
 0x1e9   : > { %2057 = vst [vmem:[#allocation3 + $0x50] sm:$0x1] %v2056_v15 }
 0x1eb   : > { %2430 = vrot.lane.b32.xlu1 %v2378_v9, %s6155_s26  ;;  %3056 = vrot.lane.b32.xlu0 %v2974_v19, %s6153_s24  ;;  %v1932_v9 = vrot.slane %v1930_v2, 7 }
 0x1ed   : > { %v1935_v17 = vor.u32 %v1933_v28, %v1932_v9  ;;  %v1937_v33 = vrot.slane %v1932_v9, 4  ;;  %v2058_v9 = vld [vmem:[#allocation3 + $0x54] sm:$0xf]  ;;  %v2069_v31 = vld [vmem:[#allocation3 + $0x68] sm:$0x1] }
 0x1ef   : > { %4883 = vrot.lane.b32.xlu1 %v4810_v59, %s6155_s26  ;;  %3300 = vrot.lane.b32.xlu0 %v3225_v57, %s6155_s26  ;;  %v5782_v47 = vpop.f32.mrb[12].mxu0  ;;  %v1936_v34 = vsel %vm6257_vm7, %v1928_v61, %v1935_v17  ;;  %v2049_v23 = vsel %vm6692_vm14, %v1937_v33, %v2048_v20  ;;  %v336_v57 = vsel %vm6692_vm14, 0, %v335_v30  ;;  %v7107_v33 = vld [vmem:[#allocation3 + $0x38] ss:$0 sps:$4 sm:$0x11]  }
 0x1f0   : > { %v1774_v19 = vpop.f32.mrb[13].mxu0  ;;  %2047 = vst.msk [vmem:[#allocation3 + $0x40] sm:$0xf] %vm300_vm12, %v1936_v34  ;;  %2050 = vst [vmem:[#allocation3 + $0x44] sm:$0x1] %v2049_v23  ;;  %v1783_v48 = vadd.f32 %v5782_v47, %v6847_v25  ;;  %v7102_v47 = vld [vmem:[#allocation3 + $0x24] sm:$0xff]  }
 0x1f1   : > { %v5783_v60 = vpop.f32.mrb[14].mxu0  ;;  %337 = vst [vmem:[#allocation3 + $0x60] sm:$0x1] %v336_v57  ;;  %v1775_v52 = vadd.f32 %v6847_v25, %v1774_v19 }
 0x1f2   : > { %v1777_v36 = vpop.f32.mrb[15].mxu0  ;;  %v1786_v5 = vadd.f32 %v5783_v60, %v6847_v25  ;;  %v1803_v54 = vmax.f32 %v1783_v48, 0.0  ;;  %v2857_v48 = vld [vmem:[#allocation3 + $0x24] sm:$0xe] }
 0x1f3   : > { %2432 = vrot.lane.b32.xlu1 %v2388_v51, %s6155_s26  ;;  %2428 = vrot.lane.b32.xlu0 %v2381_v0, %s6155_s26  ;;  %v1778_v59 = vadd.f32 %v6847_v25, %v1777_v36  ;;  %v1801_v6 = vmax.f32 %v1775_v52, 0.0  ;;  %v7098_v51 = vpop.permute.xlu0 %3296  ;;  %v7130_v52 = vld [vmem:[#allocation3 + $0x28] sm:$0xf] }
 0x1f4   : > { %v5709_v25 = vpack.c.bf16 %v1803_v54, %v1803_v54  ;;  %v1804_v27 = vmax.f32 %v1786_v5, 0.0  ;;  %8452 = vst [vmem:[#allocation5_spill] sm:$0xff] %v7098_v51  ;;  %v6004_v5 = vld [vmem:[#allocation3 + $0x38] ss:$0 sps:$4 sm:$0x11]   ;;  %v5484_v37 = vcombine.low %v2857_v48, %v7130_v52 }
 0x1f5   : > { %v1802_v14 = vmax.f32 %v1778_v59, 0.0  ;;  %v5707_v0 = vpack.c.bf16 %v1801_v6, %v1801_v6  ;;  %v7133_v59 = vpop.permute.xlu1 %3298  ;;  %v4435_v54 = vld [vmem:[#allocation3 + $0x24] sm:$0xe] }
 0x1f6   : > { %v1973_v53 = vshrl.u32 %v5709_v25, 16  ;;  %v1976_v22 = vshll.u32 %v5709_v25, 16  ;;  %v5710_v49 = vpack.c.bf16 %v1804_v27, %v1804_v27  ;;  %8454 = vst [vmem:[#allocation7_spill] sm:$0xff] %v7133_v59  ;;  %v7151_v25 = vld [vmem:[#allocation3 + $0x2c] ss:$0 sps:$4 sm:$0x11]  }
 0x1f7   : > { %3058 = vrot.lane.b32.xlu1 %v2978_v7, %s6153_s24  ;;  %4877 = vrot.lane.b32.xlu0 %v4795_v13, %s6155_s26  ;;  %v5708_v50 = vpack.c.bf16 %v1802_v14, %v1802_v14  ;;  %v1956_v2 = vshrl.u32 %v5707_v0, 16  ;;  %v1959_v28 = vshll.u32 %v5707_v0, 16  ;;  %v7111_v34 = vpop.permute.xlu0 %2336  ;;  %v2397_v27 = vshrl.u32 %v7052_v10, 16 }
 0x1f8   : > { %v1975_v43 = vrot.slane %v1973_v53, 7  ;;  %v1981_v16 = vshrl.u32 %v5710_v49, 16  ;;  %v1984_v11 = vshll.u32 %v5710_v49, 16  ;;  %v2065_v13 = vld [vmem:[#allocation3 + $0x60] sm:$0xf]  ;;  %v5624_v14 = vcombine.low %v4435_v54, %v7154_v41  ;;  %v6014_v53 = vld [vmem:[#allocation3 + $0x30] sm:$0xff]  }
 0x1f9   : > { %v1964_v15 = vshrl.u32 %v5708_v50, 16  ;;  %v1958_v61 = vrot.slane %v1956_v2, 7  ;;  %v1967_v19 = vshll.u32 %v5708_v50, 16  ;;  %v7147_v6 = vpop.permute.xlu1 %2338  ;;  %v2390_v0 = vshrl.u32 %v7102_v47, 16  ;;  %v4404_v49 = vld [vmem:[#allocation3 + $0x34] sm:$0xf] }
 0x1fa   : > { %v1978_v7 = vor.u32 %v1976_v22, %v1975_v43  ;;  %v1979_v20 = vrot.slane %v1975_v43, 4  ;;  %v1983_v60 = vrot.slane %v1981_v16, 7  ;;  %v7163_v22 = vld [vmem:[#allocation3 + $0x24] sm:$0xff]   ;;  %v4423_v2 = vld [vmem:[#allocation3 + $0x30] sm:$0xf]  ;;  %v2206_v43 = vshrl.u32 %v6014_v53, 16 }
 0x1fb   : > { %3302 = vrot.lane.b32.xlu1 %v3229_v4, %s6155_s26  ;;  %2352 = vrot.lane.b32.xlu0 %v7052_v10, %s6159_s9  ;;  %v1966_v17 = vrot.slane %v1964_v15, 7  ;;  %v1961_v23 = vor.u32 %v1959_v28, %v1958_v61  ;;  %v1962_v4 = vrot.slane %v1958_v61, 4  ;;  %v7135_v62 = vpop.permute.xlu0 %2424  ;;  %v7172_v28 = vld [vmem:[#allocation3 + $0x2c] ss:$0 sps:$4 sm:$0x11]   ;;  %v7178_v15 = vrot.slane %v2390_v0, 7 }
 0x1fc   : > { %v2066_v36 = vsel %vm6855_vm9, %v1978_v7, %v2065_v13  ;;  %v1986_v29 = vor.u32 %v1984_v11, %v1983_v60  ;;  %v1988_v30 = vrot.slane %v1983_v60, 4  ;;  %v3771_v13 = vshrl.u32 %v7163_v22, 16  ;;  %v7181_v61 = vld [vmem:[#allocation3 + $0x30] sm:$0xff]  }
 0x1fd   : > { %2067 = vst [vmem:[#allocation3 + $0x60] sm:$0xf] %v2066_v36  ;;  %v2059_v3 = vsel %vm6855_vm9, %v1961_v23, %v2058_v9  ;;  %v1971_v57 = vrot.slane %v1966_v17, 4  ;;  %v7183_v9 = vcombine.low %v4423_v2, %v4404_v49  ;;  %v3962_v7 = vshrl.u32 %v7141_v44, 16  ;;  %v7198_v36 = vld [vmem:[#allocation3 + $0x34] sm:$0xf] }
 0x1fe   : > { %2060 = vst [vmem:[#allocation3 + $0x54] sm:$0xf] %v2059_v3  ;;  %v1987_v32 = vsel %vm6257_vm7, %v1979_v20, %v1986_v29  ;;  %v2070_v56 = vsel %vm6692_vm14, %v1988_v30, %v2069_v31  ;;  %v3778_v23 = vshrl.u32 %v7181_v61, 16  ;;  %v2843_v29 = vld [vmem:[#allocation3 + $0x30] sm:$0xf]  ;;  %v3969_v30 = vshrl.u32 %v7077_v24, 16 }
 0x1ff   : > { %4637 = vrot.lane.b32.xlu1 %v4555_v18, %s6153_s24  ;;  %3168 = vrot.lane.b32.xlu0 %v5486_v46, %s6159_s9  ;;  %v1969_v18 = vor.u32 %v1967_v19, %v1966_v17  ;;  %v2062_v46 = vld [vmem:[#allocation3 + $0x5c] sm:$0x1]  ;;  %2068 = vst.msk [vmem:[#allocation3 + $0x64] sm:$0xf] %vm300_vm12, %v1987_v32  ;;  %2071 = vst [vmem:[#allocation3 + $0x68] sm:$0x1] %v2070_v56  ;;  %v7149_v40 = vpop.permute.xlu0 %2426  ;;  %v5473_v48 = vcombine.low %v2843_v29, %v7198_v36 }
 0x200   : > { %v2063_v21 = vsel %vm6692_vm14, %v1971_v57, %v2062_v46  ;;  %v2208_v19 = vrot.slane %v2206_v43, 7  ;;  %v7194_v17 = vrot.slane %v3771_v13, 7  ;;  %v4572_v31 = vshrl.u32 %v7183_v9, 16  ;;  %v2876_v32 = vld [vmem:[#allocation3 + $0x30] sm:$0xf] }
 0x201   : > { %v1970_v58 = vsel %vm6257_vm7, %v1962_v4, %v1969_v18  ;;  %2064 = vst [vmem:[#allocation3 + $0x5c] sm:$0x1] %v2063_v21  ;;  %v6017_v4 = vld [vmem:[#allocation3 + $0x38] ss:$0 sps:$4 sm:$0x11]   ;;  %v7204_v18 = vld [vmem:[#allocation3 + $0x24] sm:$0xff]   ;;  %vm8501_vm7 = vmmov %vm8497_vm4 }
 0x202   : > { %2061 = vst.msk [vmem:[#allocation3 + $0x58] sm:$0xf] %vm300_vm12, %v1970_v58  ;;  %v3780_v3 = vrot.slane %v3778_v23, 7  ;;  %v7210_v57 = vrot.slane %v3962_v7, 7  ;;  %v7213_v56 = vrot.slane %v4572_v31, 7  ;;  %v4579_v58 = vshll.u32 %v6017_v4, 16 }
 0x203   : > { %4879 = vrot.lane.b32.xlu1 %v4799_v39, %s6155_s26  ;;  %3927 = vrot.lane.b32.xlu0 %v7077_v24, %s6159_s9  ;;  %v7139_v39 = vld [vmem:[#allocation3 + $0x38] ss:$0 sps:$4 sm:$0x11]   ;;  %v3971_v21 = vrot.slane %v3969_v30, 7  ;;  %v4456_v2 = vld [vmem:[#allocation3 + $0x30] sm:$0xf] }
 0x204   : > { %v4581_v0 = vsel %vm236_vm2, %v7213_v56, %v4579_v58  ;;  %v6020_v49 = vld [vmem:[#allocation3 + $0x38] ss:$0 sps:$4 sm:$0x11]   ;;  %v3005_v13 = vshll.u32 %v5473_v48, 16  ;;  %v5639_v31 = vcombine.low %v4456_v2, %v7092_v45  ;;  %v2842_v45 = vld [vmem:[#allocation3 + $0x24] sm:$0xf] }
 0x205   : > { %v3009_v29 = vshll.u32 %v6020_v49, 16  ;;  %v2879_v26 = vld [vmem:[#allocation3 + $0x54] sm:$0xf] }
 0x207   : > { %4003 = vrot.lane.b32.xlu1 %v3953_v8, %s6155_s26  ;;  %4745 = vrot.lane.b32.xlu0 %v5626_v63, %s6159_s9  ;;  %v6012_v8 = vld [vmem:[#allocation3 + $0x2c] ss:$0 sps:$4 sm:$0x11]   ;;  %v7160_v63 = vrot.slane %v2397_v27, 7 }
 0x20b   : > { %2354 = vrot.lane.b32.xlu1 %v6000_v35, %s6159_s9  ;;  %2348 = vrot.lane.b32.xlu0 %v7102_v47, %s6159_s9 }
 0x20f   : > { %3170 = vrot.lane.b32.xlu1 %v7107_v33, %s6159_s9  ;;  %2350 = vrot.lane.b32.xlu0 %v6003_v12, %s6159_s9 }
 0x213   : > { %3929 = vrot.lane.b32.xlu1 %v6004_v5, %s6159_s9  ;;  %3164 = vrot.lane.b32.xlu0 %v5484_v37, %s6159_s9  ;;  %v2199_v5 = vshrl.u32 %v7204_v18, 16  ;;  %v5498_v37 = vcombine.low %v2876_v32, %v7065_v1 }
 0x215   : > { %v7228_v43 = vrot.slane %v2199_v5, 7  ;;  %v3256_v5 = vshll.u32 %v5498_v37, 16 }
 0x217   : > { %4747 = vrot.lane.b32.xlu1 %v7139_v39, %s6159_s9  ;;  %3923 = vrot.lane.b32.xlu0 %v7141_v44, %s6159_s9 }
 0x21b   : > { %3166 = vrot.lane.b32.xlu1 %v7151_v25, %s6159_s9  ;;  %4741 = vrot.lane.b32.xlu0 %v5624_v14, %s6159_s9  ;;  %v2209_v14 = vshll.u32 %v6014_v53, 16  ;;  %v3253_v53 = vshrl.u32 %v5498_v37, 16 }
 0x21d   : > { %v7165_v50 = vpop.permute.xlu1 %2344  ;;  %v7167_v35 = vpop.permute.xlu0 %2346  ;;  %v2211_v23 = vor.u32 %v2209_v14, %v2208_v19  ;;  %v3255_v58 = vrot.slane %v3253_v53, 7  ;;  %v4823_v14 = vshrl.u32 %v5639_v31, 16 }
 0x21f   : > { %3925 = vrot.lane.b32.xlu1 %v6012_v8, %s6159_s9  ;;  %2442 = vrot.lane.b32.xlu0 %v7160_v63, %s6155_s26  ;;  %v3002_v8 = vshrl.u32 %v5473_v48, 16  ;;  %v4825_v53 = vrot.slane %v4823_v14, 7 }
 0x221   : > { %v7174_v16 = vpop.permute.xlu1 %3162  ;;  %v7176_v11 = vpop.permute.xlu0 %3160  ;;  %v3004_v4 = vrot.slane %v3002_v8, 7  ;;  %v2823_v8 = vld [vmem:[#allocation3 + $0x28] sm:$0xf] }
 0x222   : > { %8455 = vst [vmem:[#allocation8_spill] sm:$0xff] %v7174_v16  ;;  %8456 = vst [vmem:[#allocation9_spill] sm:$0xff] %v7176_v11 }
 0x223   : > { %4743 = vrot.lane.b32.xlu1 %v7172_v28, %s6159_s9  ;;  %2438 = vrot.lane.b32.xlu0 %v7178_v15, %s6155_s26  ;;  %v3007_v48 = vor.u32 %v3005_v13, %v3004_v4  ;;  %v3781_v13 = vshll.u32 %v7181_v61, 16  ;;  %v3972_v61 = vshll.u32 %v7077_v24, 16 }
 0x225   : > { %v7190_v20 = vpop.permute.xlu1 %3921  ;;  %v7192_v60 = vpop.permute.xlu0 %3919  ;;  %v3974_v24 = vor.u32 %v3972_v61, %v3971_v21 }
 0x227   : > { %2254 = vrot.lane.b32.xlu1 %v2208_v19, %s6153_s24  ;;  %3825 = vrot.lane.b32.xlu0 %v7194_v17, %s6153_s24  ;;  %v3260_v19 = vshll.u32 %v7107_v33, 16  ;;  %v5472_v33 = vcombine.low %v2842_v45, %v2823_v8  ;;  %v7265_v8 = vld [vmem:[#allocation3 + $0x28] sm:$0xf]  ;;  %v4422_v45 = vld [vmem:[#allocation3 + $0x24] sm:$0xf] }
 0x229   : > { %v7206_v46 = vpop.permute.xlu1 %4739  ;;  %v7208_v12 = vpop.permute.xlu0 %4737  ;;  %v3262_v37 = vsel %vm236_vm2, %v3255_v58, %v3260_v19  ;;  %v2991_v14 = vshrl.u32 %v5472_v33, 16 }
 0x22a   : > { %8457 = vst [vmem:[#allocation10_spill] sm:$0xff] %v7206_v46  ;;  %8458 = vst [vmem:[#allocation11_spill] sm:$0xff] %v7208_v12  ;;  %v3783_v46 = vor.u32 %v3781_v13, %v3780_v3  ;;  %v4826_v13 = vshll.u32 %v5639_v31, 16  ;;  %v3249_v31 = vshll.u32 %v7151_v25, 16 }
 0x22b   : > { %3829 = vrot.lane.b32.xlu1 %v3780_v3, %s6153_s24  ;;  %4013 = vrot.lane.b32.xlu0 %v7210_v57, %s6155_s26 }
 0x22c   : > { %v4828_v12 = vor.u32 %v4826_v13, %v4825_v53 }
 0x22d   : > { %v7220_v54 = vpop.permute.xlu1 %3158  ;;  %v7222_v27 = vpop.permute.xlu0 %3156 }
 0x22e   : > { %8459 = vst [vmem:[#allocation12_spill] sm:$0xff] %v7220_v54  ;;  %8460 = vst [vmem:[#allocation13_spill] sm:$0xff] %v7222_v27 }
 0x22f   : > { %4017 = vrot.lane.b32.xlu1 %v3971_v21, %s6155_s26  ;;  %4647 = vrot.lane.b32.xlu0 %v4581_v0, %s6153_s24  ;;  %v3011_v0 = vsel %vm236_vm2, %v3004_v4, %v3009_v29  ;;  %v4830_v4 = vshll.u32 %v7139_v39, 16  ;;  %v2875_v29 = vld [vmem:[#allocation3 + $0x24] sm:$0xf]  ;;  %v6023_v39 = vld [vmem:[#allocation3 + $0x2c] ss:$0 sps:$4 sm:$0x11]  }
 0x231   : > { %v7230_v7 = vpop.permute.xlu1 %2340  ;;  %v7232_v1 = vpop.permute.xlu0 %3915  ;;  %v4832_v19 = vsel %vm236_vm2, %v4825_v53, %v4830_v4 }
 0x233   : > { %2250 = vrot.lane.b32.xlu1 %v7228_v43, %s6153_s24  ;;  %2252 = vrot.lane.b32.xlu0 %v2211_v23, %s6153_s24  ;;  %v3258_v23 = vor.u32 %v3256_v5, %v3255_v58  ;;  %v2400_v5 = vshll.u32 %v7052_v10, 16  ;;  %v5497_v58 = vcombine.low %v2875_v29, %v7130_v52  ;;  %v2993_v52 = vrot.slane %v2991_v14, 7 }
 0x234   : > { %v5613_v29 = vcombine.low %v4422_v45, %v7265_v8 }
 0x235   : > { %v7238_v30 = vpop.permute.xlu1 %2342  ;;  %v7240_v32 = vpop.permute.xlu0 %4733  ;;  %v2402_v10 = vor.u32 %v2400_v5, %v7160_v63  ;;  %v3242_v4 = vshrl.u32 %v5497_v58, 16  ;;  %v6026_v5 = vld [vmem:[#allocation3 + $0x2c] ss:$0 sps:$4 sm:$0x11]  }
 0x236   : > { %8461 = vst [vmem:[#allocation14_spill] sm:$0xff] %v7240_v32  ;;  %v2202_v32 = vshll.u32 %v7204_v18, 16  ;;  %v4561_v61 = vshrl.u32 %v5613_v29, 16  ;;  %v4568_v25 = vshll.u32 %v6026_v5, 16 }
 0x237   : > { %3070 = vrot.lane.b32.xlu1 %v3011_v0, %s6153_s24  ;;  %3068 = vrot.lane.b32.xlu0 %v3007_v48, %s6153_s24  ;;  %v3244_v21 = vrot.slane %v3242_v4, 7 }
 0x238   : > { %v2204_v53 = vor.u32 %v2202_v32, %v7228_v43 }
 0x239   : > { %v7246_v49 = vpop.permute.xlu1 %3917  ;;  %v7248_v2 = vpop.permute.xlu0 %4005  ;;  %v3251_v13 = vsel %vm236_vm2, %v3244_v21, %v3249_v31 }
 0x23b   : > { %3314 = vrot.lane.b32.xlu1 %v3262_v37, %s6155_s26  ;;  %3312 = vrot.lane.b32.xlu0 %v3258_v23, %s6155_s26  ;;  %v2998_v37 = vshll.u32 %v6023_v39, 16  ;;  %v4455_v39 = vld [vmem:[#allocation3 + $0x24] sm:$0xf] }
 0x23d   : > { %v7255_v48 = vpop.permute.xlu1 %4735  ;;  %v7257_v0 = vpop.permute.xlu0 %4639  ;;  %v3000_v63 = vsel %vm236_vm2, %v2993_v52, %v2998_v37  ;;  %v4563_v37 = vrot.slane %v4561_v61, 7  ;;  %v4564_v61 = vshll.u32 %v5613_v29, 16 }
 0x23e   : > { %8462 = vst [vmem:[#allocation15_spill] sm:$0xff] %v7255_v48  ;;  %8463 = vst [vmem:[#allocation16_spill] sm:$0xff] %v7257_v0  ;;  %v4575_v48 = vshll.u32 %v7183_v9, 16  ;;  %v3245_v0 = vshll.u32 %v5497_v58, 16 }
 0x23f   : > { %4891 = vrot.lane.b32.xlu1 %v4832_v19, %s6155_s26  ;;  %3827 = vrot.lane.b32.xlu0 %v3783_v46, %s6153_s24  ;;  %v4570_v43 = vsel %vm236_vm2, %v4563_v37, %v4568_v25  ;;  %v2393_v25 = vshll.u32 %v7102_v47, 16  ;;  %v7325_v47 = vld [vmem:[%s8424_s3 + $0x20] sm:$0xff]  }
 0x240   : > { %v4577_v31 = vor.u32 %v4575_v48, %v7213_v56  ;;  %v3247_v5 = vor.u32 %v3245_v0, %v3244_v21  ;;  %5824 = vmatprep.subr.bf16.mxu0 %v7325_v47 }
 0x241   : > { %v7267_v23 = vpop.permute.xlu1 %2246  ;;  %v7269_v3 = vpop.permute.xlu0 %2244  ;;  %v2395_v21 = vor.u32 %v2393_v25, %v7178_v15 }
 0x243   : > { %2440 = vrot.lane.b32.xlu1 %v2402_v10, %s6155_s26  ;;  %4015 = vrot.lane.b32.xlu0 %v3974_v24, %s6155_s26  ;;  %v2994_v10 = vshll.u32 %v5472_v33, 16  ;;  %v5638_v24 = vcombine.low %v4455_v39, %v7154_v41  ;;  %v6028_v39 = vld [vmem:[#allocation3 + $0x14] ss:$0 sps:$4 sm:$0x11]  }
 0x245   : > { %v7275_v46 = vpop.permute.xlu1 %2434  ;;  %v7277_v19 = vpop.permute.xlu0 %3060  ;;  %v4812_v32 = vshrl.u32 %v5638_v24, 16  ;;  %v4815_v56 = vshll.u32 %v5638_v24, 16  ;;  %v6117_v24 = vld [vmem:[#allocation3 + $0xc] sm:$0xff]  }
 0x246   : > { %8464 = vst [vmem:[#allocation17_spill] sm:$0xff] %v7277_v19 }
 0x247   : > { %3066 = vrot.lane.b32.xlu1 %v3000_v63, %s6153_s24  ;;  %4889 = vrot.lane.b32.xlu0 %v4828_v12, %s6155_s26  ;;  %v2996_v63 = vor.u32 %v2994_v10, %v2993_v52  ;;  %v4819_v52 = vshll.u32 %v7172_v28, 16 }
 0x249   : > { %v7284_v14 = vpop.permute.xlu1 %3821  ;;  %v7286_v45 = vpop.permute.xlu0 %3304 }
 0x24a   : > { %8465 = vst [vmem:[#allocation18_spill] sm:$0xff] %v7286_v45 }
 0x24b   : > { %3310 = vrot.lane.b32.xlu1 %v3251_v13, %s6155_s26  ;;  %2248 = vrot.lane.b32.xlu0 %v2204_v53, %s6153_s24  ;;  %v4814_v53 = vrot.slane %v4812_v32, 7  ;;  %v4566_v13 = vor.u32 %v4564_v61, %v4563_v37  ;;  %v3774_v37 = vshll.u32 %v7163_v22, 16  ;;  %v7340_v61 = vld [vmem:[#allocation3 + $0x48] sm:$0xff]  }
 0x24d   : > { %v7293_v4 = vpop.permute.xlu1 %4009  ;;  %v7295_v12 = vpop.permute.xlu0 %3819  ;;  %v4821_v48 = vsel %vm236_vm2, %v4814_v53, %v4819_v52 }
 0x24f   : > { %4643 = vrot.lane.b32.xlu1 %v4570_v43, %s6153_s24  ;;  %3064 = vrot.lane.b32.xlu0 %v2996_v63, %s6153_s24  ;;  %v4817_v63 = vor.u32 %v4815_v56, %v4814_v53  ;;  %v2866_v53 = vld [vmem:[#allocation3 + $0x48] sm:$0xe] }
 0x251   : > { %v2243_v41 = vpop.permute.xlu1 %2242  ;;  %v7301_v33 = vpop.permute.xlu0 %4007 }
 0x252   : > { %v2460_v9 = vsel %vm1525_vm0, %v6028_v39, %v2243_v41  ;;  %v6022_v39 = vld [vmem:[#allocation3 + $0x20] ss:$0 sps:$4 sm:$0x11]  }
 0x253   : > { %4645 = vrot.lane.b32.xlu1 %v4577_v31, %s6153_s24  ;;  %3308 = vrot.lane.b32.xlu0 %v3247_v5, %s6155_s26  ;;  %v2499_v0 = vsel %vm1559_vm3, %v2460_v9, %v7147_v6 }
 0x254   : > { %v2531_v6 = vsel %vm1593_vm6, %v2499_v0, %v7149_v40  ;;  %v3776_v40 = vor.u32 %v3774_v37, %v7194_v17 }
 0x255   : > { %v7308_v58 = vpop.permute.xlu1 %3062  ;;  %v7310_v10 = vpop.permute.xlu0 %4881  ;;  %v2566_v15 = vshll.u32 %v2531_v6, 16 }
 0x256   : > { %8466 = vst [vmem:[#allocation19_spill] sm:$0xff] %v7308_v58  ;;  %8467 = vst [vmem:[#allocation20_spill] sm:$0xff] %v7310_v10  ;;  %v6061_v58 = vld [vmem:[#allocation3 + $0x5c] ss:$0 sps:$4 sm:$0x11]  }
 0x257   : > { %4887 = vrot.lane.b32.xlu1 %v4821_v48, %s6155_s26  ;;  %4641 = vrot.lane.b32.xlu0 %v4566_v13, %s6153_s24  ;;  %v7348_v13 = vld [vmem:[#allocation3 + $0x4c] sm:$0xf]  ;;  %v2568_v25 = vrot.slane %v2566_v15, 1 }
 0x258   : > { %v5490_v48 = vcombine.low %v2866_v53, %v7348_v13 }
 0x259   : > { %v7318_v28 = vpop.permute.xlu1 %3306  ;;  %v2241_v29 = vpop.permute.xlu0 %2240 }
 0x25a   : > { %8468 = vst [vmem:[#allocation21_spill] sm:$0xff] %v7318_v28  ;;  %v2457_v43 = vsel %vm1525_vm0, %v6117_v24, %v2241_v29  ;;  %v6118_v29 = vld [vmem:[#allocation3 + $0x18] sm:$0xff]   ;;  %v7459_v28 = vld [vmem:[#allocation3 + $0x50] ss:$0 sps:$4 sm:$0x11]  }
 0x25b   : > { %v2497_v32 = vsel %vm1559_vm3, %v2457_v43, %v7111_v34  ;;  %2436 = vrot.lane.b32.xlu1 %v2395_v21, %s6155_s26  ;;  %4885 = vrot.lane.b32.xlu0 %v4817_v63, %s6155_s26  ;;  %v3965_v34 = vshll.u32 %v7141_v44, 16  ;;  %v2462_v21 = vsel %vm1525_vm0, %v6118_v29, %v7269_v3  ;;  %v6033_v3 = vld [vmem:[#allocation3 + $0x50] ss:$0 sps:$4 sm:$0x11]   ;;  %v7369_v43 = vld [vmem:[#allocation3 + $0x48] sm:$0xff]  }
 0x25c   : > { %v2529_v22 = vsel %vm1593_vm6, %v2497_v32, %v7135_v62  ;;  %v2465_v62 = vsel %vm1525_vm0, %v6022_v39, %v7267_v23  ;;  %v2501_v6 = vsel %vm1559_vm3, %v2462_v21, %v7230_v7  ;;  %v7379_v7 = vld [vmem:[#allocation3 + $0x50] ss:$0 sps:$4 sm:$0x11]   ;;  %v2863_v39 = vld [vmem:[#allocation3 + $0x3c] sm:$0xe] }
 0x25d   : > { %v2562_v41 = vshll.u32 %v2529_v22, 16  ;;  %v2431_v31 = vpop.permute.xlu1 %2430  ;;  %v7337_v5 = vpop.permute.xlu0 %3056  ;;  %v2560_v52 = vshrl.u32 %v2529_v22, 16  ;;  %v3967_v44 = vor.u32 %v3965_v34, %v7210_v57  ;;  %v2503_v63 = vsel %vm1559_vm3, %v2465_v62, %v7238_v30  ;;  %v7381_v34 = vld [vmem:[#allocation3 + $0x3c] sm:$0xff]   ;;  %v7389_v62 = vld [vmem:[#allocation3 + $0x48] sm:$0xff]  }
 0x25e   : > { %8469 = vst [vmem:[#allocation22_spill] sm:$0xff] %v7337_v5  ;;  %v2535_v37 = vsel %vm1593_vm6, %v2503_v63, %v2431_v31  ;;  %v6038_v29 = vld [vmem:[#allocation3 + $0x44] ss:$0 sps:$4 sm:$0x11]   ;;  %v6077_v63 = vld [vmem:[%s8424_s3 + $0x28] sm:$0xff]  }
 0x25f   : > { %v2564_v9 = vrot.slane %v2562_v41, 1  ;;  %3823 = vrot.lane.b32.xlu1 %v3776_v40, %s6153_s24  ;;  %2360 = vrot.lane.b32.xlu0 %v7340_v61, %s6159_s9  ;;  %v2576_v32 = vshll.u32 %v2535_v37, 16  ;;  %v3792_v37 = vshrl.u32 %v7389_v62, 16  ;;  %v6067_v5 = vld [vmem:[#allocation3 + $0x68] ss:$0 sps:$4 sm:$0x11]  }
 0x261   : > { %v7350_v17 = vpop.permute.xlu1 %4883  ;;  %v7352_v56 = vpop.permute.xlu0 %3300  ;;  %v2565_v0 = vor.u32 %v2564_v9, %v2560_v52  ;;  %v2578_v53 = vrot.slane %v2576_v32, 1  ;;  %v7387_v9 = vld [vmem:[#allocation3 + $0x40] sm:$0xf] }
 0x262   : > { %8470 = vst [vmem:[#allocation23_spill] sm:$0xff] %v7350_v17  ;;  %8471 = vst [vmem:[#allocation24_spill] sm:$0xff] %v7352_v56  ;;  %v5488_v21 = vcombine.low %v2863_v39, %v7387_v9  ;;  %v7414_v32 = vld [vmem:[#allocation3 + $0x3c] sm:$0xff]   ;;  %v2845_v39 = vld [vmem:[#allocation3 + $0x48] sm:$0xf] }
 0x263   : > { %4011 = vrot.lane.b32.xlu1 %v3967_v44, %s6155_s26  ;;  %3176 = vrot.lane.b32.xlu0 %v5490_v48, %s6159_s9  ;;  %v2569_v23 = vsel %vm818_vm10, %v2565_v0, %v2568_v25  ;;  %v7391_v25 = vld [vmem:[#allocation3 + $0x48] sm:$0xff]  }
 0x264   : > { %5788 = vmatprep.mubr.msk.bf16.mxu0 %vm1627_vm11, %v2569_v23  ;;  %v6025_v23 = vld [vmem:[#allocation3 + $0x20] ss:$0 sps:$4 sm:$0x11]  }
 0x265   : > { %v7365_v57 = vpop.permute.xlu1 %2432  ;;  %v2429_v24 = vpop.permute.xlu0 %2428 }
 0x266   : > { %v2533_v30 = vsel %vm1593_vm6, %v2501_v6, %v2429_v24  ;;  %v2220_v6 = vshrl.u32 %v7391_v25, 16 }
 0x267   : > { %v2572_v22 = vshll.u32 %v2533_v30, 16  ;;  %2362 = vrot.lane.b32.xlu1 %v6033_v3, %s6159_s9  ;;  %3935 = vrot.lane.b32.xlu0 %v7369_v43, %s6159_s9  ;;  %v2570_v15 = vshrl.u32 %v2533_v30, 16  ;;  %v7412_v30 = vld [vmem:[#allocation3 + $0x44] ss:$0 sps:$4 sm:$0x11]  }
 0x269   : > { %v2574_v41 = vrot.slane %v2572_v22, 1  ;;  %v7375_v31 = vpop.permute.xlu1 %3058  ;;  %v7377_v40 = vpop.permute.xlu0 %4877  ;;  %v7416_v22 = vld [vmem:[#allocation3 + $0x3c] sm:$0xff]  }
 0x26a   : > { %8472 = vst [vmem:[#allocation25_spill] sm:$0xff] %v7375_v31  ;;  %8473 = vst [vmem:[#allocation26_spill] sm:$0xff] %v7377_v40  ;;  %v2213_v10 = vshrl.u32 %v7416_v22, 16  ;;  %v6119_v40 = vld [vmem:[#allocation3 + $0x18] sm:$0xff]  }
 0x26b   : > { %v2575_v52 = vor.u32 %v2574_v41, %v2570_v15  ;;  %3178 = vrot.lane.b32.xlu1 %v7379_v7, %s6159_s9  ;;  %2356 = vrot.lane.b32.xlu0 %v7381_v34, %s6159_s9  ;;  %v4039_v15 = vsel %vm1525_vm0, %v6025_v23, %v7284_v14  ;;  %v7420_v41 = vld [vmem:[#allocation3 + $0x4c] sm:$0xf]  ;;  %v4036_v38 = vsel %vm1525_vm0, %v6119_v40, %v7295_v12 }
 0x26c   : > { %v2215_v40 = vrot.slane %v2213_v10, 7 }
 0x26d   : > { %v7393_v44 = vpop.permute.xlu1 %3302  ;;  %v7395_v48 = vpop.permute.xlu0 %2352  ;;  %v2579_v0 = vsel %vm818_vm10, %v2575_v52, %v2578_v53  ;;  %v7426_v53 = vrot.slane %v3792_v37, 7  ;;  %v7428_v52 = vrot.slane %v2220_v6, 7  ;;  %v2411_v37 = vshrl.u32 %v7340_v61, 16 }
 0x26e   : > { %8474 = vst [vmem:[#allocation27_spill] sm:$0xff] %v7393_v44  ;;  %5789 = vmatmul.mubr.msk.bf16.vlgmr.msra.gmra.mrb[16].mxu0 %vm1627_vm11, %v2579_v0  ;;  %v7430_v0 = vld [vmem:[#allocation3 + $0x3c] sm:$0xff]   ;;  %v5475_v6 = vcombine.low %v2845_v39, %v7420_v41 }
 0x26f   : > { %2358 = vrot.lane.b32.xlu1 %v6038_v29, %s6159_s9  ;;  %3172 = vrot.lane.b32.xlu0 %v5488_v21, %s6159_s9  ;;  %v4078_v29 = vsel %vm1559_vm3, %v4039_v15, %v7246_v49  ;;  %v2878_v21 = vld [vmem:[#allocation3 + $0x48] sm:$0xf]  ;;  %v2404_v15 = vshrl.u32 %v7381_v34, 16  ;;  %v3785_v39 = vshrl.u32 %v7430_v0, 16 }
 0x270   : > { %5825 = vmatpush3.bf16.msra.mxu0 %v7325_v47  ;;  %v338_v47 = vld [vmem:[#allocation3 + $0x6c] sm:$0x1]  ;;  %v4110_v49 = vsel %vm1593_vm6, %v4078_v29, %v7248_v2 }
 0x271   : > { %v7408_v24 = vpop.permute.xlu1 %4637  ;;  %v7410_v3 = vpop.permute.xlu0 %3168  ;;  %5826 = vmatprep.subr.bf16.mxu0 %v6077_v63  ;;  %v339_v14 = vsel %vm6692_vm14, 0, %v338_v47  ;;  %v4145_v2 = vshll.u32 %v4110_v49, 16  ;;  %v3031_v49 = vshll.u32 %v7459_v28, 16 }
 0x272   : > { %8475 = vst [vmem:[#allocation28_spill] sm:$0xff] %v7408_v24  ;;  %8476 = vst [vmem:[#allocation29_spill] sm:$0xff] %v7410_v3  ;;  %v3024_v24 = vshrl.u32 %v5475_v6, 16 }
 0x273   : > { %3174 = vrot.lane.b32.xlu1 %v7412_v30, %s6159_s9  ;;  %3931 = vrot.lane.b32.xlu0 %v7414_v32, %s6159_s9  ;;  %340 = vst [vmem:[#allocation3 + $0x6c] sm:$0x1] %v339_v14  ;;  %v4076_v14 = vsel %vm1559_vm3, %v4036_v38, %v7232_v1  ;;  %v4147_v45 = vrot.slane %v4145_v2, 1  ;;  %v2829_v2 = vld [vmem:[#allocation3 + $0x40] sm:$0xf] }
 0x274   : > { %5827 = vmatpush3.bf16.msra.mxu0 %v6077_v63  ;;  %v5500_v63 = vcombine.low %v2878_v21, %v7348_v13  ;;  %v7463_v13 = vrot.slane %v2404_v15, 7  ;;  %v7465_v21 = vrot.slane %v3785_v39, 7 }
 0x275   : > { %v7436_v23 = vpop.permute.xlu1 %4879  ;;  %v7438_v17 = vpop.permute.xlu0 %3927 }
 0x276   : > { %8477 = vst [vmem:[#allocation30_spill] sm:$0xff] %v7436_v23  ;;  %8478 = vst [vmem:[#allocation31_spill] sm:$0xff] %v7438_v17  ;;  %v2413_v23 = vrot.slane %v2411_v37, 7  ;;  %v3275_v1 = vshrl.u32 %v5500_v63, 16 }
 0x277   : > { %3837 = vrot.lane.b32.xlu1 %v7426_v53, %s6153_s24  ;;  %2262 = vrot.lane.b32.xlu0 %v7428_v52, %s6153_s24 }
 0x278   : > { %v3277_v16 = vrot.slane %v3275_v1, 7 }
 0x279   : > { %v4004_v47 = vpop.permute.xlu1 %4003  ;;  %v7456_v12 = vpop.permute.xlu0 %4745 }
 0x27a   : > { %8479 = vst [vmem:[#allocation32_spill] sm:$0xff] %v7456_v12  ;;  %v4108_v3 = vsel %vm1593_vm6, %v4076_v14, %v4004_v47  ;;  %v3026_v47 = vrot.slane %v3024_v24, 7  ;;  %v3027_v14 = vshll.u32 %v5475_v6, 16  ;;  %v3278_v24 = vshll.u32 %v5500_v63, 16 }
 0x27b   : > { %v4141_v29 = vshll.u32 %v4108_v3, 16  ;;  %2258 = vrot.lane.b32.xlu1 %v2215_v40, %s6153_s24  ;;  %2450 = vrot.lane.b32.xlu0 %v2413_v23, %s6155_s26  ;;  %v4139_v38 = vshrl.u32 %v4108_v3, 16  ;;  %v3795_v63 = vshll.u32 %v7389_v62, 16  ;;  %v2216_v62 = vshll.u32 %v7416_v22, 16 }
 0x27c   : > { %v3033_v6 = vsel %vm236_vm2, %v3026_v47, %v3031_v49 }
 0x27d   : > { %v4143_v56 = vrot.slane %v4141_v29, 1  ;;  %v7467_v10 = vpop.permute.xlu1 %2354  ;;  %v7469_v37 = vpop.permute.xlu0 %2348  ;;  %v3029_v29 = vor.u32 %v3027_v14, %v3026_v47  ;;  %v2877_v14 = vld [vmem:[#allocation3 + $0x3c] sm:$0xf] }
 0x27f   : > { %v4144_v27 = vor.u32 %v4143_v56, %v4139_v38  ;;  %2446 = vrot.lane.b32.xlu1 %v7463_v13, %s6155_s26  ;;  %3833 = vrot.lane.b32.xlu0 %v7465_v21, %s6153_s24  ;;  %v3282_v56 = vshll.u32 %v7379_v7, 16  ;;  %v2844_v38 = vld [vmem:[#allocation3 + $0x3c] sm:$0xf] }
 0x280   : > { %v5474_v47 = vcombine.low %v2844_v38, %v2829_v2  ;;  %v7506_v2 = vld [vmem:[#allocation3 + $0x40] sm:$0xf]  ;;  %v4424_v38 = vld [vmem:[#allocation3 + $0x3c] sm:$0xf] }
 0x281   : > { %v7476_v15 = vpop.permute.xlu1 %3170  ;;  %v7478_v3 = vpop.permute.xlu0 %2350  ;;  %v4148_v39 = vsel %vm818_vm10, %v4144_v27, %v4147_v45  ;;  %v3280_v27 = vor.u32 %v3278_v24, %v3277_v16  ;;  %v2223_v45 = vshll.u32 %v7391_v25, 16  ;;  %v3284_v1 = vsel %vm236_vm2, %v3277_v16, %v3282_v56 }
 0x282   : > { %8480 = vst [vmem:[#allocation33_spill] sm:$0xff] %v7476_v15  ;;  %5828 = vmatprep.mubr.msk.bf16.mxu0 %vm1627_vm11, %v4148_v39  ;;  %v2414_v24 = vshll.u32 %v7340_v61, 16  ;;  %v5499_v16 = vcombine.low %v2877_v14, %v7387_v9  ;;  %v3013_v56 = vshrl.u32 %v5474_v47, 16  ;;  %v5615_v14 = vcombine.low %v4424_v38, %v7506_v2 }
 0x283   : > { %3078 = vrot.lane.b32.xlu1 %v3033_v6, %s6153_s24  ;;  %3076 = vrot.lane.b32.xlu0 %v3029_v29, %s6153_s24  ;;  %v2225_v39 = vor.u32 %v2223_v45, %v7428_v52  ;;  %v3797_v29 = vor.u32 %v3795_v63, %v7426_v53  ;;  %v6049_v6 = vld [vmem:[#allocation3 + $0x44] ss:$0 sps:$4 sm:$0x11]   ;;  %v2218_v45 = vor.u32 %v2216_v62, %v2215_v40  ;;  %v2407_v63 = vshll.u32 %v7381_v34, 16 }
 0x284   : > { %v2416_v53 = vor.u32 %v2414_v24, %v2413_v23  ;;  %v3020_v61 = vshll.u32 %v6049_v6, 16  ;;  %v3015_v54 = vrot.slane %v3013_v56, 7  ;;  %v3264_v9 = vshrl.u32 %v5499_v16, 16  ;;  %v7525_v56 = vld [vmem:[#allocation3 + $0x44] ss:$0 sps:$4 sm:$0x11]  }
 0x285   : > { %v7486_v15 = vpop.permute.xlu1 %3929  ;;  %v7488_v44 = vpop.permute.xlu0 %3164  ;;  %v2409_v40 = vor.u32 %v2407_v63, %v7463_v13  ;;  %v3016_v34 = vshll.u32 %v5474_v47, 16  ;;  %v3271_v6 = vshll.u32 %v7412_v30, 16  ;;  %v4583_v55 = vshrl.u32 %v5615_v14, 16 }
 0x286   : > { %v3022_v24 = vsel %vm236_vm2, %v3015_v54, %v3020_v61  ;;  %v3266_v62 = vrot.slane %v3264_v9, 7  ;;  %v4590_v61 = vshll.u32 %v7525_v56, 16 }
 0x287   : > { %3322 = vrot.lane.b32.xlu1 %v3284_v1, %s6155_s26  ;;  %3320 = vrot.lane.b32.xlu0 %v3280_v27, %s6155_s26  ;;  %v369_v1 = vld [vmem:[#allocation3 + $0x74] sm:$0x1]  ;;  %v4585_v47 = vrot.slane %v4583_v55, 7 }
 0x288   : > { %v3273_v13 = vsel %vm236_vm2, %v3266_v62, %v3271_v6 }
 0x289   : > { %v7495_v7 = vpop.permute.xlu1 %4747  ;;  %v7497_v49 = vpop.permute.xlu0 %3923 }
 0x28b   : > { %2260 = vrot.lane.b32.xlu1 %v2225_v39, %s6153_s24  ;;  %3835 = vrot.lane.b32.xlu0 %v3797_v29, %s6153_s24  ;;  %v370_v39 = vsel %vm6804_vm15, 0, %v369_v1  ;;  %v3267_v1 = vshll.u32 %v5499_v16, 16  ;;  %v4592_v16 = vsel %vm236_vm2, %v4585_v47, %v4590_v61  ;;  %vm8532_vm15 = vcmask 31744  }
 0x28c   : > { %371 = vst [vmem:[#allocation3 + $0x74] sm:$0x1] %v370_v39  ;;  %v3788_v39 = vshll.u32 %v7430_v0, 16  ;;  %v3979_v0 = vshll.u32 %v7414_v32, 16  ;;  %vm8533_vm1 = vmmov %vm8532_vm15 }
 0x28d   : > { %v7508_v27 = vpop.permute.xlu1 %3166  ;;  %v7510_v52 = vpop.permute.xlu0 %4741  ;;  %v3269_v9 = vor.u32 %v3267_v1, %v3266_v62  ;;  %v2846_v62 = vld [vmem:[#allocation3 + $0x54] sm:$0xf]  ;;  %vm8535_vm8 = vmmov %vm8533_vm1 }
 0x28e   : > { %8481 = vst [vmem:[#allocation34_spill] sm:$0xff] %v7508_v27  ;;  %v3790_v6 = vor.u32 %v3788_v39, %v7465_v21  ;;  %v7565_v21 = vld [vmem:[#allocation3 + $0x60] sm:$0xff]  }
 0x28f   : > { %2448 = vrot.lane.b32.xlu1 %v2416_v53, %s6155_s26  ;;  %2256 = vrot.lane.b32.xlu0 %v2218_v45, %s6153_s24  ;;  %v3018_v45 = vor.u32 %v3016_v34, %v3015_v54  ;;  %v3976_v54 = vshrl.u32 %v7414_v32, 16  ;;  %8485 = vst [vmem:[#allocation38_spill] sm:$0xff] %v7565_v21  ;;  %v2838_v39 = vld [vmem:[#allocation3 + $0x64] sm:$0xf] }
 0x291   : > { %v7518_v29 = vpop.permute.xlu1 %3925  ;;  %v7520_v23 = vpop.permute.xlu0 %2442 }
 0x293   : > { %3074 = vrot.lane.b32.xlu1 %v3022_v24, %s6153_s24  ;;  %2444 = vrot.lane.b32.xlu0 %v2409_v40, %s6155_s26  ;;  %v4586_v40 = vshll.u32 %v5615_v14, 16  ;;  %v7556_v14 = vld [vmem:[#allocation3 + $0x58] sm:$0xf] }
 0x294   : > { %8483 = vst [vmem:[#allocation36_spill] sm:$0xff] %v7556_v14  ;;  %v7568_v32 = vcombine.low %v2846_v62, %v7556_v14  ;;  %v7578_v62 = vld [vmem:[#allocation3 + $0x5c] ss:$0 sps:$4 sm:$0x11]  }
 0x295   : > { %v7529_v38 = vpop.permute.xlu1 %4743  ;;  %v7531_v53 = vpop.permute.xlu0 %2438  ;;  %v4588_v55 = vor.u32 %v4586_v40, %v4585_v47  ;;  %v2869_v47 = vld [vmem:[#allocation3 + $0x54] sm:$0xe]  ;;  %v2847_v40 = vld [vmem:[#allocation3 + $0x60] sm:$0xf]  ;;  %8487 = vst [vmem:[#allocation40_spill] sm:$0xff] %v7578_v62 }
 0x296   : > { %8482 = vst [vmem:[#allocation35_spill] sm:$0xff] %v7529_v38  ;;  %v2234_v38 = vshrl.u32 %v7565_v21, 16  ;;  %v5477_v27 = vcombine.low %v2847_v40, %v2838_v39  ;;  %v3035_v11 = vshrl.u32 %v7568_v32, 16  ;;  %v3042_v39 = vshll.u32 %v7578_v62, 16 }
 0x297   : > { %3318 = vrot.lane.b32.xlu1 %v3273_v13, %s6155_s26  ;;  %3072 = vrot.lane.b32.xlu0 %v3018_v45, %s6153_s24  ;;  %v7551_v45 = vrot.slane %v3976_v54, 7  ;;  %v2870_v54 = vld [vmem:[#allocation3 + $0x58] sm:$0xf] }
 0x298   : > { %v2236_v19 = vrot.slane %v2234_v38, 7  ;;  %v3046_v51 = vshrl.u32 %v5477_v27, 16  ;;  %v7588_v59 = vrot.slane %v3035_v11, 7  ;;  %v3049_v38 = vshll.u32 %v5477_v27, 16 }
 0x299   : > { %v7537_v30 = vpop.permute.xlu1 %2254  ;;  %v7539_v63 = vpop.permute.xlu0 %3825  ;;  %v3981_v61 = vor.u32 %v3979_v0, %v7551_v45  ;;  %v5492_v0 = vcombine.low %v2869_v47, %v2870_v54  ;;  %v5501_v62 = vcombine.low %v2879_v26, %v2870_v54  ;;  %v2237_v26 = vshll.u32 %v7565_v21, 16 }
 0x29a   : > { %v3048_v42 = vrot.slane %v3046_v51, 7  ;;  %v3044_v11 = vsel %vm236_vm2, %v7588_v59, %v3042_v39  ;;  %v3053_v51 = vshll.u32 %v6067_v5, 16 }
 0x29b   : > { %4651 = vrot.lane.b32.xlu1 %v4592_v16, %s6153_s24  ;;  %3316 = vrot.lane.b32.xlu0 %v3269_v9, %s6155_s26  ;;  %v7563_v9 = vld [vmem:[#allocation3 + $0x54] sm:$0xff]  }
 0x29c   : > { %v2421_v54 = vshll.u32 %v7563_v9, 16 }
 0x29d   : > { %v7546_v34 = vpop.permute.xlu1 %3829  ;;  %v7548_v24 = vpop.permute.xlu0 %4013 }
 0x29f   : > { %3831 = vrot.lane.b32.xlu1 %v3790_v6, %s6153_s24  ;;  %4649 = vrot.lane.b32.xlu0 %v4588_v55, %s6153_s24  ;;  %v6058_v55 = vld [vmem:[#allocation3 + $0x5c] ss:$0 sps:$4 sm:$0x11]  }
 0x2a1   : > { %v7558_v1 = vpop.permute.xlu1 %4017  ;;  %v7560_v13 = vpop.permute.xlu0 %4647 }
 0x2a2   : > { %8484 = vst [vmem:[#allocation37_spill] sm:$0xff] %v7560_v13  ;;  %v7576_v13 = vld [vmem:[#allocation3 + $0x54] sm:$0xff]  }
 0x2a3   : > { %4019 = vrot.lane.b32.xlu1 %v3981_v61, %s6155_s26  ;;  %2364 = vrot.lane.b32.xlu0 %v7563_v9, %s6159_s9  ;;  %8486 = vst [vmem:[#allocation39_spill] sm:$0xff] %v7576_v13  ;;  %v2227_v47 = vshrl.u32 %v7576_v13, 16  ;;  %v2230_v12 = vshll.u32 %v7576_v13, 16 }
 0x2a5   : > { %v2251_v16 = vpop.permute.xlu1 %2250  ;;  %v7573_v6 = vpop.permute.xlu0 %2252 }
 0x2a7   : > { %2366 = vrot.lane.b32.xlu1 %v6058_v55, %s6159_s9  ;;  %3180 = vrot.lane.b32.xlu0 %v5492_v0, %s6159_s9  ;;  %v2229_v0 = vrot.slane %v2227_v47, 7  ;;  %v3051_v47 = vor.u32 %v3049_v38, %v3048_v42  ;;  %v7619_v38 = vld [vmem:[#allocation3 + $0x54] sm:$0xff]  }
 0x2a9   : > { %v7583_v61 = vpop.permute.xlu1 %3070  ;;  %v7585_v14 = vpop.permute.xlu0 %3068  ;;  %v2232_v17 = vor.u32 %v2230_v12, %v2229_v0  ;;  %v2239_v12 = vor.u32 %v2237_v26, %v2236_v19 }
 0x2aa   : > { %8488 = vst [vmem:[#allocation41_spill] sm:$0xff] %v7583_v61  ;;  %v2418_v61 = vshrl.u32 %v7563_v9, 16  ;;  %v3289_v9 = vshll.u32 %v5501_v62, 16 }
 0x2ab   : > { %3182 = vrot.lane.b32.xlu1 %v6061_v58, %s6159_s9  ;;  %2270 = vrot.lane.b32.xlu0 %v2236_v19, %s6153_s24  ;;  %v3983_v19 = vshrl.u32 %v7369_v43, 16 }
 0x2ad   : > { %v7593_v40 = vpop.permute.xlu1 %3314  ;;  %v7595_v55 = vpop.permute.xlu0 %3312 }
 0x2ae   : > { %8489 = vst [vmem:[#allocation42_spill] sm:$0xff] %v7593_v40  ;;  %8490 = vst [vmem:[#allocation43_spill] sm:$0xff] %v7595_v55  ;;  %v2420_v55 = vrot.slane %v2418_v61, 7  ;;  %v3055_v61 = vsel %vm236_vm2, %v3048_v42, %v3053_v51  ;;  %v7628_v42 = vld [vmem:[%s8424_s3 + $0x10] sm:$0xff]   ;;  %v3293_v51 = vshll.u32 %v6061_v58, 16  ;;  %v3038_v58 = vshll.u32 %v7568_v32, 16 }
 0x2af   : > { %2266 = vrot.lane.b32.xlu1 %v2229_v0, %s6153_s24  ;;  %3082 = vrot.lane.b32.xlu0 %v3044_v11, %s6153_s24  ;;  %v3286_v11 = vshrl.u32 %v5501_v62, 16 }
 0x2b0   : > { %v2423_v0 = vor.u32 %v2421_v54, %v2420_v55  ;;  %5804 = vmatprep.subr.bf16.mxu1 %v7628_v42 }
 0x2b1   : > { %v7602_v31 = vpop.permute.xlu1 %4891  ;;  %v7604_v40 = vpop.permute.xlu0 %3827  ;;  %v3288_v21 = vrot.slane %v3286_v11, 7 }
 0x2b2   : > { %8491 = vst [vmem:[#allocation44_spill] sm:$0xff] %v7602_v31  ;;  %v6057_v31 = vld [vmem:[#allocation3 + $0x2c] ss:$0 sps:$4 sm:$0x11]  }
 0x2b3   : > { %2454 = vrot.lane.b32.xlu1 %v2420_v55, %s6155_s26  ;;  %3084 = vrot.lane.b32.xlu0 %v3051_v47, %s6153_s24  ;;  %v2470_v5 = vsel %vm1525_vm0, %v6057_v31, %v2251_v16  ;;  %v2825_v31 = vld [vmem:[#allocation3 + $0x30] sm:$0xe]  ;;  %v3799_v16 = vshrl.u32 %v7619_v38, 16  ;;  %v3291_v26 = vor.u32 %v3289_v9, %v3288_v21  ;;  %v3295_v54 = vsel %vm236_vm2, %v3288_v21, %v3293_v51 }
 0x2b4   : > { %v7652_v9 = vrot.slane %v3983_v19, 7  ;;  %v3986_v21 = vshll.u32 %v7369_v43, 16 }
 0x2b5   : > { %v7609_v27 = vpop.permute.xlu1 %2440  ;;  %v7611_v39 = vpop.permute.xlu0 %4015 }
 0x2b7   : > { %3086 = vrot.lane.b32.xlu1 %v3055_v61, %s6153_s24  ;;  %2264 = vrot.lane.b32.xlu0 %v2232_v17, %s6153_s24  ;;  %v2507_v17 = vsel %vm1559_vm3, %v2470_v5, %v7167_v35  ;;  %v5460_v61 = vcombine.low %v2825_v31, %v7198_v36  ;;  %v3802_v31 = vshll.u32 %v7619_v38, 16 }
 0x2b8   : > { %v2539_v11 = vsel %vm1593_vm6, %v2507_v17, %v7275_v46  ;;  %v4413_v46 = vld [vmem:[#allocation3 + $0x58] sm:$0xf] }
 0x2b9   : > { %v7621_v47 = vpop.permute.xlu1 %3066  ;;  %v7623_v13 = vpop.permute.xlu0 %4889 }
 0x2bb   : > { %2268 = vrot.lane.b32.xlu1 %v2239_v12, %s6153_s24  ;;  %2452 = vrot.lane.b32.xlu0 %v2423_v0, %s6155_s26  ;;  %v4410_v12 = vld [vmem:[#allocation3 + $0x4c] sm:$0xf]  ;;  %v4425_v0 = vld [vmem:[#allocation3 + $0x48] sm:$0xf] }
 0x2bd   : > { %v7637_v62 = vpop.permute.xlu1 %3310  ;;  %v2249_v55 = vpop.permute.xlu0 %2248 }
 0x2be   : > { %v2467_v35 = vsel %vm1525_vm0, %v7204_v18, %v2249_v55  ;;  %v3801_v18 = vrot.slane %v3799_v16, 7  ;;  %v2586_v55 = vshll.u32 %v2539_v11, 16  ;;  %v7663_v16 = vcombine.low %v4425_v0, %v4410_v12  ;;  %v4400_v0 = vld [vmem:[#allocation3 + $0x24] sm:$0xe] }
 0x2bf   : > { %v2505_v5 = vsel %vm1559_vm3, %v2467_v35, %v7165_v50  ;;  %3326 = vrot.lane.b32.xlu1 %v3295_v54, %s6155_s26  ;;  %3324 = vrot.lane.b32.xlu0 %v3291_v26, %s6155_s26  ;;  %v3040_v50 = vor.u32 %v3038_v58, %v7588_v59  ;;  %v4426_v26 = vld [vmem:[#allocation3 + $0x54] sm:$0xf]  ;;  %v6051_v35 = vld [vmem:[#allocation3 + $0x38] ss:$0 sps:$4 sm:$0x11]  }
 0x2c0   : > { %v2537_v32 = vsel %vm1593_vm6, %v2505_v5, %v7365_v57  ;;  %v3345_v57 = vsel %vm1525_vm0, %v5460_v61, %v7585_v14  ;;  %v4403_v54 = vld [vmem:[#allocation3 + $0x30] sm:$0xe]  ;;  %v3988_v5 = vor.u32 %v3986_v21, %v7652_v9  ;;  %v7668_v59 = vcombine.low %v4426_v26, %v4413_v46  ;;  %v6120_v46 = vld [vmem:[#allocation3 + $0x34] sm:$0xf] }
 0x2c1   : > { %v2582_v51 = vshll.u32 %v2537_v32, 16  ;;  %v7655_v36 = vpop.permute.xlu1 %4643  ;;  %v7657_v17 = vpop.permute.xlu0 %3064  ;;  %v2580_v43 = vshrl.u32 %v2537_v32, 16  ;;  %v3381_v11 = vsel %vm1559_vm3, %v3345_v57, %v7488_v44  ;;  %v3804_v14 = vor.u32 %v3802_v31, %v3801_v18  ;;  %v6069_v26 = vld [vmem:[#allocation3 + $0x44] ss:$0 sps:$4 sm:$0x11]  }
 0x2c2   : > { %8492 = vst [vmem:[#allocation45_spill] sm:$0xff] %v7655_v36  ;;  %v2588_v12 = vrot.slane %v2586_v55, 1  ;;  %v2475_v32 = vsel %vm1525_vm0, %v6051_v35, %v7537_v30  ;;  %v4594_v21 = vshrl.u32 %v7663_v16, 16  ;;  %v5598_v31 = vcombine.low %v4400_v0, %v7265_v8  ;;  %v6121_v35 = vld [vmem:[#allocation3 + $0x30] sm:$0xff]  }
 0x2c3   : > { %3080 = vrot.lane.b32.xlu1 %v3040_v50, %s6153_s24  ;;  %3841 = vrot.lane.b32.xlu0 %v3801_v18, %s6153_s24  ;;  %v2584_v19 = vrot.slane %v2582_v51, 1  ;;  %v6071_v50 = vld [vmem:[#allocation3 + $0x50] ss:$0 sps:$4 sm:$0x11]   ;;  %v5600_v18 = vcombine.low %v4403_v54, %v6120_v46  ;;  %v2511_v30 = vsel %vm1559_vm3, %v2475_v32, %v7478_v3 }
 0x2c4   : > { %v4601_v57 = vshll.u32 %v6071_v50, 16  ;;  %v4596_v8 = vrot.slane %v4594_v21, 7  ;;  %v2543_v3 = vsel %vm1593_vm6, %v2511_v30, %v7531_v53  ;;  %v4457_v53 = vld [vmem:[#allocation3 + $0x3c] sm:$0xf] }
 0x2c5   : > { %v4646_v58 = vpop.permute.xlu1 %4645  ;;  %v3309_v36 = vpop.permute.xlu0 %3308  ;;  %v2585_v61 = vor.u32 %v2584_v19, %v2580_v43  ;;  %v4605_v43 = vshrl.u32 %v7668_v59, 16  ;;  %v6052_v19 = vld [vmem:[#allocation3 + $0x2c] ss:$0 sps:$4 sm:$0x11]   ;;  %v4441_v30 = vld [vmem:[#allocation3 + $0x3c] sm:$0xe] }
 0x2c6   : > { %v7675_v51 = vsel %vm1593_vm6, %v3381_v11, %v3309_v36  ;;  %v4921_v54 = vsel %vm1525_vm0, %v5600_v18, %v4646_v58  ;;  %v2596_v18 = vshll.u32 %v2543_v3, 16  ;;  %v6123_v3 = vld [vmem:[#allocation3 + $0x24] sm:$0xff]  }
 0x2c7   : > { %3839 = vrot.lane.b32.xlu1 %v3804_v14, %s6153_s24  ;;  %4023 = vrot.lane.b32.xlu0 %v3988_v5, %s6155_s26  ;;  %v2589_v44 = vsel %vm818_vm10, %v2585_v61, %v2588_v12  ;;  %v2472_v5 = vsel %vm1525_vm0, %v6121_v35, %v7573_v6  ;;  %v6055_v14 = vld [vmem:[#allocation3 + $0x38] ss:$0 sps:$4 sm:$0x11]   ;;  %v4044_v61 = vsel %vm1525_vm0, %v6052_v19, %v7539_v63  ;;  %v6070_v12 = vld [vmem:[#allocation3 + $0x50] ss:$0 sps:$4 sm:$0x11]  }
 0x2c8   : > { %5792 = vmatprep.mubr.msk.bf16.mxu1 %vm1627_vm11, %v2589_v44  ;;  %v4597_v6 = vshll.u32 %v7663_v16, 16  ;;  %v2509_v0 = vsel %vm1559_vm3, %v2472_v5, %v7469_v37  ;;  %v4958_v50 = vsel %vm1559_vm3, %v4921_v54, %v7510_v52  ;;  %v7706_v21 = vrot.slane %v4605_v43, 7  ;;  %v4442_v44 = vld [vmem:[#allocation3 + $0x40] sm:$0xf]  ;;  %v4458_v5 = vld [vmem:[#allocation3 + $0x48] sm:$0xf] }
 0x2c9   : > { %v7685_v55 = vpop.permute.xlu1 %4887  ;;  %v4642_v36 = vpop.permute.xlu0 %4641  ;;  %v4049_v63 = vsel %vm1525_vm0, %v6055_v14, %v7546_v34  ;;  %v4603_v37 = vsel %vm236_vm2, %v4596_v8, %v4601_v57  ;;  %v4082_v52 = vsel %vm1559_vm3, %v4044_v61, %v7190_v20  ;;  %v4445_v20 = vld [vmem:[#allocation3 + $0x4c] sm:$0xf]  ;;  %v6122_v14 = vld [vmem:[#allocation3 + $0x30] sm:$0xff]  }
 0x2ca   : > { %v7692_v11 = vsel %vm1525_vm0, %v5598_v31, %v4642_v36  ;;  %v7720_v36 = vcombine.low %v4457_v53, %v4442_v44  ;;  %v4086_v34 = vsel %vm1559_vm3, %v4049_v63, %v7518_v29  ;;  %v4114_v54 = vsel %vm1593_vm6, %v4082_v52, %v7293_v4  ;;  %v7732_v29 = vld [vmem:[#allocation3 + $0x5c] ss:$0 sps:$4 sm:$0x11]  }
 0x2cb   : > { %3933 = vrot.lane.b32.xlu1 %v6069_v26, %s6159_s9  ;;  %4021 = vrot.lane.b32.xlu0 %v7551_v45, %s6155_s26  ;;  %v4608_v45 = vshll.u32 %v7668_v59, 16  ;;  %v4599_v59 = vor.u32 %v4597_v6, %v4596_v8  ;;  %v4046_v8 = vsel %vm1525_vm0, %v6122_v14, %v7604_v40  ;;  %v4118_v4 = vsel %vm1593_vm6, %v4086_v34, %v7548_v24  ;;  %v6112_v24 = vld [vmem:[%s8424_s3 + $0x18] sm:$0xff]  }
 0x2cc   : > { %v4165_v52 = vshll.u32 %v4118_v4, 16  ;;  %v6081_v4 = vld [vmem:[#allocation3 + $0x44] ss:$0 sps:$4 sm:$0x11]  }
 0x2cd   : > { %v2437_v58 = vpop.permute.xlu1 %2436  ;;  %v4886_v32 = vpop.permute.xlu0 %4885  ;;  %v4610_v35 = vor.u32 %v4608_v45, %v7706_v21  ;;  %v4155_v45 = vshll.u32 %v4114_v54, 16 }
 0x2ce   : > { %v2541_v46 = vsel %vm1593_vm6, %v2509_v0, %v2437_v58  ;;  %v7713_v16 = vsel %vm1593_vm6, %v4958_v50, %v4886_v32  ;;  %v5628_v0 = vcombine.low %v4441_v30, %v4442_v44  ;;  %v5641_v50 = vcombine.low %v4458_v5, %v4445_v20  ;;  %v4444_v44 = vld [vmem:[#allocation3 + $0x48] sm:$0xe] }
 0x2cf   : > { %v2592_v31 = vshll.u32 %v2541_v46, 16  ;;  %3937 = vrot.lane.b32.xlu1 %v6070_v12, %s6159_s9  ;;  %4655 = vrot.lane.b32.xlu0 %v4603_v37, %s6153_s24  ;;  %v2590_v26 = vshrl.u32 %v2541_v46, 16  ;;  %v2598_v12 = vrot.slane %v2596_v18, 1  ;;  %v4834_v32 = vshrl.u32 %v7720_v36, 16 }
 0x2d0   : > { %v4612_v18 = vshll.u32 %v7732_v29, 16 }
 0x2d1   : > { %v2594_v43 = vrot.slane %v2592_v31, 1  ;;  %v3824_v19 = vpop.permute.xlu1 %3823  ;;  %v7724_v57 = vpop.permute.xlu0 %2360  ;;  %v4836_v34 = vrot.slane %v4834_v32, 7 }
 0x2d2   : > { %v4041_v61 = vsel %vm1525_vm0, %v6123_v3, %v3824_v19  ;;  %v4157_v19 = vrot.slane %v4155_v45, 1  ;;  %v7763_v3 = vld [vmem:[#allocation3 + $0x60] sm:$0xff]  }
 0x2d3   : > { %v2595_v6 = vor.u32 %v2594_v43, %v2590_v26  ;;  %v4080_v58 = vsel %vm1559_vm3, %v4041_v61, %v7192_v60  ;;  %4653 = vrot.lane.b32.xlu1 %v4599_v59, %s6153_s24  ;;  %4657 = vrot.lane.b32.xlu0 %v4610_v35, %s6153_s24  ;;  %v4084_v60 = vsel %vm1559_vm3, %v4046_v8, %v7497_v49  ;;  %v4837_v26 = vshll.u32 %v7720_v36, 16 }
 0x2d4   : > { %v4112_v40 = vsel %vm1593_vm6, %v4080_v58, %v7301_v33  ;;  %v5630_v49 = vcombine.low %v4444_v44, %v4445_v20  ;;  %v4845_v43 = vshrl.u32 %v5641_v50, 16  ;;  %v4614_v36 = vsel %vm236_vm2, %v7706_v21, %v4612_v18 }
 0x2d5   : > { %v4151_v53 = vshll.u32 %v4112_v40, 16  ;;  %v4012_v63 = vpop.permute.xlu1 %4011  ;;  %v7745_v46 = vpop.permute.xlu0 %3176  ;;  %v2599_v37 = vsel %vm818_vm10, %v2595_v6, %v2598_v12  ;;  %v4149_v31 = vshrl.u32 %v4112_v40, 16  ;;  %v4848_v12 = vshll.u32 %v5641_v50, 16  ;;  %v7786_v50 = vld [vmem:[#allocation3 + $0x6c] sm:$0xff]  }
 0x2d6   : > { %v4116_v33 = vsel %vm1593_vm6, %v4084_v60, %v4012_v63  ;;  %5793 = vmatmul.mubr.msk.bf16.vlgmr.msra.gmra.mrb[0].mxu1 %vm1627_vm11, %v2599_v37  ;;  %v4839_v21 = vor.u32 %v4837_v26, %v4836_v34  ;;  %v4847_v40 = vrot.slane %v4845_v43, 7  ;;  %v3806_v32 = vshrl.u32 %v7763_v3, 16  ;;  %8493 = vst [vmem:[#allocation46_spill] sm:$0xff] %v7786_v50  ;;  %v6082_v63 = vld [vmem:[#allocation3 + $0x50] ss:$0 sps:$4 sm:$0x11]  }
 0x2d7   : > { %v4153_v59 = vrot.slane %v4151_v53, 1  ;;  %v4161_v30 = vshll.u32 %v4116_v33, 16  ;;  %4025 = vrot.lane.b32.xlu1 %v7652_v9, %s6155_s26  ;;  %4749 = vrot.lane.b32.xlu0 %v5628_v0, %s6159_s9  ;;  %v4159_v5 = vshrl.u32 %v4116_v33, 16  ;;  %v7768_v9 = vld [vmem:[%s8424_s3 + $0x30] sm:$0xff]   ;;  %v3809_v44 = vshll.u32 %v7763_v3, 16 }
 0x2d8   : > { %5805 = vmatpush3.bf16.msra.mxu1 %v7628_v42  ;;  %v4167_v42 = vrot.slane %v4165_v52, 1  ;;  %v4850_v60 = vor.u32 %v4848_v12, %v4847_v40  ;;  %v3808_v37 = vrot.slane %v3806_v32, 7  ;;  %v3813_v33 = vshrl.u32 %v7786_v50, 16  ;;  %v7811_v12 = vld [vmem:[#allocation3 + $0x64] sm:$0xf] }
 0x2d9   : > { %v4154_v35 = vor.u32 %v4153_v59, %v4149_v31  ;;  %v4163_v54 = vrot.slane %v4161_v30, 1  ;;  %v7759_v14 = vpop.permute.xlu1 %2362  ;;  %v7761_v8 = vpop.permute.xlu0 %3935  ;;  %5806 = vmatprep.subr.bf16.mxu1 %v6112_v24  ;;  %v4852_v30 = vshll.u32 %v6082_v63, 16  ;;  %v3816_v26 = vshll.u32 %v7786_v50, 16  ;;  %8494 = vst [vmem:[#allocation47_spill] sm:$0xff] %v7811_v12 }
 0x2da   : > { %v3811_v31 = vor.u32 %v3809_v44, %v3808_v37 }
 0x2db   : > { %v4164_v20 = vor.u32 %v4163_v54, %v4159_v5  ;;  %4659 = vrot.lane.b32.xlu1 %v4614_v36, %s6153_s24  ;;  %4753 = vrot.lane.b32.xlu0 %v5630_v49, %s6159_s9  ;;  %v4158_v61 = vsel %vm818_vm10, %v4154_v35, %v4157_v19  ;;  %v3815_v49 = vrot.slane %v3813_v33, 7  ;;  %v6086_v35 = vld [vmem:[#allocation3 + $0x54] sm:$0xff]   ;;  %v6089_v5 = vld [vmem:[#allocation3 + $0x60] sm:$0xff]   ;;  %v4854_v54 = vsel %vm236_vm2, %v4847_v40, %v4852_v30 }
 0x2dc   : > { %5829 = vmatmul.mubr.msk.bf16.vlgmr.msra.gmra.mrb[20].mxu0 %vm1627_vm11, %v4158_v61  ;;  %5807 = vmatpush3.bf16.msra.mxu1 %v6112_v24  ;;  %v4841_v24 = vshll.u32 %v6081_v4, 16  ;;  %v3997_v61 = vshrl.u32 %v6089_v5, 16  ;;  %v3993_v44 = vshll.u32 %v6086_v35, 16  ;;  %v4000_v33 = vshll.u32 %v6089_v5, 16 }
 0x2dd   : > { %v7776_v6 = vpop.permute.xlu1 %3178  ;;  %v7778_v58 = vpop.permute.xlu0 %2356  ;;  %v4168_v0 = vsel %vm818_vm10, %v4164_v20, %v4167_v42  ;;  %5844 = vmatprep.subr.bf16.mxu1 %v7768_v9  ;;  %v3990_v20 = vshrl.u32 %v6086_v35, 16 }
 0x2de   : > { %5832 = vmatprep.mubr.msk.bf16.mxu0 %vm1627_vm11, %v4168_v0  ;;  %v4843_v59 = vsel %vm236_vm2, %v4836_v34, %v4841_v24  ;;  %v3818_v34 = vor.u32 %v3816_v26, %v3815_v49  ;;  %v4427_v0 = vld [vmem:[#allocation3 + $0x60] sm:$0xf]  ;;  %v7819_v24 = vrot.slane %v3997_v61, 7 }
 0x2df   : > { %4751 = vrot.lane.b32.xlu1 %v6081_v4, %s6159_s9  ;;  %4893 = vrot.lane.b32.xlu0 %v4839_v21, %s6155_s26  ;;  %v7813_v4 = vld [vmem:[#allocation3 + $0x70] sm:$0xf]  ;;  %v4428_v21 = vld [vmem:[#allocation3 + $0x6c] sm:$0xf] }
 0x2e0   : > { %8495 = vst [vmem:[#allocation48_spill] sm:$0xff] %v7813_v4  ;;  %v4002_v50 = vor.u32 %v4000_v33, %v7819_v24 }
 0x2e1   : > { %v7788_v45 = vpop.permute.xlu1 %2358  ;;  %v3173_v53 = vpop.permute.xlu0 %3172 }
 0x2e3   : > { %4755 = vrot.lane.b32.xlu1 %v6082_v63, %s6159_s9  ;;  %4897 = vrot.lane.b32.xlu0 %v4850_v60, %s6155_s26  ;;  %v2831_v63 = vld [vmem:[#allocation3 + $0x48] sm:$0xe]  ;;  %v3992_v60 = vrot.slane %v3990_v20, 7  ;;  %v7830_v20 = vld [vmem:[#allocation3 + $0x68] ss:$0 sps:$4 sm:$0x11]  }
 0x2e4   : > { %v5464_v30 = vcombine.low %v2831_v63, %v7420_v41  ;;  %8496 = vst [vmem:[#allocation49_spill] sm:$0xff] %v7830_v20  ;;  %v6087_v63 = vld [vmem:[#allocation3 + $0x44] ss:$0 sps:$4 sm:$0x11]   ;;  %v4623_v33 = vshll.u32 %v7830_v20, 16 }
 0x2e5   : > { %v3175_v18 = vpop.permute.xlu1 %3174  ;;  %v7794_v52 = vpop.permute.xlu0 %3931 }
 0x2e7   : > { %4895 = vrot.lane.b32.xlu1 %v4843_v59, %s6155_s26  ;;  %3843 = vrot.lane.b32.xlu0 %v3811_v31, %s6153_s24  ;;  %v5618_v31 = vcombine.low %v4427_v0, %v7811_v12  ;;  %v5619_v59 = vcombine.low %v4428_v21, %v7813_v4  ;;  %v6085_v4 = vld [vmem:[#allocation3 + $0x50] ss:$0 sps:$4 sm:$0x11]  }
 0x2e9   : > { %v7800_v43 = vpop.permute.xlu1 %3837  ;;  %v7802_v19 = vpop.permute.xlu0 %2262  ;;  %v4616_v61 = vshrl.u32 %v5618_v31, 16 }
 0x2eb   : > { %4899 = vrot.lane.b32.xlu1 %v4854_v54, %s6155_s26  ;;  %3939 = vrot.lane.b32.xlu0 %v6086_v35, %s6159_s9 }
 0x2ed   : > { %v2259_v36 = vpop.permute.xlu1 %2258  ;;  %v7807_v42 = vpop.permute.xlu0 %2450 }
 0x2ef   : > { %3847 = vrot.lane.b32.xlu1 %v3818_v34, %s6153_s24  ;;  %3943 = vrot.lane.b32.xlu0 %v6089_v5, %s6159_s9  ;;  %v3995_v34 = vor.u32 %v3993_v44, %v3992_v60  ;;  %v4618_v44 = vrot.slane %v4616_v61, 7 }
 0x2f1   : > { %v7815_v40 = vpop.permute.xlu1 %2446  ;;  %v7817_v32 = vpop.permute.xlu0 %3833  ;;  %v4625_v61 = vsel %vm236_vm2, %v4618_v44, %v4623_v33 }
 0x2f3   : > { %3845 = vrot.lane.b32.xlu1 %v3808_v37, %s6153_s24  ;;  %3849 = vrot.lane.b32.xlu0 %v3815_v49, %s6153_s24  ;;  %v4627_v37 = vshrl.u32 %v5619_v59, 16 }
 0x2f5   : > { %v3079_v26 = vpop.permute.xlu1 %3078  ;;  %v3077_v54 = vpop.permute.xlu0 %3076 }
 0x2f6   : > { %v3357_v35 = vsel %vm1525_vm0, %v7459_v28, %v3079_v26  ;;  %v3355_v5 = vsel %vm1525_vm0, %v5464_v30, %v3077_v54  ;;  %v6092_v28 = vld [vmem:[#allocation3 + $0x5c] ss:$0 sps:$4 sm:$0x11]   ;;  %v4630_v30 = vshll.u32 %v5619_v59, 16  ;;  %v4448_v26 = vld [vmem:[#allocation3 + $0x58] sm:$0xf] }
 0x2f7   : > { %4027 = vrot.lane.b32.xlu1 %v3995_v34, %s6155_s26  ;;  %4031 = vrot.lane.b32.xlu0 %v4002_v50, %s6155_s26  ;;  %v7835_v41 = vsel %vm1559_vm3, %v3357_v35, %v3175_v18  ;;  %v7838_v49 = vsel %vm1559_vm3, %v3355_v5, %v3173_v53  ;;  %v4629_v50 = vrot.slane %v4627_v37, 7  ;;  %v2480_v18 = vsel %vm1525_vm0, %v6087_v63, %v2259_v36  ;;  %v6093_v34 = vld [vmem:[#allocation3 + $0x68] ss:$0 sps:$4 sm:$0x11]   ;;  %v4459_v5 = vld [vmem:[#allocation3 + $0x54] sm:$0xf] }
 0x2f8   : > { %v4619_v35 = vshll.u32 %v5618_v31, 16  ;;  %v2515_v20 = vsel %vm1559_vm3, %v2480_v18, %v7467_v10  ;;  %v4451_v59 = vld [vmem:[#allocation3 + $0x64] sm:$0xf]  ;;  %v2485_v36 = vsel %vm1525_vm0, %v6085_v4, %v7802_v19  ;;  %v5642_v37 = vcombine.low %v4459_v5, %v4448_v26  ;;  %v4460_v31 = vld [vmem:[#allocation3 + $0x60] sm:$0xf] }
 0x2f9   : > { %v7840_v0 = vpop.permute.xlu1 %3322  ;;  %v7842_v21 = vpop.permute.xlu0 %3320  ;;  %v2547_v10 = vsel %vm1593_vm6, %v2515_v20, %v7520_v23  ;;  %v2519_v19 = vsel %vm1559_vm3, %v2485_v36, %v7788_v45 }
 0x2fa   : > { %v4621_v33 = vor.u32 %v4619_v35, %v4618_v44  ;;  %v4450_v44 = vld [vmem:[#allocation3 + $0x60] sm:$0xe]  ;;  %v5643_v35 = vcombine.low %v4460_v31, %v4451_v59  ;;  %v2551_v23 = vsel %vm1593_vm6, %v2519_v19, %v7815_v40  ;;  %v2606_v20 = vshll.u32 %v2547_v10, 16 }
 0x2fb   : > { %3941 = vrot.lane.b32.xlu1 %v6092_v28, %s6159_s9  ;;  %4029 = vrot.lane.b32.xlu0 %v3992_v60, %s6155_s26  ;;  %v4632_v60 = vor.u32 %v4630_v30, %v4629_v50  ;;  %v7857_v28 = vld [vmem:[#allocation3 + $0x74] ss:$0 sps:$4 sm:$0x11]   ;;  %v5634_v36 = vcombine.low %v4450_v44, %v4451_v59  ;;  %v2616_v31 = vshll.u32 %v2551_v23, 16  ;;  %v4859_v19 = vshll.u32 %v5642_v37, 16 }
 0x2fc   : > { %v6090_v44 = vld [vmem:[#allocation3 + $0x44] ss:$0 sps:$4 sm:$0x11]  }
 0x2fd   : > { %v2261_v53 = vpop.permute.xlu1 %2260  ;;  %v7848_v54 = vpop.permute.xlu0 %3835 }
 0x2fe   : > { %v2482_v18 = vsel %vm1525_vm0, %v7391_v25, %v2261_v53 }
 0x2ff   : > { %3945 = vrot.lane.b32.xlu1 %v6093_v34, %s6159_s9  ;;  %4663 = vrot.lane.b32.xlu0 %v4625_v61, %s6153_s24  ;;  %v4447_v34 = vld [vmem:[#allocation3 + $0x54] sm:$0xe] }
 0x300   : > { %v5632_v61 = vcombine.low %v4447_v34, %v4448_v26 }
 0x301   : > { %v7859_v63 = vpop.permute.xlu1 %2448  ;;  %v2257_v12 = vpop.permute.xlu0 %2256 }
 0x302   : > { %v2477_v30 = vsel %vm1525_vm0, %v7416_v22, %v2257_v12  ;;  %v4634_v22 = vshll.u32 %v7857_v28, 16  ;;  %v4856_v12 = vshrl.u32 %v5642_v37, 16  ;;  %v4054_v37 = vsel %vm1525_vm0, %v6090_v44, %v7817_v32 }
 0x303   : > { %v2513_v4 = vsel %vm1559_vm3, %v2477_v30, %v7395_v48  ;;  %4661 = vrot.lane.b32.xlu1 %v4621_v33, %s6153_s24  ;;  %4665 = vrot.lane.b32.xlu0 %v4632_v60, %s6153_s24  ;;  %v2517_v48 = vsel %vm1559_vm3, %v2482_v18, %v7778_v58  ;;  %v2608_v58 = vrot.slane %v2606_v20, 1  ;;  %v4090_v32 = vsel %vm1559_vm3, %v4054_v37, %v7486_v15 }
 0x304   : > { %v2545_v25 = vsel %vm1593_vm6, %v2513_v4, %v7609_v27  ;;  %v4636_v27 = vsel %vm236_vm2, %v4629_v50, %v4634_v22  ;;  %v4858_v10 = vrot.slane %v4856_v12, 7  ;;  %v4867_v4 = vshrl.u32 %v5643_v35, 16  ;;  %v4406_v22 = vld [vmem:[#allocation3 + $0x3c] sm:$0xe] }
 0x305   : > { %v2602_v45 = vshll.u32 %v2545_v25, 16  ;;  %v7878_v53 = vpop.permute.xlu1 %3074  ;;  %v2445_v5 = vpop.permute.xlu0 %2444  ;;  %v2600_v40 = vshrl.u32 %v2545_v25, 16  ;;  %v2618_v25 = vrot.slane %v2616_v31, 1  ;;  %v4122_v15 = vsel %vm1593_vm6, %v4090_v32, %v7558_v1 }
 0x306   : > { %v2549_v60 = vsel %vm1593_vm6, %v2517_v48, %v2445_v5  ;;  %v6103_v5 = vld [vmem:[#allocation3 + $0x5c] ss:$0 sps:$4 sm:$0x11]  }
 0x307   : > { %v2604_v33 = vrot.slane %v2602_v45, 1  ;;  %v2612_v30 = vshll.u32 %v2549_v60, 16  ;;  %4033 = vrot.lane.b32.xlu1 %v7819_v24, %s6155_s26  ;;  %4757 = vrot.lane.b32.xlu0 %v5632_v61, %s6159_s9  ;;  %v2610_v18 = vshrl.u32 %v2549_v60, 16  ;;  %v4869_v61 = vrot.slane %v4867_v4, 7 }
 0x308   : > { %v4870_v60 = vshll.u32 %v5643_v35, 16  ;;  %v5602_v35 = vcombine.low %v4406_v22, %v7506_v2  ;;  %v4863_v4 = vshll.u32 %v6103_v5, 16  ;;  %v8499_v2 = vld [vmem:[#allocation31_spill] sm:$0xff] }
 0x309   : > { %v2614_v26 = vrot.slane %v2612_v30, 1  ;;  %v3319_v34 = vpop.permute.xlu1 %3318  ;;  %v7887_v48 = vpop.permute.xlu0 %3072  ;;  %v2605_v59 = vor.u32 %v2604_v33, %v2600_v40 }
 0x30a   : > { %v3423_v23 = vsel %vm1593_vm6, %v7835_v41, %v3319_v34  ;;  %v4861_v41 = vor.u32 %v4859_v19, %v4858_v10  ;;  %v6105_v19 = vld [vmem:[#allocation3 + $0x68] ss:$0 sps:$4 sm:$0x11]  }
 0x30b   : > { %v2615_v24 = vor.u32 %v2614_v26, %v2610_v18  ;;  %4667 = vrot.lane.b32.xlu1 %v4636_v27, %s6153_s24  ;;  %4761 = vrot.lane.b32.xlu0 %v5634_v36, %s6159_s9  ;;  %v2609_v50 = vsel %vm818_vm10, %v2605_v59, %v2608_v58  ;;  %v3464_v40 = vrot.slane %v3423_v23, 1  ;;  %v8498_v18 = vld [vmem:[#allocation44_spill] sm:$0xff] }
 0x30c   : > { %5796 = vmatprep.mubr.msk.bf16.mxu1 %vm1627_vm11, %v2609_v50  ;;  %v6124_v26 = vld [vmem:[#allocation3 + $0x3c] sm:$0xff]   ;;  %v4175_v50 = vshll.u32 %v4122_v15, 16 }
 0x30d   : > { %v4652_v12 = vpop.permute.xlu1 %4651  ;;  %v3317_v20 = vpop.permute.xlu0 %3316  ;;  %v2619_v45 = vsel %vm818_vm10, %v2615_v24, %v2618_v25  ;;  %v8500_v23 = vld [vmem:[#allocation32_spill] sm:$0xff] }
 0x30e   : > { %v4928_v31 = vsel %vm1525_vm0, %v7525_v56, %v4652_v12  ;;  %v3421_v36 = vsel %vm1593_vm6, %v7838_v49, %v3317_v20  ;;  %5797 = vmatmul.mubr.msk.bf16.gmra.mrb[4].mxu1 %vm1627_vm11, %v2619_v45  ;;  %v4872_v49 = vor.u32 %v4870_v60, %v4869_v61 }
 0x30f   : > { %v4964_v33 = vsel %vm1559_vm3, %v4928_v31, %v7495_v7  ;;  %v3463_v30 = vrot.slane %v3421_v36, 1  ;;  %4759 = vrot.lane.b32.xlu1 %v6103_v5, %s6159_s9  ;;  %4901 = vrot.lane.b32.xlu0 %v4861_v41, %s6155_s26  ;;  %v4865_v5 = vsel %vm236_vm2, %v4858_v10, %v4863_v4  ;;  %v4874_v41 = vshll.u32 %v6105_v19, 16 }
 0x310   : > { %v4996_v7 = vsel %vm1593_vm6, %v4964_v33, %v8498_v18  ;;  %v2816_v18 = vld [vmem:[#allocation3 + $0xc] sm:$0xe] }
 0x311   : > { %v3832_v56 = vpop.permute.xlu1 %3831  ;;  %v4650_v27 = vpop.permute.xlu0 %4649  ;;  %v7911_v58 = vsel %vm8497_vm4, %v3463_v30, %v3464_v40  ;;  %v5039_v37 = vrot.slane %v4996_v7, 1  ;;  %v4876_v33 = vsel %vm236_vm2, %v4869_v61, %v4874_v41  ;;  %v6106_v7 = vld [vmem:[#allocation3 + $0x68] ss:$0 sps:$4 sm:$0x11]   ;;  %v2819_v41 = vld [vmem:[#allocation3 + $0x18] sm:$0xe]  ;;  %vm8518_vm2 = vmmov %vm8497_vm4 }
 0x312   : > { %v4051_v34 = vsel %vm1525_vm0, %v6124_v26, %v3832_v56  ;;  %v4926_v59 = vsel %vm1525_vm0, %v5602_v35, %v4650_v27  ;;  %v6125_v26 = vld [vmem:[#allocation3 + $0x10] sm:$0xf]  ;;  %vm8523_vm12 = vmmov %vm8518_vm2 }
 0x313   : > { %v4088_v44 = vsel %vm1559_vm3, %v4051_v34, %v8499_v2  ;;  %v4962_v25 = vsel %vm1559_vm3, %v4926_v59, %v8500_v23  ;;  %4763 = vrot.lane.b32.xlu1 %v6105_v19, %s6159_s9  ;;  %4905 = vrot.lane.b32.xlu0 %v4872_v49, %s6155_s26  ;;  %v6107_v19 = vld [vmem:[#allocation3 + $0x5c] ss:$0 sps:$4 sm:$0x11]   ;;  %v5454_v34 = vcombine.low %v2816_v18, %v6125_v26  ;;  %v8502_v23 = vld [vmem:[#allocation25_spill] sm:$0xff]  ;;  %vm8526_vm13 = vmmov %vm8518_vm2 }
 0x314   : > { %v4120_v1 = vsel %vm1593_vm6, %v4088_v44, %v7611_v39  ;;  %v4994_v24 = vsel %vm1593_vm6, %v4962_v25, %v7623_v13  ;;  %v4177_v39 = vrot.slane %v4175_v50, 1  ;;  %v6126_v44 = vld [vmem:[#allocation3 + $0x14] ss:$0 sps:$4 sm:$0x11]   ;;  %v8507_v18 = vld [vmem:[#allocation4_spill] sm:$0xff]  ;;  %vm8529_vm14 = vmmov %vm8518_vm2 }
 0x315   : > { %v4171_v22 = vshll.u32 %v4120_v1, 16  ;;  %v5038_v12 = vrot.slane %v4994_v24, 1  ;;  %v7929_v20 = vpop.permute.xlu1 %4019  ;;  %v2365_v45 = vpop.permute.xlu0 %2364  ;;  %v4169_v60 = vshrl.u32 %v4120_v1, 16  ;;  %v3332_v25 = vsel %vm1525_vm0, %v6126_v44, %v8502_v23  ;;  %v8503_v50 = vld [vmem:[#allocation39_spill] sm:$0xff]  ;;  %v6128_v23 = vld [vmem:[#allocation3 + $0x28] sm:$0xf]  ;;  %vm8534_vm5 = vmmov %vm8518_vm2 }
 0x316   : > { %vm8536_vm9 = vmmov %vm8518_vm2 }
 0x317   : > { %v4173_v31 = vrot.slane %v4171_v22, 1  ;;  %4903 = vrot.lane.b32.xlu1 %v4865_v5, %s6155_s26  ;;  %v7934_v36 = vsel %vm8501_vm7, %v5038_v12, %v5039_v37  ;;  %v8504_v22 = vld [vmem:[#allocation22_spill] sm:$0xff]  ;;  %vm8537_vm4 = vmmov %vm8533_vm1 }
 0x318   : > { %v3330_v12 = vsel %vm1525_vm0, %v5454_v34, %v8504_v22  ;;  %vm8548_vm7 = vmmov %vm8518_vm2 }
 0x319   : > { %v2367_v32 = vpop.permute.xlu1 %2366  ;;  %v7936_v13 = vpop.permute.xlu0 %3180  ;;  %v4174_v40 = vor.u32 %v4173_v31, %v4169_v60  ;;  %v8505_v60 = vld [vmem:[#allocation6_spill] sm:$0xff] }
 0x31a   : > { %v3371_v31 = vsel %vm1559_vm3, %v3332_v25, %v8505_v60 }
 0x31b   : > { %4907 = vrot.lane.b32.xlu1 %v4876_v33, %s6155_s26  ;;  %v4178_v30 = vsel %vm818_vm10, %v4174_v40, %v4177_v39  ;;  %v2822_v39 = vld [vmem:[#allocation3 + $0x24] sm:$0xe] }
 0x31c   : > { %5833 = vmatmul.mubr.msk.bf16.gmra.mrb[24].mxu0 %vm1627_vm11, %v4178_v30  ;;  %v5458_v25 = vcombine.low %v2822_v39, %v6128_v23  ;;  %v6129_v39 = vld [vmem:[#allocation3 + $0x48] sm:$0xff]  }
 0x31d   : > { %v7942_v10 = vpop.permute.xlu1 %3182  ;;  %v2271_v35 = vpop.permute.xlu0 %2270 }
 0x31e   : > { %v2495_v1 = vsel %vm1525_vm0, %v6106_v7, %v2271_v35  ;;  %v7972_v7 = vld [vmem:[#allocation3 + $0x3c] sm:$0xe] }
 0x321   : > { %v2267_v56 = vpop.permute.xlu1 %2266  ;;  %v3083_v27 = vpop.permute.xlu0 %3082 }
 0x322   : > { %v2490_v49 = vsel %vm1525_vm0, %v6107_v19, %v2267_v56  ;;  %v6127_v56 = vld [vmem:[#allocation3 + $0x1c] sm:$0xf] }
 0x323   : > { %v2523_v61 = vsel %vm1559_vm3, %v2490_v49, %v7759_v14  ;;  %v5456_v19 = vcombine.low %v2819_v41, %v6127_v56  ;;  %v8506_v49 = vld [vmem:[#allocation38_spill] sm:$0xff]  ;;  %v2834_v41 = vld [vmem:[#allocation3 + $0x54] sm:$0xe] }
 0x324   : > { %v2555_v24 = vsel %vm1593_vm6, %v2523_v61, %v7807_v42  ;;  %v2527_v42 = vsel %vm1559_vm3, %v2495_v1, %v2367_v32  ;;  %v8508_v32 = vld [vmem:[#allocation7_spill] sm:$0xff]  ;;  %v8509_v1 = vld [vmem:[#allocation40_spill] sm:$0xff] }
 0x325   : > { %v2455_v4 = vpop.permute.xlu1 %2454  ;;  %v7945_v15 = vpop.permute.xlu0 %3084  ;;  %v2626_v40 = vshll.u32 %v2555_v24, 16  ;;  %v3403_v44 = vsel %vm1593_vm6, %v3371_v31, %v8508_v32  ;;  %v3340_v31 = vsel %vm1525_vm0, %v5458_v25, %v7657_v17 }
 0x329   : > { %v7949_v59 = vpop.permute.xlu1 %3086  ;;  %v2265_v2 = vpop.permute.xlu0 %2264 }
 0x32a   : > { %v2487_v37 = vsel %vm1525_vm0, %v8503_v50, %v2265_v2  ;;  %v2628_v50 = vrot.slane %v2626_v40, 1 }
 0x32b   : > { %v2521_v14 = vsel %vm1559_vm3, %v2487_v37, %v7724_v57  ;;  %v2559_v57 = vsel %vm1593_vm6, %v2527_v42, %v2455_v4  ;;  %v3362_v4 = vsel %vm1525_vm0, %v8509_v1, %v3083_v27  ;;  %v4056_v27 = vsel %vm1525_vm0, %v6129_v39, %v7848_v54  ;;  %v6130_v42 = vld [vmem:[#allocation3 + $0x40] sm:$0xf]  ;;  %v8513_v54 = vld [vmem:[#allocation36_spill] sm:$0xff] }
 0x32c   : > { %v2553_v5 = vsel %vm1593_vm6, %v2521_v14, %v7859_v63  ;;  %v3369_v63 = vsel %vm1559_vm3, %v3330_v12, %v8507_v18  ;;  %v2636_v37 = vshll.u32 %v2559_v57, 16  ;;  %v5462_v40 = vcombine.low %v7972_v7, %v6130_v42  ;;  %v8511_v57 = vld [vmem:[#allocation17_spill] sm:$0xff]  ;;  %v8512_v18 = vld [vmem:[#allocation19_spill] sm:$0xff] }
 0x32d   : > { %v2622_v33 = vshll.u32 %v2553_v5, 16  ;;  %v2269_v30 = vpop.permute.xlu1 %2268  ;;  %v2453_v35 = vpop.permute.xlu0 %2452  ;;  %v2620_v26 = vshrl.u32 %v2553_v5, 16  ;;  %v8519_v39 = vld [vmem:[#allocation13_spill] sm:$0xff] }
 0x32e   : > { %v2492_v61 = vsel %vm1525_vm0, %v8506_v49, %v2269_v30  ;;  %v3335_v49 = vsel %vm1525_vm0, %v5456_v19, %v8511_v57  ;;  %v8514_v19 = vld [vmem:[#allocation9_spill] sm:$0xff] }
 0x32f   : > { %v2624_v34 = vrot.slane %v2622_v33, 1  ;;  %v2525_v2 = vsel %vm1559_vm3, %v2492_v61, %v2365_v45  ;;  %v8510_v45 = vld [vmem:[#allocation5_spill] sm:$0xff]  ;;  %v3395_v33 = vsel %vm1559_vm3, %v3362_v4, %v7776_v6  ;;  %v3377_v1 = vsel %vm1559_vm3, %v3340_v31, %v8514_v19 }
 0x330   : > { %v2557_v24 = vsel %vm1593_vm6, %v2525_v2, %v2453_v35  ;;  %v3401_v60 = vsel %vm1593_vm6, %v3369_v63, %v8510_v45  ;;  %v6131_v61 = vld [vmem:[#allocation3 + $0x20] ss:$0 sps:$4 sm:$0x11]   ;;  %v3449_v63 = vrot.slane %v3403_v44, 1  ;;  %v2638_v2 = vrot.slane %v2636_v37, 1 }
 0x331   : > { %v2632_v14 = vshll.u32 %v2557_v24, 16  ;;  %v7980_v22 = vpop.permute.xlu1 %3326  ;;  %v7982_v12 = vpop.permute.xlu0 %3324  ;;  %v2625_v5 = vor.u32 %v2624_v34, %v2620_v26  ;;  %v2630_v30 = vshrl.u32 %v2557_v24, 16  ;;  %v3337_v17 = vsel %vm1525_vm0, %v6131_v61, %v8512_v18  ;;  %v6132_v34 = vld [vmem:[#allocation3 + $0x2c] ss:$0 sps:$4 sm:$0x11]   ;;  %v8522_v18 = vld [vmem:[#allocation21_spill] sm:$0xff] }
 0x332   : > { %v5466_v26 = vcombine.low %v2834_v41, %v8513_v54  ;;  %v3448_v7 = vrot.slane %v3401_v60, 1  ;;  %v3342_v6 = vsel %vm1525_vm0, %v6132_v34, %v7621_v47  ;;  %v4092_v44 = vsel %vm1559_vm3, %v4056_v27, %v7794_v52  ;;  %v8516_v41 = vld [vmem:[#allocation27_spill] sm:$0xff]  ;;  %v8517_v52 = vld [vmem:[#allocation8_spill] sm:$0xff]  ;;  %v8520_v27 = vld [vmem:[#allocation18_spill] sm:$0xff] }
 0x333   : > { %v2634_v35 = vrot.slane %v2632_v14, 1  ;;  %v2629_v56 = vsel %vm818_vm10, %v2625_v5, %v2628_v50  ;;  %v3427_v4 = vsel %vm1593_vm6, %v3395_v33, %v7840_v0  ;;  %v8515_v50 = vld [vmem:[#allocation12_spill] sm:$0xff]  ;;  %v4124_v47 = vsel %vm1593_vm6, %v4092_v44, %v7929_v20  ;;  %v6134_v19 = vld [vmem:[#allocation3 + $0x44] ss:$0 sps:$4 sm:$0x11]  }
 0x334   : > { %5800 = vmatprep.mubr.msk.bf16.mxu1 %vm1627_vm11, %v2629_v56  ;;  %v3375_v14 = vsel %vm1559_vm3, %v3337_v17, %v8515_v50  ;;  %v3379_v60 = vsel %vm1559_vm3, %v3342_v6, %v8517_v52  ;;  %v3450_v31 = vsel %vm8518_vm2, %v3448_v7, %v3449_v63  ;;  %v3373_v20 = vsel %vm1559_vm3, %v3335_v49, %v8519_v39  ;;  %v8521_v56 = vld [vmem:[#allocation24_spill] sm:$0xff]  ;;  %v6084_v63 = vld [vmem:[#allocation3 + $0x50] ss:$0 sps:$4 sm:$0x11]   ;;  %v8524_v7 = vld [vmem:[#allocation41_spill] sm:$0xff] }
 0x335   : > { %v2635_v32 = vor.u32 %v2634_v35, %v2630_v30  ;;  %v3081_v23 = vpop.permute.xlu1 %3080  ;;  %v8002_v25 = vpop.permute.xlu0 %3841  ;;  %v3407_v45 = vsel %vm1593_vm6, %v3375_v14, %v8516_v41  ;;  %v3467_v42 = vrot.slane %v3427_v4, 1  ;;  %v3405_v57 = vsel %vm1593_vm6, %v3373_v20, %v8521_v56  ;;  %v8525_v4 = vld [vmem:[#allocation29_spill] sm:$0xff]  ;;  %v8530_v20 = vld [vmem:[#allocation43_spill] sm:$0xff] }
 0x336   : > { %v3360_v24 = vsel %vm1525_vm0, %v5466_v26, %v3081_v23  ;;  %v3452_v61 = vrot.slane %v3407_v45, 1  ;;  %v3411_v17 = vsel %vm1593_vm6, %v3379_v60, %v8522_v18  ;;  %v3350_v49 = vsel %vm1525_vm0, %v5462_v40, %v7887_v48  ;;  %v6133_v26 = vld [vmem:[#allocation3 + $0x38] ss:$0 sps:$4 sm:$0x11]   ;;  %v8063_v45 = vld [vmem:[%s8425_s4] ss:$0 sm:$0xff] }
 0x337   : > { %v3393_v37 = vsel %vm1559_vm3, %v3360_v24, %v7745_v46  ;;  %v2639_v5 = vsel %vm818_vm10, %v2635_v32, %v2638_v2  ;;  %v3409_v46 = vsel %vm1593_vm6, %v3377_v1, %v8520_v27  ;;  %v3347_v34 = vsel %vm1525_vm0, %v6133_v26, %v8524_v7  ;;  %v8528_v52 = vld [vmem:[#allocation33_spill] sm:$0xff] }
 0x338   : > { %v3425_v0 = vsel %vm1593_vm6, %v3393_v37, %v7842_v21  ;;  %5801 = vmatmul.mubr.msk.bf16.gmra.mrb[8].mxu1 %vm1627_vm11, %v2639_v5  ;;  %v4181_v21 = vshll.u32 %v4124_v47, 16  ;;  %v3454_v6 = vrot.slane %v3409_v46, 1  ;;  %v3451_v32 = vrot.slane %v3405_v57, 1 }
 0x339   : > { %v3466_v33 = vrot.slane %v3425_v0, 1  ;;  %v3840_v30 = vpop.permute.xlu1 %3839  ;;  %5808 = vmatprep.mubr.msk.bf16.mxu1 %vm1627_vm11, %v3450_v31  ;;  %v4024_v35 = vpop.permute.xlu0 %4023  ;;  %v4059_v23 = vsel %vm1525_vm0, %v6084_v63, %v7800_v43  ;;  %v3352_v48 = vsel %vm1525_vm0, %v6134_v19, %v7878_v53  ;;  %v3455_v44 = vrot.slane %v3411_v17, 1  ;;  %v8527_v43 = vld [vmem:[#allocation34_spill] sm:$0xff]  ;;  %v6110_v19 = vld [vmem:[#allocation3 + $0x5c] ss:$0 sps:$4 sm:$0x11]  }
 0x33a   : > { %v4061_v2 = vsel %vm1525_vm0, %v7619_v38, %v3840_v30  ;;  %v3385_v24 = vsel %vm1559_vm3, %v3350_v49, %v8525_v4  ;;  %v4183_v50 = vrot.slane %v4181_v21, 1  ;;  %v6114_v38 = vld [vmem:[%s8424_s3 + $0x38] sm:$0xff]   ;;  %v3453_v37 = vsel %vm8526_vm13, %v3451_v32, %v3452_v61  ;;  %v8531_v61 = vld [vmem:[#allocation42_spill] sm:$0xff]  ;;  %vm8553_vm13 = vmmov %vm8518_vm2 }
 0x33b   : > { %v8038_v54 = vsel %vm8523_vm12, %v3466_v33, %v3467_v42  ;;  %v3383_v5 = vsel %vm1559_vm3, %v3347_v34, %v8527_v43  ;;  %v4096_v53 = vsel %vm1559_vm3, %v4061_v2, %v7761_v8  ;;  %v3387_v60 = vsel %vm1559_vm3, %v3352_v48, %v8528_v52  ;;  %v4397_v43 = vld [vmem:[#allocation3 + $0x18] sm:$0xe]  ;;  %v6136_v52 = vld [vmem:[#allocation3 + $0x1c] sm:$0xf]  ;;  %vm8552_vm12 = vmmov %vm8518_vm2 }
 0x33c   : > { %v4179_v0 = vshrl.u32 %v4124_v47, 16  ;;  %v3456_v39 = vsel %vm8529_vm14, %v3454_v6, %v3455_v44  ;;  %v3415_v8 = vsel %vm1593_vm6, %v3383_v5, %v7637_v62  ;;  %v3417_v27 = vsel %vm1593_vm6, %v3385_v24, %v8530_v20  ;;  %v6135_v5 = vld [vmem:[#allocation3 + $0x64] sm:$0xf]  ;;  %vm8554_vm14 = vmmov %vm8518_vm2 }
 0x33d   : > { %v3934_v40 = vpop.permute.xlu1 %3933  ;;  %v4022_v1 = vpop.permute.xlu0 %4021  ;;  %v4128_v47 = vsel %vm1593_vm6, %v4096_v53, %v4024_v35  ;;  %v3457_v62 = vrot.slane %v7675_v51, 1  ;;  %v3460_v17 = vrot.slane %v3417_v27, 1  ;;  %v3458_v34 = vrot.slane %v3415_v8, 1  ;;  %v8538_v8 = vld [vmem:[#allocation16_spill] sm:$0xff] }
 0x33e   : > { %v4094_v14 = vsel %vm1559_vm3, %v4059_v23, %v3934_v40  ;;  %v4184_v33 = vor.u32 %v4183_v50, %v4179_v0  ;;  %v4191_v6 = vshll.u32 %v4128_v47, 16  ;;  %v4064_v24 = vsel %vm1525_vm0, %v6110_v19, %v8002_v25  ;;  %v8545_v19 = vld [vmem:[#allocation11_spill] sm:$0xff] }
 0x33f   : > { %v4126_v41 = vsel %vm1593_vm6, %v4094_v14, %v4022_v1  ;;  %v2837_v1 = vld [vmem:[#allocation3 + $0x60] sm:$0xe]  ;;  %v3459_v4 = vsel %vm8534_vm5, %v3457_v62, %v3458_v34  ;;  %v4189_v0 = vshrl.u32 %v4128_v47, 16  ;;  %v8543_v34 = vld [vmem:[#allocation26_spill] sm:$0xff] }
 0x340   : > { %v4185_v31 = vshll.u32 %v4126_v41, 16  ;;  %5809 = vmatmul.mubr.msk.bf16.vlgmr.msra.gmra.mrb[12].mxu1 %vm1627_vm11, %v3453_v37  ;;  %v4193_v14 = vrot.slane %v4191_v6, 1  ;;  %v5468_v53 = vcombine.low %v2837_v1, %v6135_v5 }
 0x341   : > { %v3938_v46 = vpop.permute.xlu1 %3937  ;;  %v5790_v42 = vpop.f32.mrb[16].mxu0  ;;  %5812 = vmatprep.mubr.msk.bf16.mxu1 %vm1627_vm11, %v3456_v39  ;;  %5845 = vmatpush3.bf16.msra.mxu1 %v7768_v9  ;;  %v3419_v9 = vsel %vm1593_vm6, %v3387_v60, %v8531_v61  ;;  %v5596_v60 = vcombine.low %v4397_v43, %v6136_v52  ;;  %v6137_v39 = vld [vmem:[#allocation3 + $0x20] ss:$0 sps:$4 sm:$0x11]   ;;  %v8540_v61 = vld [vmem:[#allocation15_spill] sm:$0xff]  ;;  %v8549_v43 = vld [vmem:[#allocation20_spill] sm:$0xff] }
 0x342   : > { %v4187_v30 = vrot.slane %v4185_v31, 1  ;;  %v2730_v56 = vadd.f32 %v5790_v42, %v8063_v45  ;;  %v8078_v57 = vpop.permute.xlu0 %4655  ;;  %v2721_v21 = vpop.f32.mrb[17].mxu0  ;;  %5846 = vmatprep.subr.bf16.mxu1 %v6114_v38  ;;  %v3461_v23 = vrot.slane %v3419_v9, 1  ;;  %v4913_v20 = vsel %vm1525_vm0, %v6137_v39, %v8538_v8 }
 0x343   : > { %v2722_v18 = vadd.f32 %v8063_v45, %v2721_v21  ;;  %v5791_v35 = vpop.f32.mrb[18].mxu0  ;;  %v3365_v27 = vsel %vm1525_vm0, %v5468_v53, %v7945_v15  ;;  %v4952_v9 = vsel %vm1559_vm3, %v4913_v20, %v8540_v61  ;;  %v5035_v20 = vrot.slane %v7713_v16, 1  ;;  %v6142_v61 = vld [vmem:[#allocation3 + $0x4c] sm:$0xf] }
 0x344   : > { %v2786_v63 = vmax.f32 %v2730_v56, 0.0  ;;  %v2733_v49 = vadd.f32 %v5791_v35, %v8063_v45  ;;  %v2724_v26 = vpop.f32.mrb[19].mxu0  ;;  %v4188_v7 = vsel %vm818_vm10, %v4184_v33, %v4187_v30  ;;  %v3462_v50 = vsel %vm8536_vm9, %v3460_v17, %v3461_v23  ;;  %v8539_v33 = vld [vmem:[#allocation28_spill] sm:$0xff]  ;;  %v8541_v35 = vld [vmem:[#allocation14_spill] sm:$0xff]  ;;  %v8544_v23 = vld [vmem:[#allocation45_spill] sm:$0xff] }
 0x345   : > { %v2784_v2 = vmax.f32 %v2722_v18, 0.0  ;;  %v2725_v51 = vadd.f32 %v8063_v45, %v2724_v26  ;;  %v8092_v32 = vpop.permute.xlu1 %4653  ;;  %5836 = vmatprep.mubr.msk.bf16.mxu0 %vm1627_vm11, %v4188_v7  ;;  %5847 = vmatpush3.bf16.msra.mxu1 %v6114_v38  ;;  %v4098_v38 = vsel %vm1559_vm3, %v4064_v24, %v3938_v46  ;;  %v6138_v46 = vld [vmem:[#allocation3 + $0x68] ss:$0 sps:$4 sm:$0x11]   ;;  %v4911_v30 = vsel %vm1525_vm0, %v5596_v60, %v8539_v33  ;;  %v8551_v60 = vld [vmem:[#allocation35_spill] sm:$0xff] }
 0x346   : > { %2802 = vst.msk [vmem:[%s8083_s12 + $0x10] sm:$0xff] %vm8532_vm15, %v2786_v63  ;;  %v2787_v48 = vmax.f32 %v2733_v49, 0.0  ;;  %v8097_v40 = vpop.permute.xlu0 %4657  ;;  %v3367_v42 = vsel %vm1525_vm0, %v6138_v46, %v7949_v59  ;;  %v4194_v56 = vor.u32 %v4193_v14, %v4189_v0  ;;  %v3397_v15 = vsel %vm1559_vm3, %v3365_v27, %v7936_v13  ;;  %v6140_v24 = vld [vmem:[#allocation3 + $0x38] ss:$0 sps:$4 sm:$0x11]   ;;  %v8547_v14 = vld [vmem:[#allocation10_spill] sm:$0xff]  ;;  %vm8556_vm15 = vmmov %vm8518_vm2 }
 0x347   : > { %2800 = vst.msk [vmem:[%s8083_s12] sm:$0xff] %vm8533_vm1, %v2784_v2  ;;  %v2785_v44 = vmax.f32 %v2725_v51, 0.0  ;;  %v3399_v18 = vsel %vm1559_vm3, %v3367_v42, %v7942_v10  ;;  %v4950_v17 = vsel %vm1559_vm3, %v4911_v30, %v8541_v35  ;;  %v3429_v49 = vsel %vm1593_vm6, %v3397_v15, %v7982_v12  ;;  %v8542_v10 = vld [vmem:[#allocation30_spill] sm:$0xff]  ;;  %vm8561_vm1 = vmmov %vm8518_vm2 }
 0x348   : > { %2803 = vst.msk [vmem:[%s8083_s12 + $0x18] sm:$0xff] %vm8535_vm8, %v2787_v48  ;;  %5813 = vmatmul.mubr.msk.bf16.gmra.mrb[16].mxu1 %vm1627_vm11, %v3459_v4  ;;  %v3431_v63 = vsel %vm1593_vm6, %v3399_v18, %v7980_v22  ;;  %v4984_v26 = vsel %vm1593_vm6, %v4952_v9, %v8542_v10  ;;  %v4982_v6 = vsel %vm1593_vm6, %v4950_v17, %v8543_v34  ;;  %v3469_v2 = vrot.slane %v3429_v49, 1  ;;  %v6139_v12 = vld [vmem:[#allocation3 + $0x2c] ss:$0 sps:$4 sm:$0x11]  }
 0x349   : > { %2801 = vst.msk [vmem:[%s8083_s12 + $0x8] sm:$0xff] %vm8537_vm4, %v2785_v44  ;;  %v4026_v37 = vpop.permute.xlu1 %4025  ;;  %5816 = vmatprep.mubr.msk.bf16.mxu1 %vm1627_vm11, %v3462_v50  ;;  %v3470_v22 = vrot.slane %v3431_v63, 1  ;;  %v5030_v51 = vrot.slane %v4984_v26, 1  ;;  %v4954_v48 = vsel %vm1559_vm3, %v7692_v11, %v8545_v19  ;;  %v5029_v44 = vrot.slane %v4982_v6, 1  ;;  %v4409_v27 = vld [vmem:[#allocation3 + $0x48] sm:$0xe] }
 0x34a   : > { %v4130_v41 = vsel %vm1593_vm6, %v4098_v38, %v4026_v37  ;;  %v8113_v25 = vpop.permute.xlu0 %4749  ;;  %v4986_v5 = vsel %vm1593_vm6, %v4954_v48, %v8549_v43  ;;  %v5604_v9 = vcombine.low %v4409_v27, %v6142_v61  ;;  %v4412_v63 = vld [vmem:[#allocation3 + $0x54] sm:$0xe]  ;;  %v6115_v48 = vld [vmem:[#allocation3 + $0x68] ss:$0 sps:$4 sm:$0x11]  }
 0x34b   : > { %v4195_v31 = vshll.u32 %v4130_v41, 16  ;;  %v3471_v37 = vsel %vm8548_vm7, %v3469_v2, %v3470_v22  ;;  %v5031_v53 = vsel %vm8518_vm2, %v5029_v44, %v5030_v51  ;;  %v8550_v41 = vld [vmem:[#allocation23_spill] sm:$0xff]  ;;  %v5032_v8 = vrot.slane %v4986_v5, 1 }
 0x34c   : > { %v4931_v16 = vsel %vm1525_vm0, %v5604_v9, %v8092_v32 }
 0x34d   : > { %v4197_v21 = vrot.slane %v4195_v31, 1  ;;  %v8123_v62 = vpop.permute.xlu1 %4659 }
 0x34e   : > { %v8125_v47 = vpop.permute.xlu0 %4753  ;;  %v4938_v32 = vsel %vm1525_vm0, %v7732_v29, %v8123_v62 }
 0x34f   : > { %v4198_v59 = vsel %vm818_vm10, %v4194_v56, %v4197_v21  ;;  %v6141_v56 = vld [vmem:[#allocation3 + $0x50] ss:$0 sps:$4 sm:$0x11]  }
 0x350   : > { %5817 = vmatmul.mubr.msk.bf16.gmra.mrb[20].mxu1 %vm1627_vm11, %v7911_v58  ;;  %5837 = vmatmul.mubr.msk.bf16.gmra.mrb[28].mxu0 %vm1627_vm11, %v4198_v59  ;;  %v4918_v58 = vsel %vm1525_vm0, %v6139_v12, %v8544_v23  ;;  %v4933_v21 = vsel %vm1525_vm0, %v6141_v56, %v8078_v57  ;;  %v4966_v57 = vsel %vm1559_vm3, %v4931_v16, %v8113_v25 }
 0x351   : > { %v4752_v13 = vpop.permute.xlu1 %4751  ;;  %5820 = vmatprep.mubr.msk.bf16.mxu1 %vm1627_vm11, %v8038_v54  ;;  %v8546_v54 = vld [vmem:[#allocation37_spill] sm:$0xff]  ;;  %v4956_v38 = vsel %vm1559_vm3, %v4918_v58, %v8547_v14 }
 0x352   : > { %v4894_v7 = vpop.permute.xlu0 %4893  ;;  %v4923_v50 = vsel %vm1525_vm0, %v6140_v24, %v8546_v54  ;;  %v4988_v52 = vsel %vm1593_vm6, %v4956_v38, %v8550_v41  ;;  %v4968_v15 = vsel %vm1559_vm3, %v4933_v21, %v4752_v13  ;;  %v6143_v13 = vld [vmem:[#allocation3 + $0x58] sm:$0xf]  ;;  %v8555_v54 = vld [vmem:[#allocation46_spill] sm:$0xff] }
 0x353   : > { %v4960_v0 = vsel %vm1559_vm3, %v4923_v50, %v8551_v60  ;;  %v5033_v46 = vrot.slane %v4988_v52, 1  ;;  %v4998_v49 = vsel %vm1593_vm6, %v4966_v57, %v4894_v7  ;;  %v5606_v34 = vcombine.low %v4412_v63, %v6143_v13  ;;  %v4418_v57 = vld [vmem:[#allocation3 + $0x6c] sm:$0xe] }
 0x354   : > { %v4992_v39 = vsel %vm1593_vm6, %v4960_v0, %v7685_v55  ;;  %v5041_v6 = vrot.slane %v4998_v49, 1  ;;  %v8557_v49 = vld [vmem:[#allocation47_spill] sm:$0xff] }
 0x355   : > { %v4756_v1 = vpop.permute.xlu1 %4755  ;;  %v5036_v33 = vrot.slane %v4992_v39, 1  ;;  %v5034_v18 = vsel %vm8552_vm12, %v5032_v8, %v5033_v46  ;;  %v4936_v51 = vsel %vm1525_vm0, %v5606_v34, %v8097_v40 }
 0x356   : > { %v4898_v4 = vpop.permute.xlu0 %4897  ;;  %v4972_v2 = vsel %vm1559_vm3, %v4938_v32, %v4756_v1  ;;  %v4970_v29 = vsel %vm1559_vm3, %v4936_v51, %v8125_v47 }
 0x357   : > { %v5037_v55 = vsel %vm8553_vm13, %v5035_v20, %v5036_v33  ;;  %v5002_v40 = vsel %vm1593_vm6, %v4970_v29, %v4898_v4 }
 0x358   : > { %5821 = vmatmul.mubr.msk.bf16.gmra.mrb[24].mxu1 %vm1627_vm11, %v3471_v37  ;;  %v5044_v44 = vrot.slane %v5002_v40, 1 }
 0x359   : > { %v4896_v11 = vpop.permute.xlu1 %4895  ;;  %5848 = vmatprep.mubr.msk.bf16.mxu1 %vm1627_vm11, %v5031_v53 }
 0x35a   : > { %v3844_v31 = vpop.permute.xlu0 %3843  ;;  %v5000_v59 = vsel %vm1593_vm6, %v4968_v15, %v4896_v11 }
 0x35b   : > { %v5042_v10 = vrot.slane %v5000_v59, 1  ;;  %v4066_v25 = vsel %vm1525_vm0, %v7763_v3, %v3844_v31  ;;  %v6116_v31 = vld [vmem:[#allocation3 + $0x74] ss:$0 sps:$4 sm:$0x11]  }
 0x35d   : > { %v4900_v42 = vpop.permute.xlu1 %4899  ;;  %v5043_v12 = vsel %vm8554_vm14, %v5041_v6, %v5042_v10 }
 0x35e   : > { %v3940_v30 = vpop.permute.xlu0 %3939  ;;  %v5004_v7 = vsel %vm1593_vm6, %v4972_v2, %v4900_v42 }
 0x35f   : > { %v4100_v62 = vsel %vm1559_vm3, %v4066_v25, %v3940_v30  ;;  %v5045_v19 = vrot.slane %v5004_v7, 1 }
 0x360   : > { %5849 = vmatmul.mubr.msk.bf16.vlgmr.msra.gmra.mrb[28].mxu1 %vm1627_vm11, %v5034_v18 }
 0x361   : > { %v3848_v35 = vpop.permute.xlu1 %3847  ;;  %5852 = vmatprep.mubr.msk.bf16.mxu1 %vm1627_vm11, %v5037_v55  ;;  %v5046_v4 = vsel %vm8556_vm15, %v5044_v44, %v5045_v19 }
 0x362   : > { %v3944_v17 = vpop.permute.xlu0 %3943  ;;  %v4071_v47 = vsel %vm1525_vm0, %v8555_v54, %v3848_v35  ;;  %v4415_v35 = vld [vmem:[#allocation3 + $0x60] sm:$0xe] }
 0x363   : > { %v4104_v53 = vsel %vm1559_vm3, %v4071_v47, %v3944_v17  ;;  %v5608_v10 = vcombine.low %v4415_v35, %v8557_v49 }
 0x365   : > { %v3846_v26 = vpop.permute.xlu1 %3845 }
 0x366   : > { %v3850_v22 = vpop.permute.xlu0 %3849 }
 0x367   : > { %v4074_v46 = vsel %vm1525_vm0, %v6116_v31, %v3850_v22  ;;  %v8559_v22 = vld [vmem:[#allocation49_spill] sm:$0xff] }
 0x368   : > { %5853 = vmatmul.mubr.msk.bf16.gmra.mrb[32].mxu1 %vm1627_vm11, %v7934_v36  ;;  %v4069_v36 = vsel %vm1525_vm0, %v6115_v48, %v3846_v26  ;;  %v8558_v26 = vld [vmem:[#allocation48_spill] sm:$0xff] }
 0x369   : > { %v4028_v23 = vpop.permute.xlu1 %4027  ;;  %5856 = vmatprep.mubr.msk.bf16.mxu1 %vm1627_vm11, %v5043_v12  ;;  %v5610_v13 = vcombine.low %v4418_v57, %v8558_v26 }
 0x36a   : > { %v4132_v58 = vsel %vm1593_vm6, %v4100_v62, %v4028_v23  ;;  %v4032_v3 = vpop.permute.xlu0 %4031 }
 0x36b   : > { %v4201_v1 = vshll.u32 %v4132_v58, 16  ;;  %v4199_v43 = vshrl.u32 %v4132_v58, 16  ;;  %v4136_v52 = vsel %vm1593_vm6, %v4104_v53, %v4032_v3 }
 0x36c   : > { %v4211_v8 = vshll.u32 %v4136_v52, 16  ;;  %v4209_v61 = vshrl.u32 %v4136_v52, 16 }
 0x36d   : > { %v3942_v24 = vpop.permute.xlu1 %3941  ;;  %v4203_v50 = vrot.slane %v4201_v1, 1 }
 0x36e   : > { %v4102_v14 = vsel %vm1559_vm3, %v4069_v36, %v3942_v24  ;;  %v4030_v38 = vpop.permute.xlu0 %4029  ;;  %v4213_v42 = vrot.slane %v4211_v8, 1 }
 0x36f   : > { %v4134_v37 = vsel %vm1593_vm6, %v4102_v14, %v4030_v38  ;;  %v4204_v41 = vor.u32 %v4203_v50, %v4199_v43 }
 0x370   : > { %v4205_v5 = vshll.u32 %v4134_v37, 16  ;;  %5857 = vmatmul.mubr.msk.bf16.gmra.mrb[36].mxu1 %vm1627_vm11, %v5046_v4  ;;  %v4214_v18 = vor.u32 %v4213_v42, %v4209_v61 }
 0x371   : > { %v3946_v11 = vpop.permute.xlu1 %3945 }
 0x372   : > { %v4207_v60 = vrot.slane %v4205_v5, 1  ;;  %v4664_v0 = vpop.permute.xlu0 %4663  ;;  %v4106_v33 = vsel %vm1559_vm3, %v4074_v46, %v3946_v11 }
 0x373   : > { %v4943_v2 = vsel %vm1525_vm0, %v8559_v22, %v4664_v0 }
 0x374   : > { %v4208_v39 = vsel %vm818_vm10, %v4204_v41, %v4207_v60 }
 0x375   : > { %v4662_v20 = vpop.permute.xlu1 %4661  ;;  %5840 = vmatprep.mubr.msk.bf16.mxu0 %vm1627_vm11, %v4208_v39 }
 0x376   : > { %v4666_v27 = vpop.permute.xlu0 %4665  ;;  %v4941_v32 = vsel %vm1525_vm0, %v5608_v10, %v4662_v20 }
 0x377   : > { %v4946_v51 = vsel %vm1525_vm0, %v5610_v13, %v4666_v27 }
 0x379   : > { %v4034_v30 = vpop.permute.xlu1 %4033 }
 0x37a   : > { %v4138_v56 = vsel %vm1593_vm6, %v4106_v33, %v4034_v30  ;;  %v4758_v21 = vpop.permute.xlu0 %4757 }
 0x37b   : > { %v4215_v9 = vshll.u32 %v4138_v56, 16  ;;  %v4974_v6 = vsel %vm1559_vm3, %v4941_v32, %v4758_v21 }
 0x37d   : > { %v4217_v15 = vrot.slane %v4215_v9, 1  ;;  %v4668_v55 = vpop.permute.xlu1 %4667 }
 0x37e   : > { %v4762_v16 = vpop.permute.xlu0 %4761  ;;  %v4948_v3 = vsel %vm1525_vm0, %v7857_v28, %v4668_v55  ;;  %vm8562_vm0 = vmmov %vm8537_vm4 }
 0x37f   : > { %v4218_v59 = vsel %vm818_vm10, %v4214_v18, %v4217_v15  ;;  %v4978_v23 = vsel %vm1559_vm3, %v4946_v51, %v4762_v16  ;;  %vm8560_vm10 = vmmov %vm8518_vm2 }
 0x380   : > { %5841 = vmatmul.mubr.msk.bf16.gmra.mrb[32].mxu0 %vm1627_vm11, %v4218_v59  ;;  %vm8566_vm5 = vmmov %vm8562_vm0 }
 0x381   : > { %v4760_v17 = vpop.permute.xlu1 %4759  ;;  %vm8567_vm8 = vmmov %vm8562_vm0 }
 0x382   : > { %v4902_v63 = vpop.permute.xlu0 %4901  ;;  %v4976_v7 = vsel %vm1559_vm3, %v4943_v2, %v4760_v17  ;;  %vm8568_vm9 = vmmov %vm8562_vm0 }
 0x383   : > { %v5006_v25 = vsel %vm1593_vm6, %v4974_v6, %v4902_v63  ;;  %vm8569_vm4 = vmmov %vm8562_vm0 }
 0x384   : > { %v5047_v40 = vrot.slane %v5006_v25, 1  ;;  %vm8570_vm7 = vmmov %vm8562_vm0 }
 0x385   : > { %v4764_v34 = vpop.permute.xlu1 %4763  ;;  %vm8571_vm2 = vmmov %vm8562_vm0 }
 0x386   : > { %v4906_v12 = vpop.permute.xlu0 %4905  ;;  %v4980_v48 = vsel %vm1559_vm3, %v4948_v3, %v4764_v34  ;;  %vm8563_vm3 = vmmov %vm8562_vm0 }
 0x387   : > { %v5010_v19 = vsel %vm1593_vm6, %v4978_v23, %v4906_v12  ;;  %vm8572_vm12 = vmmov %vm8562_vm0 }
 0x388   : > { %v5050_v24 = vrot.slane %v5010_v19, 1  ;;  %vm8573_vm13 = vmmov %vm8562_vm0 }
 0x389   : > { %v4904_v29 = vpop.permute.xlu1 %4903  ;;  %vm8574_vm14 = vmmov %vm8562_vm0 }
 0x38a   : > { %v5008_v62 = vsel %vm1593_vm6, %v4976_v7, %v4904_v29  ;;  %vm8575_vm15 = vmmov %vm8562_vm0 }
 0x38b   : > { %v5048_v58 = vrot.slane %v5008_v62, 1 }
 0x38d   : > { %v4908_v1 = vpop.permute.xlu1 %4907  ;;  %v5049_v44 = vsel %vm8560_vm10, %v5047_v40, %v5048_v58  ;;  %vm8576_vm10 = vmmov %vm8562_vm0 }
 0x38e   : > { %v5012_v36 = vsel %vm1593_vm6, %v4980_v48, %v4908_v1  ;;  %5860 = vmatprep.mubr.msk.bf16.mxu1 %vm1627_vm11, %v5049_v44  ;;  %vm8564_vm6 = vmmov %vm8562_vm0 }
 0x38f   : > { %v5051_v54 = vrot.slane %v5012_v36, 1 }
 0x391   : > { %v5052_v47 = vsel %vm8561_vm1, %v5050_v24, %v5051_v54  ;;  %vm8577_vm1 = vmmov %vm8562_vm0 }
 0x392   : > { %5861 = vmatmul.mubr.msk.bf16.gmra.mrb[40].mxu1 %vm1627_vm11, %v5052_v47  ;;  %vm8565_vm11 = vmmov %vm8562_vm0 }
 0x3a9   : > { %v5794_v28 = vpop.f32.mrb[0].mxu1 }
 0x3aa   : > { %v2746_v50 = vadd.f32 %v5794_v28, %v8063_v45  ;;  %v2737_v14 = vpop.f32.mrb[1].mxu1 }
 0x3ab   : > { %v2738_v38 = vadd.f32 %v8063_v45, %v2737_v14  ;;  %v5795_v37 = vpop.f32.mrb[2].mxu1 }
 0x3ac   : > { %v2790_v4 = vmax.f32 %v2746_v50, 0.0  ;;  %v2749_v43 = vadd.f32 %v5795_v37, %v8063_v45  ;;  %v2740_v5 = vpop.f32.mrb[3].mxu1 }
 0x3ad   : > { %v2788_v53 = vmax.f32 %v2738_v38, 0.0  ;;  %v2741_v11 = vadd.f32 %v8063_v45, %v2740_v5 }
 0x3ae   : > { %2806 = vst.msk [vmem:[%s8083_s12 + $0x30] sm:$0xff] %vm8562_vm0, %v2790_v4  ;;  %v2791_v41 = vmax.f32 %v2749_v43, 0.0 }
 0x3af   : > { %2804 = vst.msk [vmem:[%s8083_s12 + $0x20] sm:$0xff] %vm8563_vm3, %v2788_v53  ;;  %v2789_v52 = vmax.f32 %v2741_v11, 0.0  ;;  %v5830_v60 = vpop.f32.mrb[20].mxu0  ;;  %vm8578_vm3 = vmmov %vm8562_vm0 }
 0x3b0   : > { %2807 = vst.msk [vmem:[%s8083_s12 + $0x38] sm:$0xff] %vm8564_vm6, %v2791_v41  ;;  %v4310_v0 = vadd.f32 %v5830_v60, %v8063_v45  ;;  %v4301_v31 = vpop.f32.mrb[21].mxu0  ;;  %vm8579_vm6 = vmmov %vm8562_vm0 }
 0x3b1   : > { %2805 = vst.msk [vmem:[%s8083_s12 + $0x28] sm:$0xff] %vm8565_vm11, %v2789_v52  ;;  %v4302_v39 = vadd.f32 %v8063_v45, %v4301_v31  ;;  %v5831_v8 = vpop.f32.mrb[22].mxu0  ;;  %vm8580_vm11 = vmmov %vm8562_vm0 }
 0x3b2   : > { %v4366_v20 = vmax.f32 %v4310_v0, 0.0  ;;  %v4313_v27 = vadd.f32 %v5831_v8, %v8063_v45  ;;  %v4304_v46 = vpop.f32.mrb[23].mxu0 }
 0x3b3   : > { %v4364_v42 = vmax.f32 %v4302_v39, 0.0  ;;  %v4305_v33 = vadd.f32 %v8063_v45, %v4304_v46 }
 0x3b4   : > { %5582 = vst.msk [vmem:[%s8083_s12 + $0x110] sm:$0xff] %vm8566_vm5, %v4366_v20  ;;  %v4367_v30 = vmax.f32 %v4313_v27, 0.0  ;;  %vm8581_vm5 = vmmov %vm8562_vm0 }
 0x3b5   : > { %5580 = vst.msk [vmem:[%s8083_s12 + $0x100] sm:$0xff] %vm8567_vm8, %v4364_v42  ;;  %v4365_v56 = vmax.f32 %v4305_v33, 0.0  ;;  %vm8582_vm8 = vmmov %vm8562_vm0 }
 0x3b6   : > { %5583 = vst.msk [vmem:[%s8083_s12 + $0x118] sm:$0xff] %vm8568_vm9, %v4367_v30  ;;  %vm8583_vm9 = vmmov %vm8562_vm0 }
 0x3b7   : > { %5581 = vst.msk [vmem:[%s8083_s12 + $0x108] sm:$0xff] %vm8569_vm4, %v4365_v56  ;;  %vm8584_vm4 = vmmov %vm8562_vm0 }
 0x3e1   : > { %v5798_v21 = vpop.f32.mrb[4].mxu1 }
 0x3e2   : > { %v2762_v61 = vadd.f32 %v5798_v21, %v8063_v45  ;;  %v2753_v9 = vpop.f32.mrb[5].mxu1 }
 0x3e3   : > { %v2754_v18 = vadd.f32 %v8063_v45, %v2753_v9  ;;  %v5799_v15 = vpop.f32.mrb[6].mxu1 }
 0x3e4   : > { %v2794_v55 = vmax.f32 %v2762_v61, 0.0  ;;  %v2765_v16 = vadd.f32 %v5799_v15, %v8063_v45  ;;  %v2756_v59 = vpop.f32.mrb[7].mxu1 }
 0x3e5   : > { %v2792_v35 = vmax.f32 %v2754_v18, 0.0  ;;  %v2757_v57 = vadd.f32 %v8063_v45, %v2756_v59 }
 0x3e6   : > { %2810 = vst.msk [vmem:[%s8083_s12 + $0x50] sm:$0xff] %vm8570_vm7, %v2794_v55  ;;  %v2795_v17 = vmax.f32 %v2765_v16, 0.0  ;;  %vm8585_vm7 = vmmov %vm8562_vm0 }
 0x3e7   : > { %2808 = vst.msk [vmem:[%s8083_s12 + $0x40] sm:$0xff] %vm8571_vm2, %v2792_v35  ;;  %v2793_v63 = vmax.f32 %v2757_v57, 0.0  ;;  %vm8586_vm2 = vmmov %vm8562_vm0 }
 0x3e8   : > { %2811 = vst.msk [vmem:[%s8083_s12 + $0x58] sm:$0xff] %vm8572_vm12, %v2795_v17  ;;  %vm8587_vm12 = vmmov %vm8562_vm0 }
 0x3e9   : > { %2809 = vst.msk [vmem:[%s8083_s12 + $0x48] sm:$0xff] %vm8573_vm13, %v2793_v63  ;;  %vm8588_vm13 = vmmov %vm8562_vm0 }
 0x3ef   : > { %v5834_v49 = vpop.f32.mrb[24].mxu0 }
 0x3f0   : > { %v4326_v10 = vadd.f32 %v5834_v49, %v8063_v45  ;;  %v4317_v26 = vpop.f32.mrb[25].mxu0 }
 0x3f1   : > { %v4318_v13 = vadd.f32 %v8063_v45, %v4317_v26  ;;  %v5835_v34 = vpop.f32.mrb[26].mxu0 }
 0x3f2   : > { %v4370_v32 = vmax.f32 %v4326_v10, 0.0  ;;  %v4329_v6 = vadd.f32 %v5835_v34, %v8063_v45  ;;  %v4320_v22 = vpop.f32.mrb[27].mxu0 }
 0x3f3   : > { %v4368_v2 = vmax.f32 %v4318_v13, 0.0  ;;  %v4321_v51 = vadd.f32 %v8063_v45, %v4320_v22 }
 0x3f4   : > { %5586 = vst.msk [vmem:[%s8083_s12 + $0x130] sm:$0xff] %vm8574_vm14, %v4370_v32  ;;  %v4371_v25 = vmax.f32 %v4329_v6, 0.0  ;;  %vm8589_vm14 = vmmov %vm8562_vm0 }
 0x3f5   : > { %5584 = vst.msk [vmem:[%s8083_s12 + $0x120] sm:$0xff] %vm8575_vm15, %v4368_v2  ;;  %v4369_v7 = vmax.f32 %v4321_v51, 0.0  ;;  %vm8590_vm15 = vmmov %vm8562_vm0 }
 0x3f6   : > { %5587 = vst.msk [vmem:[%s8083_s12 + $0x138] sm:$0xff] %vm8576_vm10, %v4371_v25  ;;  %vm8591_vm10 = vmmov %vm8562_vm0 }
 0x3f7   : > { %5585 = vst.msk [vmem:[%s8083_s12 + $0x128] sm:$0xff] %vm8577_vm1, %v4369_v7  ;;  %vm8592_vm1 = vmmov %vm8562_vm0 }
 0x40b   : > { %v5802_v12 = vpop.f32.mrb[8].mxu1 }
 0x40c   : > { %v2778_v29 = vadd.f32 %v5802_v12, %v8063_v45  ;;  %v2769_v62 = vpop.f32.mrb[9].mxu1 }
 0x40d   : > { %v2770_v23 = vadd.f32 %v8063_v45, %v2769_v62  ;;  %v5803_v40 = vpop.f32.mrb[10].mxu1 }
 0x40e   : > { %v2798_v58 = vmax.f32 %v2778_v29, 0.0  ;;  %v2781_v3 = vadd.f32 %v5803_v40, %v8063_v45  ;;  %v2772_v19 = vpop.f32.mrb[11].mxu1 }
 0x40f   : > { %v2796_v48 = vmax.f32 %v2770_v23, 0.0  ;;  %v2773_v1 = vadd.f32 %v8063_v45, %v2772_v19 }
 0x410   : > { %2814 = vst.msk [vmem:[%s8083_s12 + $0x70] sm:$0xff] %vm8562_vm0, %v2798_v58  ;;  %v2799_v44 = vmax.f32 %v2781_v3, 0.0 }
 0x411   : > { %2812 = vst.msk [vmem:[%s8083_s12 + $0x60] sm:$0xff] %vm8578_vm3, %v2796_v48  ;;  %v2797_v36 = vmax.f32 %v2773_v1, 0.0  ;;  %vm8593_vm3 = vmmov %vm8562_vm0 }
 0x412   : > { %2815 = vst.msk [vmem:[%s8083_s12 + $0x78] sm:$0xff] %vm8579_vm6, %v2799_v44  ;;  %vm8594_vm6 = vmmov %vm8562_vm0 }
 0x413   : > { %2813 = vst.msk [vmem:[%s8083_s12 + $0x68] sm:$0xff] %vm8580_vm11, %v2797_v36  ;;  %v5810_v24 = vpop.f32.mrb[12].mxu1  ;;  %vm8595_vm11 = vmmov %vm8562_vm0 }
 0x414   : > { %v3563_v54 = vadd.f32 %v5810_v24, %v8063_v45  ;;  %v3554_v47 = vpop.f32.mrb[13].mxu1 }
 0x415   : > { %v3555_v28 = vadd.f32 %v8063_v45, %v3554_v47  ;;  %v5811_v50 = vpop.f32.mrb[14].mxu1 }
 0x416   : > { %v3619_v14 = vmax.f32 %v3563_v54, 0.0  ;;  %v3566_v38 = vadd.f32 %v5811_v50, %v8063_v45  ;;  %v3557_v37 = vpop.f32.mrb[15].mxu1 }
 0x417   : > { %v3617_v4 = vmax.f32 %v3555_v28, 0.0  ;;  %v3558_v43 = vadd.f32 %v8063_v45, %v3557_v37 }
 0x418   : > { %5519 = vst.msk [vmem:[%s8083_s12 + $0x90] sm:$0xff] %vm8581_vm5, %v3619_v14  ;;  %v3620_v5 = vmax.f32 %v3566_v38, 0.0  ;;  %vm8596_vm5 = vmmov %vm8562_vm0 }
 0x419   : > { %5517 = vst.msk [vmem:[%s8083_s12 + $0x80] sm:$0xff] %vm8582_vm8, %v3617_v4  ;;  %v3618_v53 = vmax.f32 %v3558_v43, 0.0  ;;  %vm8597_vm8 = vmmov %vm8562_vm0 }
 0x41a   : > { %5520 = vst.msk [vmem:[%s8083_s12 + $0x98] sm:$0xff] %vm8583_vm9, %v3620_v5  ;;  %vm8598_vm9 = vmmov %vm8562_vm0 }
 0x41b   : > { %5518 = vst.msk [vmem:[%s8083_s12 + $0x88] sm:$0xff] %vm8584_vm4, %v3618_v53  ;;  %v5814_v11 = vpop.f32.mrb[16].mxu1  ;;  %vm8599_vm4 = vmmov %vm8562_vm0 }
 0x41c   : > { %v3579_v41 = vadd.f32 %v5814_v11, %v8063_v45  ;;  %v3570_v52 = vpop.f32.mrb[17].mxu1 }
 0x41d   : > { %v3571_v60 = vadd.f32 %v8063_v45, %v3570_v52  ;;  %v5815_v0 = vpop.f32.mrb[18].mxu1 }
 0x41e   : > { %v3623_v31 = vmax.f32 %v3579_v41, 0.0  ;;  %v3582_v39 = vadd.f32 %v5815_v0, %v8063_v45  ;;  %v3573_v8 = vpop.f32.mrb[19].mxu1 }
 0x41f   : > { %v3621_v20 = vmax.f32 %v3571_v60, 0.0  ;;  %v3574_v27 = vadd.f32 %v8063_v45, %v3573_v8 }
 0x420   : > { %5523 = vst.msk [vmem:[%s8083_s12 + $0xb0] sm:$0xff] %vm8585_vm7, %v3623_v31  ;;  %v3624_v46 = vmax.f32 %v3582_v39, 0.0  ;;  %vm8600_vm7 = vmmov %vm8562_vm0 }
 0x421   : > { %5521 = vst.msk [vmem:[%s8083_s12 + $0xa0] sm:$0xff] %vm8586_vm2, %v3621_v20  ;;  %v3622_v42 = vmax.f32 %v3574_v27, 0.0  ;;  %vm8601_vm2 = vmmov %vm8562_vm0 }
 0x422   : > { %5524 = vst.msk [vmem:[%s8083_s12 + $0xb8] sm:$0xff] %vm8587_vm12, %v3624_v46  ;;  %vm8602_vm12 = vmmov %vm8562_vm0 }
 0x423   : > { %5522 = vst.msk [vmem:[%s8083_s12 + $0xa8] sm:$0xff] %vm8588_vm13, %v3622_v42  ;;  %v5818_v33 = vpop.f32.mrb[20].mxu1  ;;  %v5838_v30 = vpop.f32.mrb[28].mxu0  ;;  %vm8603_vm13 = vmmov %vm8562_vm0 }
 0x424   : > { %v3595_v56 = vadd.f32 %v5818_v33, %v8063_v45  ;;  %v4342_v21 = vadd.f32 %v5838_v30, %v8063_v45  ;;  %v3586_v61 = vpop.f32.mrb[21].mxu1  ;;  %v4333_v9 = vpop.f32.mrb[29].mxu0 }
 0x425   : > { %v3587_v18 = vadd.f32 %v8063_v45, %v3586_v61  ;;  %v4334_v15 = vadd.f32 %v8063_v45, %v4333_v9  ;;  %v5819_v55 = vpop.f32.mrb[22].mxu1  ;;  %v5839_v16 = vpop.f32.mrb[30].mxu0 }
 0x426   : > { %v3627_v59 = vmax.f32 %v3595_v56, 0.0  ;;  %v4374_v35 = vmax.f32 %v4342_v21, 0.0  ;;  %v3598_v57 = vadd.f32 %v5819_v55, %v8063_v45  ;;  %v4345_v17 = vadd.f32 %v5839_v16, %v8063_v45  ;;  %v3589_v63 = vpop.f32.mrb[23].mxu1  ;;  %v4336_v49 = vpop.f32.mrb[31].mxu0 }
 0x427   : > { %v3625_v10 = vmax.f32 %v3587_v18, 0.0  ;;  %v4372_v26 = vmax.f32 %v4334_v15, 0.0  ;;  %v3590_v13 = vadd.f32 %v8063_v45, %v3589_v63  ;;  %v4337_v34 = vadd.f32 %v8063_v45, %v4336_v49 }
 0x428   : > { %5527 = vst.msk [vmem:[%s8083_s12 + $0xd0] sm:$0xff] %vm8589_vm14, %v3627_v59  ;;  %v3628_v32 = vmax.f32 %v3598_v57, 0.0  ;;  %v4375_v6 = vmax.f32 %v4345_v17, 0.0  ;;  %vm8604_vm14 = vmmov %vm8562_vm0 }
 0x429   : > { %5590 = vst.msk [vmem:[%s8083_s12 + $0x150] sm:$0xff] %vm8590_vm15, %v4374_v35  ;;  %v3626_v22 = vmax.f32 %v3590_v13, 0.0  ;;  %v4373_v2 = vmax.f32 %v4337_v34, 0.0  ;;  %vm8605_vm15 = vmmov %vm8562_vm0 }
 0x42a   : > { %5525 = vst.msk [vmem:[%s8083_s12 + $0xc0] sm:$0xff] %vm8591_vm10, %v3625_v10  ;;  %vm8606_vm10 = vmmov %vm8562_vm0 }
 0x42b   : > { %5588 = vst.msk [vmem:[%s8083_s12 + $0x140] sm:$0xff] %vm8592_vm1, %v4372_v26  ;;  %v5822_v51 = vpop.f32.mrb[24].mxu1  ;;  %vm8607_vm1 = vmmov %vm8562_vm0 }
 0x42c   : > { %5528 = vst.msk [vmem:[%s8083_s12 + $0xd8] sm:$0xff] %vm8562_vm0, %v3628_v32  ;;  %v3611_v25 = vadd.f32 %v5822_v51, %v8063_v45  ;;  %v3602_v7 = vpop.f32.mrb[25].mxu1 }
 0x42d   : > { %5591 = vst.msk [vmem:[%s8083_s12 + $0x158] sm:$0xff] %vm8593_vm3, %v4375_v6  ;;  %v3603_v12 = vadd.f32 %v8063_v45, %v3602_v7  ;;  %v5823_v29 = vpop.f32.mrb[26].mxu1  ;;  %vm8608_vm3 = vmmov %vm8562_vm0 }
 0x42e   : > { %5526 = vst.msk [vmem:[%s8083_s12 + $0xc8] sm:$0xff] %vm8594_vm6, %v3626_v22  ;;  %v3631_v62 = vmax.f32 %v3611_v25, 0.0  ;;  %v3614_v23 = vadd.f32 %v5823_v29, %v8063_v45  ;;  %v3605_v40 = vpop.f32.mrb[27].mxu1  ;;  %vm8609_vm6 = vmmov %vm8562_vm0 }
 0x42f   : > { %5589 = vst.msk [vmem:[%s8083_s12 + $0x148] sm:$0xff] %vm8595_vm11, %v4373_v2  ;;  %v3629_v58 = vmax.f32 %v3603_v12, 0.0  ;;  %v3606_v3 = vadd.f32 %v8063_v45, %v3605_v40  ;;  %vm8610_vm11 = vmmov %vm8562_vm0 }
 0x430   : > { %5531 = vst.msk [vmem:[%s8083_s12 + $0xf0] sm:$0xff] %vm8596_vm5, %v3631_v62  ;;  %v3632_v19 = vmax.f32 %v3614_v23, 0.0  ;;  %vm8611_vm5 = vmmov %vm8562_vm0 }
 0x431   : > { %5529 = vst.msk [vmem:[%s8083_s12 + $0xe0] sm:$0xff] %vm8597_vm8, %v3629_v58  ;;  %v3630_v48 = vmax.f32 %v3606_v3, 0.0  ;;  %vm8612_vm8 = vmmov %vm8562_vm0 }
 0x432   : > { %5532 = vst.msk [vmem:[%s8083_s12 + $0xf8] sm:$0xff] %vm8598_vm9, %v3632_v19  ;;  %vm8613_vm9 = vmmov %vm8562_vm0 }
 0x433   : > { %5530 = vst.msk [vmem:[%s8083_s12 + $0xe8] sm:$0xff] %vm8599_vm4, %v3630_v48  ;;  %v5850_v1 = vpop.f32.mrb[28].mxu1  ;;  %vm8614_vm4 = vmmov %vm8562_vm0 }
 0x434   : > { %v5144_v44 = vadd.f32 %v5850_v1, %v8063_v45  ;;  %v5135_v36 = vpop.f32.mrb[29].mxu1 }
 0x435   : > { %v5136_v24 = vadd.f32 %v8063_v45, %v5135_v36  ;;  %v5851_v54 = vpop.f32.mrb[30].mxu1 }
 0x436   : > { %v5200_v47 = vmax.f32 %v5144_v44, 0.0  ;;  %v5147_v28 = vadd.f32 %v5851_v54, %v8063_v45  ;;  %v5138_v50 = vpop.f32.mrb[31].mxu1 }
 0x437   : > { %v5198_v14 = vmax.f32 %v5136_v24, 0.0  ;;  %v5139_v38 = vadd.f32 %v8063_v45, %v5138_v50 }
 0x438   : > { %5661 = vst.msk [vmem:[%s8083_s12 + $0x190] sm:$0xff] %vm8600_vm7, %v5200_v47  ;;  %v5201_v37 = vmax.f32 %v5147_v28, 0.0  ;;  %vm8615_vm7 = vmmov %vm8562_vm0 }
 0x439   : > { %5659 = vst.msk [vmem:[%s8083_s12 + $0x180] sm:$0xff] %vm8601_vm2, %v5198_v14  ;;  %v5199_v4 = vmax.f32 %v5139_v38, 0.0  ;;  %vm8616_vm2 = vmmov %vm8562_vm0 }
 0x43a   : > { %5662 = vst.msk [vmem:[%s8083_s12 + $0x198] sm:$0xff] %vm8602_vm12, %v5201_v37  ;;  %vm8617_vm12 = vmmov %vm8562_vm0 }
 0x43b   : > { %5660 = vst.msk [vmem:[%s8083_s12 + $0x188] sm:$0xff] %vm8603_vm13, %v5199_v4  ;;  %v5854_v43 = vpop.f32.mrb[32].mxu1  ;;  %vm8618_vm13 = vmmov %vm8562_vm0 }
 0x43c   : > { %v5160_v5 = vadd.f32 %v5854_v43, %v8063_v45  ;;  %v5151_v53 = vpop.f32.mrb[33].mxu1 }
 0x43d   : > { %v5152_v11 = vadd.f32 %v8063_v45, %v5151_v53  ;;  %v5855_v41 = vpop.f32.mrb[34].mxu1 }
 0x43e   : > { %v5204_v52 = vmax.f32 %v5160_v5, 0.0  ;;  %v5163_v60 = vadd.f32 %v5855_v41, %v8063_v45  ;;  %v5154_v0 = vpop.f32.mrb[35].mxu1 }
 0x43f   : > { %v5202_v31 = vmax.f32 %v5152_v11, 0.0  ;;  %v5155_v39 = vadd.f32 %v8063_v45, %v5154_v0 }
 0x440   : > { %5665 = vst.msk [vmem:[%s8083_s12 + $0x1b0] sm:$0xff] %vm8604_vm14, %v5204_v52  ;;  %v5205_v8 = vmax.f32 %v5163_v60, 0.0 }
 0x441   : > { %5663 = vst.msk [vmem:[%s8083_s12 + $0x1a0] sm:$0xff] %vm8605_vm15, %v5202_v31  ;;  %v5203_v20 = vmax.f32 %v5155_v39, 0.0 }
 0x442   : > { %5666 = vst.msk [vmem:[%s8083_s12 + $0x1b8] sm:$0xff] %vm8606_vm10, %v5205_v8 }
 0x443   : > { %5664 = vst.msk [vmem:[%s8083_s12 + $0x1a8] sm:$0xff] %vm8607_vm1, %v5203_v20  ;;  %v5858_v27 = vpop.f32.mrb[36].mxu1 }
 0x444   : > { %v5176_v46 = vadd.f32 %v5858_v27, %v8063_v45  ;;  %v5167_v42 = vpop.f32.mrb[37].mxu1 }
 0x445   : > { %v5168_v33 = vadd.f32 %v8063_v45, %v5167_v42  ;;  %v5859_v30 = vpop.f32.mrb[38].mxu1 }
 0x446   : > { %v5208_v56 = vmax.f32 %v5176_v46, 0.0  ;;  %v5179_v21 = vadd.f32 %v5859_v30, %v8063_v45  ;;  %v5170_v61 = vpop.f32.mrb[39].mxu1 }
 0x447   : > { %v5206_v9 = vmax.f32 %v5168_v33, 0.0  ;;  %v5171_v18 = vadd.f32 %v8063_v45, %v5170_v61 }
 0x448   : > { %5669 = vst.msk [vmem:[%s8083_s12 + $0x1d0] sm:$0xff] %vm8562_vm0, %v5208_v56  ;;  %v5209_v15 = vmax.f32 %v5179_v21, 0.0 }
 0x449   : > { %5667 = vst.msk [vmem:[%s8083_s12 + $0x1c0] sm:$0xff] %vm8608_vm3, %v5206_v9  ;;  %v5207_v55 = vmax.f32 %v5171_v18, 0.0 }
 0x44a   : > { %5670 = vst.msk [vmem:[%s8083_s12 + $0x1d8] sm:$0xff] %vm8609_vm6, %v5209_v15 }
 0x44b   : > { %5668 = vst.msk [vmem:[%s8083_s12 + $0x1c8] sm:$0xff] %vm8610_vm11, %v5207_v55 }
 0x453   : > { %v5842_v16 = vpop.f32.mrb[32].mxu0 }
 0x454   : > { %v4358_v59 = vadd.f32 %v5842_v16, %v8063_v45  ;;  %v4349_v35 = vpop.f32.mrb[33].mxu0 }
 0x455   : > { %v4350_v57 = vadd.f32 %v8063_v45, %v4349_v35  ;;  %v5843_v17 = vpop.f32.mrb[34].mxu0 }
 0x456   : > { %v4378_v63 = vmax.f32 %v4358_v59, 0.0  ;;  %v4361_v49 = vadd.f32 %v5843_v17, %v8063_v45  ;;  %v4352_v10 = vpop.f32.mrb[35].mxu0 }
 0x457   : > { %v4376_v26 = vmax.f32 %v4350_v57, 0.0  ;;  %v4353_v13 = vadd.f32 %v8063_v45, %v4352_v10 }
 0x458   : > { %5594 = vst.msk [vmem:[%s8083_s12 + $0x170] sm:$0xff] %vm8611_vm5, %v4378_v63  ;;  %v4379_v34 = vmax.f32 %v4361_v49, 0.0 }
 0x459   : > { %5592 = vst.msk [vmem:[%s8083_s12 + $0x160] sm:$0xff] %vm8612_vm8, %v4376_v26  ;;  %v4377_v32 = vmax.f32 %v4353_v13, 0.0 }
 0x45a   : > { %5595 = vst.msk [vmem:[%s8083_s12 + $0x178] sm:$0xff] %vm8613_vm9, %v4379_v34 }
 0x45b   : > { %5593 = vst.msk [vmem:[%s8083_s12 + $0x168] sm:$0xff] %vm8614_vm4, %v4377_v32 }
 0x465   : > { %v5862_v6 = vpop.f32.mrb[40].mxu1 }
 0x466   : > { %v5192_v22 = vadd.f32 %v5862_v6, %v8063_v45  ;;  %v5183_v2 = vpop.f32.mrb[41].mxu1 }
 0x467   : > { %v5184_v51 = vadd.f32 %v8063_v45, %v5183_v2  ;;  %v5863_v25 = vpop.f32.mrb[42].mxu1 }
 0x468   : > { %v5212_v7 = vmax.f32 %v5192_v22, 0.0  ;;  %v5195_v12 = vadd.f32 %v5863_v25, %v8063_v45  ;;  %v5186_v29 = vpop.f32.mrb[43].mxu1 }
 0x469   : > { %v5210_v62 = vmax.f32 %v5184_v51, 0.0  ;;  %v5187_v23 = vadd.f32 %v8063_v45, %v5186_v29 }
 0x46a   : > { %5673 = vst.msk [vmem:[%s8083_s12 + $0x1f0] sm:$0xff] %vm8615_vm7, %v5212_v7  ;;  %v5213_v40 = vmax.f32 %v5195_v12, 0.0 }
 0x46b   : > { %5671 = vst.msk [vmem:[%s8083_s12 + $0x1e0] sm:$0xff] %vm8616_vm2, %v5210_v62  ;;  %v5211_v58 = vmax.f32 %v5187_v23, 0.0 }
 0x46c   : > { %5674 = vst.msk [vmem:[%s8083_s12 + $0x1f8] sm:$0xff] %vm8617_vm12, %v5213_v40 }
 0x46d   : > { %5672 = vst.msk [vmem:[%s8083_s12 + $0x1e8] sm:$0xff] %vm8618_vm13, %v5211_v58 }
 0x46e PF: > { %s15_s18 = sadd.s32 1, %s6150_s18  }
 0x46f   : > { %p12_p4 = scmp.ge.s32.totalorder %s15_s18, 4  }
 0x471   :  { %14 = sbr.rel (!%p12_p4) target bundleno = 1 (0x1), region = 82 }

</bundles_post_ra>
